<compile_context>
chip_gen: v7x
topology: tpu7x:2x2x1
jax: 0.10.0
libtpu: 0.0.40
codegen_flags: <defaults>
</compile_context>

<pallas_src>
import functools

import jax
import jax.numpy as jnp
from jax import lax
from jax.experimental import pallas as pl
from jax.experimental.pallas import tpu as pltpu

_LANES = 128


def _round_up(x, m):
    return ((x + m - 1) // m) * m


def _fused_double_conv_kernel(x_hbm, w1_ref, w2_ref, o_ref,
                              xbuf, y1buf, sem, *, th, h, w):
    """One grid step: output rows [t*th, (t+1)*th) of batch element n.

    x_hbm : (N, H+4, W+4, Cin_p)   padded input, left in HBM (pl.ANY)
    w1_ref: (3, 3*Cin_p, Cmid_p)   conv1 weights, (ky, kx*cin, cout) layout
    w2_ref: (3, 3*Cmid_p, Cout_p)  conv2 weights
    o_ref : (1, th, W, Cout_p)     output tile
    xbuf  : (2, th+4, W+4, Cin_p)  double-buffered input slab (VMEM scratch)
    y1buf : (th+2, W+2, Cmid_p)    conv1+ReLU intermediate incl. conv2 halo
    sem   : DMA semaphores, shape (2,)
    """
    n = pl.program_id(0)
    t = pl.program_id(1)
    nt = pl.num_programs(1)

    row0 = pl.multiple_of(t * th, th)   # top output row of this tile
    slot = t % 2

    def start_fetch(r0, s):
        pltpu.make_async_copy(
            x_hbm.at[n, pl.ds(r0, th + 4)], xbuf.at[s], sem.at[s]).start()

    # Prime the pipeline on the first H tile of every batch element.
    @pl.when(t == 0)
    def _():
        start_fetch(row0, slot)

    # Prefetch the next H tile while this one is computed.
    @pl.when(t + 1 < nt)
    def _():
        start_fetch(row0 + th, 1 - slot)

    # Wait for the slab of the current tile.
    pltpu.make_async_copy(
        x_hbm.at[n, pl.ds(row0, th + 4)], xbuf.at[slot], sem.at[slot]).wait()

    cin = xbuf.shape[-1]
    cmid = y1buf.shape[-1]
    cout = o_ref.shape[-1]

    # ---- conv1 + ReLU: y1 rows [row0-1, row0+th+1), 1-col zero pad each side --
    xt = xbuf[slot]                                          # (th+4, W+4, cin)
    # width-im2col: lane-dim concat of the 3 kx shifts -> K = 3*cin
    patch1 = jnp.concatenate(
        [xt[:, 0:w + 2, :], xt[:, 1:w + 3, :], xt[:, 2:w + 4, :]], axis=-1)

    acc1 = jnp.zeros(((th + 2) * (w + 2), cmid), jnp.float32)
    for ky in range(3):                                      # 3 matmuls, K=3*cin
        p = patch1[ky:ky + th + 2].reshape((th + 2) * (w + 2), 3 * cin)
        acc1 = acc1 + jnp.dot(p, w1_ref[ky],
                              preferred_element_type=jnp.float32)

    y1 = jnp.maximum(acc1, 0.0).reshape(th + 2, w + 2, cmid)
    # conv2's zero padding must be exact zeros: mask rows outside [0, H) and
    # the two border columns (they hold conv1-of-padding values otherwise).
    ri = lax.broadcasted_iota(jnp.int32, (th + 2, w + 2, 1), 0) + (row0 - 1)
    ci = lax.broadcasted_iota(jnp.int32, (th + 2, w + 2, 1), 1)
    valid = (ri >= 0) & (ri < h) & (ci >= 1) & (ci <= w)
    y1buf[...] = jnp.where(valid, y1, 0.0)                   # stays in VMEM

    # ---- conv2 + ReLU: output rows [row0, row0+th) ---------------------------
    y1t = y1buf[...]                                         # (th+2, W+2, cmid)
    patch2 = jnp.concatenate(
        [y1t[:, 0:w, :], y1t[:, 1:w + 1, :], y1t[:, 2:w + 2, :]], axis=-1)

    acc2 = jnp.zeros((th * w, cout), jnp.float32)
    for ky in range(3):                                      # 3 matmuls, K=3*cmid
        p = patch2[ky:ky + th].reshape(th * w, 3 * cmid)
        acc2 = acc2 + jnp.dot(p, w2_ref[ky],
                              preferred_element_type=jnp.float32)

    o_ref[...] = jnp.maximum(acc2, 0.0).reshape(1, th, w, cout).astype(o_ref.dtype)


def _pick_th(h):
    for cand in (64, 32, 16, 8):
        if h % cand == 0:
            return cand
    return h


@functools.partial(jax.jit, static_argnames=("th",))
def double_conv(x_nchw, w1_oihw, w2_oihw, *, th=None):
    """PyTorch-equivalent DoubleConv forward (NCHW in / NCHW out)."""
    N, Cin, H, W = x_nchw.shape
    Cmid = w1_oihw.shape[0]
    Cout = w2_oihw.shape[0]
    assert w1_oihw.shape[1:] == (Cin, 3, 3)
    assert w2_oihw.shape[1:] == (Cmid, 3, 3)

    if th is None:
        th = _pick_th(H)
    if H % th != 0:
        th = H
    nt = H // th

    # Lane-dense channel padding (multiples of 128).
    cin_p = _round_up(Cin, _LANES)
    cmid_p = _round_up(Cmid, _LANES)
    cout_p = _round_up(Cout, _LANES)

    # NCHW -> NHWC, spatial pad by 2 (covers both convs' halos), channel pad.
    # TODO(synk): accept/return NHWC directly to drop these transpose/pad HBM passes.
    x_nhwc = jnp.transpose(x_nchw, (0, 2, 3, 1))
    x_p = jnp.pad(x_nhwc, ((0, 0), (2, 2), (2, 2), (0, cin_p - Cin)))

    # OIHW -> (ky, kx*cin, cout), matching the kernel's im2col channel order.
    w1_r = jnp.pad(jnp.transpose(w1_oihw, (2, 3, 1, 0)),
                   ((0, 0), (0, 0), (0, cin_p - Cin), (0, cmid_p - Cmid)))
    w1_r = w1_r.reshape(3, 3 * cin_p, cmid_p)
    w2_r = jnp.pad(jnp.transpose(w2_oihw, (2, 3, 1, 0)),
                   ((0, 0), (0, 0), (0, cmid_p - Cmid), (0, cout_p - Cout)))
    w2_r = w2_r.reshape(3, 3 * cmid_p, cout_p)

    kernel = functools.partial(_fused_double_conv_kernel, th=th, h=H, w=W)

    out_nhwc = pl.pallas_call(
        kernel,
        out_shape=jax.ShapeDtypeStruct((N, H, W, cout_p), x_nchw.dtype),
        grid_spec=pltpu.PrefetchScalarGridSpec(
            num_scalar_prefetch=0,
            grid=(N, nt),
            in_specs=[
                pl.BlockSpec(memory_space=pl.ANY),            # manual halo DMA
                pl.BlockSpec((3, 3 * cin_p, cmid_p), lambda n, t: (0, 0, 0)),
                pl.BlockSpec((3, 3 * cmid_p, cout_p), lambda n, t: (0, 0, 0)),
            ],
            out_specs=pl.BlockSpec((1, th, W, cout_p),
                                   lambda n, t: (n, t, 0, 0)),
            scratch_shapes=[
                pltpu.VMEM((2, th + 4, W + 4, cin_p), x_nchw.dtype),
                pltpu.VMEM((th + 2, W + 2, cmid_p), jnp.float32),
                pltpu.SemaphoreType.DMA((2,)),
            ],
        ),
        compiler_params=pltpu.CompilerParams(
            dimension_semantics=("parallel", "arbitrary"),
            vmem_limit_bytes=48 * 1024 * 1024,
        ),
    )(x_p, w1_r, w2_r)

    return jnp.transpose(out_nhwc[..., :Cout], (0, 3, 1, 2))


def _reference_double_conv(x_nchw, w1_oihw, w2_oihw):
    """Plain-JAX reference (NCHW conv, same as PyTorch)."""
    dn = lax.conv_dimension_numbers(x_nchw.shape, w1_oihw.shape,
                                    ("NCHW", "OIHW", "NCHW"))
    y = lax.conv_general_dilated(x_nchw, w1_oihw, (1, 1), ((1, 1), (1, 1)),
                                 dimension_numbers=dn)
    y = jnp.maximum(y, 0.0)
    y = lax.conv_general_dilated(y, w2_oihw, (1, 1), ((1, 1), (1, 1)),
                                 dimension_numbers=dn)
    return jnp.maximum(y, 0.0)


if __name__ == "__main__":
    N, Cin, Cout, H, W = 2, 4, 8, 16, 16

    key = jax.random.PRNGKey(0)
    kx, kw1, kw2 = jax.random.split(key, 3)

    x = jax.random.normal(kx, (N, Cin, H, W), dtype=jnp.float32)
    # Deterministic synthetic weights in PyTorch OIHW layout.
    w1 = jax.random.normal(kw1, (Cout, Cin, 3, 3), dtype=jnp.float32) * 0.1
    w2 = jax.random.normal(kw2, (Cout, Cout, 3, 3), dtype=jnp.float32) * 0.1

    # th=8 -> two H tiles per image: exercises halo DMA, prefetch and masking.
    out = jax.block_until_ready(double_conv(x, w1, w2, th=8))
    ref = jax.block_until_ready(_reference_double_conv(x, w1, w2))

    assert out.shape == (N, Cout, H, W)
    assert jnp.allclose(out, ref, atol=1e-4, rtol=1e-4), "mismatch vs reference"

    print("KERNEL_OK")
</pallas_src>

<mosaic_0001>
module attributes {stable_mosaic.version = 11 : i64} {
  func.func @_fused_double_conv_kernel(%arg0: i32, %arg1: i32, %arg2: memref<2x20x20x128xf32, #tpu.memory_space<any>>, %arg3: memref<3x384x128xf32, #tpu.memory_space<vmem>>, %arg4: memref<3x384x128xf32, #tpu.memory_space<vmem>>, %arg5: memref<1x8x16x128xf32, #tpu.memory_space<vmem>>, %arg6: memref<2x12x20x128xf32, #tpu.memory_space<vmem>>, %arg7: memref<10x18x128xf32, #tpu.memory_space<vmem>>, %arg8: memref<2x!tpu.dma_semaphore, #tpu.memory_space<semaphore_mem>>) attributes {dimension_semantics = [#tpu.dimension_semantics<parallel>, #tpu.dimension_semantics<arbitrary>], iteration_bounds = array<i64: 2, 2>, scalar_prefetch = 0 : i64, scratch_operands = 3 : i64, tpu.core_type = #tpu.core_type<tc>, window_params = [{}, {pipeline_mode = #tpu.pipeline_mode<synchronous>, transform_indices = @transform_1, window_bounds = array<i64: 3, 384, 128>}, {pipeline_mode = #tpu.pipeline_mode<synchronous>, transform_indices = @transform_2, window_bounds = array<i64: 3, 384, 128>}, {transform_indices = @transform_3, window_bounds = array<i64: 1, 8, 16, 128>}]} {
    %c8_i32 = arith.constant 8 : i32
    %0 = arith.muli %arg1, %c8_i32 : i32
    %1 = tpu.assume_multiple %0, 8 : i32
    %c2_i32 = arith.constant 2 : i32
    %c0_i32 = arith.constant 0 : i32
    %2 = arith.cmpi eq, %c2_i32, %c0_i32 : i32
    %c1_i32 = arith.constant 1 : i32
    %3 = arith.select %2, %c1_i32, %c2_i32 : i32
    %4 = arith.remsi %arg1, %3 : i32
    %c0_i32_0 = arith.constant 0 : i32
    %5 = arith.cmpi ne, %4, %c0_i32_0 : i32
    %c0_i32_1 = arith.constant 0 : i32
    %6 = arith.cmpi slt, %4, %c0_i32_1 : i32
    %c0_i32_2 = arith.constant 0 : i32
    %7 = arith.cmpi slt, %3, %c0_i32_2 : i32
    %8 = arith.xori %6, %7 : i1
    %9 = arith.andi %8, %5 : i1
    %10 = arith.addi %4, %3 : i32
    %11 = arith.select %9, %10, %4 : i32
    %c0_i32_3 = arith.constant 0 : i32
    %12 = arith.cmpi eq, %arg1, %c0_i32_3 : i32
    %13 = arith.extui %12 : i1 to i32
    %c0_i32_4 = arith.constant 0 : i32
    %14 = arith.cmpi ne, %13, %c0_i32_4 : i32
    scf.if %14 {
      %c0_i32_55 = arith.constant 0 : i32
      %c0_i32_56 = arith.constant 0 : i32
      %103 = tpu.memref_slice %arg2[%arg0, %1, %c0_i32_55, %c0_i32_56] : memref<2x20x20x128xf32, #tpu.memory_space<any>> -> memref<1x12x20x128xf32, #tpu.memory_space<any>>
      %104 = tpu.memref_squeeze %103 : memref<1x12x20x128xf32, #tpu.memory_space<any>> -> memref<12x20x128xf32, #tpu.memory_space<any>>
      %c0_i32_57 = arith.constant 0 : i32
      %c0_i32_58 = arith.constant 0 : i32
      %c0_i32_59 = arith.constant 0 : i32
      %105 = tpu.memref_slice %arg6[%11, %c0_i32_57, %c0_i32_58, %c0_i32_59] : memref<2x12x20x128xf32, #tpu.memory_space<vmem>> -> memref<1x12x20x128xf32, #tpu.memory_space<vmem>>
      %106 = tpu.memref_squeeze %105 : memref<1x12x20x128xf32, #tpu.memory_space<vmem>> -> memref<12x20x128xf32, #tpu.memory_space<vmem>>
      %107 = tpu.memref_slice %arg8[%11] : memref<2x!tpu.dma_semaphore, #tpu.memory_space<semaphore_mem>> -> memref<1x!tpu.dma_semaphore, #tpu.memory_space<semaphore_mem>>
      %108 = tpu.memref_squeeze %107 : memref<1x!tpu.dma_semaphore, #tpu.memory_space<semaphore_mem>> -> memref<!tpu.dma_semaphore, #tpu.memory_space<semaphore_mem>>
      tpu.enqueue_dma source(%104 : memref<12x20x128xf32, #tpu.memory_space<any>>) target(%106 : memref<12x20x128xf32, #tpu.memory_space<vmem>>) target_semaphore(%108 : memref<!tpu.dma_semaphore, #tpu.memory_space<semaphore_mem>>)
    } else {
    }
    %c1_i32_5 = arith.constant 1 : i32
    %15 = arith.addi %arg1, %c1_i32_5 : i32
    %c2_i32_6 = arith.constant 2 : i32
    %16 = arith.cmpi slt, %15, %c2_i32_6 : i32
    %17 = arith.extui %16 : i1 to i32
    %c0_i32_7 = arith.constant 0 : i32
    %18 = arith.cmpi ne, %17, %c0_i32_7 : i32
    scf.if %18 {
      %c8_i32_55 = arith.constant 8 : i32
      %103 = arith.addi %1, %c8_i32_55 : i32
      %c1_i32_56 = arith.constant 1 : i32
      %104 = arith.subi %c1_i32_56, %11 : i32
      %c0_i32_57 = arith.constant 0 : i32
      %c0_i32_58 = arith.constant 0 : i32
      %105 = tpu.memref_slice %arg2[%arg0, %103, %c0_i32_57, %c0_i32_58] : memref<2x20x20x128xf32, #tpu.memory_space<any>> -> memref<1x12x20x128xf32, #tpu.memory_space<any>>
      %106 = tpu.memref_squeeze %105 : memref<1x12x20x128xf32, #tpu.memory_space<any>> -> memref<12x20x128xf32, #tpu.memory_space<any>>
      %c0_i32_59 = arith.constant 0 : i32
      %c0_i32_60 = arith.constant 0 : i32
      %c0_i32_61 = arith.constant 0 : i32
      %107 = tpu.memref_slice %arg6[%104, %c0_i32_59, %c0_i32_60, %c0_i32_61] : memref<2x12x20x128xf32, #tpu.memory_space<vmem>> -> memref<1x12x20x128xf32, #tpu.memory_space<vmem>>
      %108 = tpu.memref_squeeze %107 : memref<1x12x20x128xf32, #tpu.memory_space<vmem>> -> memref<12x20x128xf32, #tpu.memory_space<vmem>>
      %109 = tpu.memref_slice %arg8[%104] : memref<2x!tpu.dma_semaphore, #tpu.memory_space<semaphore_mem>> -> memref<1x!tpu.dma_semaphore, #tpu.memory_space<semaphore_mem>>
      %110 = tpu.memref_squeeze %109 : memref<1x!tpu.dma_semaphore, #tpu.memory_space<semaphore_mem>> -> memref<!tpu.dma_semaphore, #tpu.memory_space<semaphore_mem>>
      tpu.enqueue_dma source(%106 : memref<12x20x128xf32, #tpu.memory_space<any>>) target(%108 : memref<12x20x128xf32, #tpu.memory_space<vmem>>) target_semaphore(%110 : memref<!tpu.dma_semaphore, #tpu.memory_space<semaphore_mem>>)
    } else {
    }
    %c0_i32_8 = arith.constant 0 : i32
    %c0_i32_9 = arith.constant 0 : i32
    %19 = tpu.memref_slice %arg2[%arg0, %1, %c0_i32_8, %c0_i32_9] : memref<2x20x20x128xf32, #tpu.memory_space<any>> -> memref<1x12x20x128xf32, #tpu.memory_space<any>>
    %20 = tpu.memref_squeeze %19 : memref<1x12x20x128xf32, #tpu.memory_space<any>> -> memref<12x20x128xf32, #tpu.memory_space<any>>
    %c0_i32_10 = arith.constant 0 : i32
    %c0_i32_11 = arith.constant 0 : i32
    %c0_i32_12 = arith.constant 0 : i32
    %21 = tpu.memref_slice %arg6[%11, %c0_i32_10, %c0_i32_11, %c0_i32_12] : memref<2x12x20x128xf32, #tpu.memory_space<vmem>> -> memref<1x12x20x128xf32, #tpu.memory_space<vmem>>
    %22 = tpu.memref_squeeze %21 : memref<1x12x20x128xf32, #tpu.memory_space<vmem>> -> memref<12x20x128xf32, #tpu.memory_space<vmem>>
    %23 = tpu.memref_slice %arg8[%11] : memref<2x!tpu.dma_semaphore, #tpu.memory_space<semaphore_mem>> -> memref<1x!tpu.dma_semaphore, #tpu.memory_space<semaphore_mem>>
    %24 = tpu.memref_squeeze %23 : memref<1x!tpu.dma_semaphore, #tpu.memory_space<semaphore_mem>> -> memref<!tpu.dma_semaphore, #tpu.memory_space<semaphore_mem>>
    tpu.wait_dma2 semaphore(%24 : memref<!tpu.dma_semaphore, #tpu.memory_space<semaphore_mem>>) src(%20 : memref<12x20x128xf32, #tpu.memory_space<any>>) dst(%22 : memref<12x20x128xf32, #tpu.memory_space<vmem>>)
    %25 = arith.index_cast %11 : i32 to index
    %c0 = arith.constant 0 : index
    %c0_13 = arith.constant 0 : index
    %c0_14 = arith.constant 0 : index
    %26 = vector.load %arg6[%25, %c0, %c0_13, %c0_14] : memref<2x12x20x128xf32, #tpu.memory_space<vmem>>, vector<1x12x20x128xf32>
    %27 = vector.shape_cast %26 : vector<1x12x20x128xf32> to vector<12x20x128xf32>
    %28 = vector.extract_strided_slice %27 {offsets = [0, 0, 0], sizes = [12, 18, 128], strides = [1, 1, 1]} : vector<12x20x128xf32> to vector<12x18x128xf32>
    %29 = vector.extract_strided_slice %27 {offsets = [0, 1, 0], sizes = [12, 18, 128], strides = [1, 1, 1]} : vector<12x20x128xf32> to vector<12x18x128xf32>
    %30 = vector.extract_strided_slice %27 {offsets = [0, 2, 0], sizes = [12, 18, 128], strides = [1, 1, 1]} : vector<12x20x128xf32> to vector<12x18x128xf32>
    %31 = tpu.concatenate %28, %29, %30 in 2 : vector<12x18x128xf32>, vector<12x18x128xf32>, vector<12x18x128xf32> -> vector<12x18x384xf32>
    %cst = arith.constant 0.000000e+00 : f32
    %32 = vector.broadcast %cst : f32 to vector<180x128xf32>
    %33 = vector.extract_strided_slice %31 {offsets = [0, 0, 0], sizes = [10, 18, 384], strides = [1, 1, 1]} : vector<12x18x384xf32> to vector<10x18x384xf32>
    %34 = vector.shape_cast %33 : vector<10x18x384xf32> to vector<180x384xf32>
    %c0_15 = arith.constant 0 : index
    %c0_16 = arith.constant 0 : index
    %c0_17 = arith.constant 0 : index
    %35 = vector.load %arg3[%c0_15, %c0_16, %c0_17] : memref<3x384x128xf32, #tpu.memory_space<vmem>>, vector<1x384x128xf32>
    %36 = vector.shape_cast %35 : vector<1x384x128xf32> to vector<384x128xf32>
    %cst_18 = arith.constant dense<0.000000e+00> : vector<180x128xf32>
    %37 = tpu.matmul %34, %36, %cst_18 {dimension_numbers = #tpu.dot_dimension_numbers<[1], [0], [0], [1], [0, 0, 1, 1], [], []>} : vector<180x384xf32>, vector<384x128xf32>, vector<180x128xf32> -> vector<180x128xf32>
    %38 = arith.addf %32, %37 : vector<180x128xf32>
    %39 = vector.extract_strided_slice %31 {offsets = [1, 0, 0], sizes = [10, 18, 384], strides = [1, 1, 1]} : vector<12x18x384xf32> to vector<10x18x384xf32>
    %40 = vector.shape_cast %39 : vector<10x18x384xf32> to vector<180x384xf32>
    %c1 = arith.constant 1 : index
    %c0_19 = arith.constant 0 : index
    %c0_20 = arith.constant 0 : index
    %41 = vector.load %arg3[%c1, %c0_19, %c0_20] : memref<3x384x128xf32, #tpu.memory_space<vmem>>, vector<1x384x128xf32>
    %42 = vector.shape_cast %41 : vector<1x384x128xf32> to vector<384x128xf32>
    %cst_21 = arith.constant dense<0.000000e+00> : vector<180x128xf32>
    %43 = tpu.matmul %40, %42, %cst_21 {dimension_numbers = #tpu.dot_dimension_numbers<[1], [0], [0], [1], [0, 0, 1, 1], [], []>} : vector<180x384xf32>, vector<384x128xf32>, vector<180x128xf32> -> vector<180x128xf32>
    %44 = arith.addf %38, %43 : vector<180x128xf32>
    %45 = vector.extract_strided_slice %31 {offsets = [2, 0, 0], sizes = [10, 18, 384], strides = [1, 1, 1]} : vector<12x18x384xf32> to vector<10x18x384xf32>
    %46 = vector.shape_cast %45 : vector<10x18x384xf32> to vector<180x384xf32>
    %c2 = arith.constant 2 : index
    %c0_22 = arith.constant 0 : index
    %c0_23 = arith.constant 0 : index
    %47 = vector.load %arg3[%c2, %c0_22, %c0_23] : memref<3x384x128xf32, #tpu.memory_space<vmem>>, vector<1x384x128xf32>
    %48 = vector.shape_cast %47 : vector<1x384x128xf32> to vector<384x128xf32>
    %cst_24 = arith.constant dense<0.000000e+00> : vector<180x128xf32>
    %49 = tpu.matmul %46, %48, %cst_24 {dimension_numbers = #tpu.dot_dimension_numbers<[1], [0], [0], [1], [0, 0, 1, 1], [], []>} : vector<180x384xf32>, vector<384x128xf32>, vector<180x128xf32> -> vector<180x128xf32>
    %50 = arith.addf %44, %49 : vector<180x128xf32>
    %cst_25 = arith.constant 0.000000e+00 : f32
    %51 = vector.broadcast %cst_25 : f32 to vector<180x128xf32>
    %52 = arith.maximumf %50, %51 : vector<180x128xf32>
    %53 = vector.shape_cast %52 : vector<180x128xf32> to vector<10x18x128xf32>
    %54 = tpu.iota {dimensions = array<i32: 0>} : vector<10x18x1xi32>
    %c1_i32_26 = arith.constant 1 : i32
    %55 = arith.subi %1, %c1_i32_26 : i32
    %56 = vector.broadcast %55 : i32 to vector<10x18x1xi32>
    %57 = arith.addi %54, %56 : vector<10x18x1xi32>
    %58 = tpu.iota {dimensions = array<i32: 1>} : vector<10x18x1xi32>
    %c0_i32_27 = arith.constant 0 : i32
    %59 = vector.broadcast %c0_i32_27 : i32 to vector<10x18x1xi32>
    %60 = arith.cmpi sge, %57, %59 : vector<10x18x1xi32>
    %c16_i32 = arith.constant 16 : i32
    %61 = vector.broadcast %c16_i32 : i32 to vector<10x18x1xi32>
    %62 = arith.cmpi slt, %57, %61 : vector<10x18x1xi32>
    %63 = arith.andi %60, %62 : vector<10x18x1xi1>
    %c1_i32_28 = arith.constant 1 : i32
    %64 = vector.broadcast %c1_i32_28 : i32 to vector<10x18x1xi32>
    %65 = arith.cmpi sge, %58, %64 : vector<10x18x1xi32>
    %66 = arith.andi %63, %65 : vector<10x18x1xi1>
    %c16_i32_29 = arith.constant 16 : i32
    %67 = vector.broadcast %c16_i32_29 : i32 to vector<10x18x1xi32>
    %68 = arith.cmpi sle, %58, %67 : vector<10x18x1xi32>
    %69 = arith.andi %66, %68 : vector<10x18x1xi1>
    %cst_30 = arith.constant 0.000000e+00 : f32
    %70 = vector.shape_cast %69 : vector<10x18x1xi1> to vector<10x18x1xi1>
    %71 = vector.broadcast %70 : vector<10x18x1xi1> to vector<10x18x128xi1>
    %72 = vector.broadcast %cst_30 : f32 to vector<10x18x128xf32>
    %73 = arith.select %71, %53, %72 : vector<10x18x128xi1>, vector<10x18x128xf32>
    %c0_31 = arith.constant 0 : index
    %c0_32 = arith.constant 0 : index
    %c0_33 = arith.constant 0 : index
    %74 = vector.load %arg7[%c0_31, %c0_32, %c0_33] : memref<10x18x128xf32, #tpu.memory_space<vmem>>, vector<10x18x128xf32>
    tpu.vector_store %arg7[%c0_31, %c0_32, %c0_33], %73 {strides = array<i32>} : memref<10x18x128xf32, #tpu.memory_space<vmem>>, vector<10x18x128xf32>,
    %c0_34 = arith.constant 0 : index
    %c0_35 = arith.constant 0 : index
    %c0_36 = arith.constant 0 : index
    %75 = vector.load %arg7[%c0_34, %c0_35, %c0_36] : memref<10x18x128xf32, #tpu.memory_space<vmem>>, vector<10x18x128xf32>
    %76 = vector.extract_strided_slice %75 {offsets = [0, 0, 0], sizes = [10, 16, 128], strides = [1, 1, 1]} : vector<10x18x128xf32> to vector<10x16x128xf32>
    %77 = vector.extract_strided_slice %75 {offsets = [0, 1, 0], sizes = [10, 16, 128], strides = [1, 1, 1]} : vector<10x18x128xf32> to vector<10x16x128xf32>
    %78 = vector.extract_strided_slice %75 {offsets = [0, 2, 0], sizes = [10, 16, 128], strides = [1, 1, 1]} : vector<10x18x128xf32> to vector<10x16x128xf32>
    %79 = tpu.concatenate %76, %77, %78 in 2 : vector<10x16x128xf32>, vector<10x16x128xf32>, vector<10x16x128xf32> -> vector<10x16x384xf32>
    %cst_37 = arith.constant 0.000000e+00 : f32
    %80 = vector.broadcast %cst_37 : f32 to vector<128x128xf32>
    %81 = vector.extract_strided_slice %79 {offsets = [0, 0, 0], sizes = [8, 16, 384], strides = [1, 1, 1]} : vector<10x16x384xf32> to vector<8x16x384xf32>
    %82 = vector.shape_cast %81 : vector<8x16x384xf32> to vector<128x384xf32>
    %c0_38 = arith.constant 0 : index
    %c0_39 = arith.constant 0 : index
    %c0_40 = arith.constant 0 : index
    %83 = vector.load %arg4[%c0_38, %c0_39, %c0_40] : memref<3x384x128xf32, #tpu.memory_space<vmem>>, vector<1x384x128xf32>
    %84 = vector.shape_cast %83 : vector<1x384x128xf32> to vector<384x128xf32>
    %cst_41 = arith.constant dense<0.000000e+00> : vector<128x128xf32>
    %85 = tpu.matmul %82, %84, %cst_41 {dimension_numbers = #tpu.dot_dimension_numbers<[1], [0], [0], [1], [0, 0, 1, 1], [], []>} : vector<128x384xf32>, vector<384x128xf32>, vector<128x128xf32> -> vector<128x128xf32>
    %86 = arith.addf %80, %85 : vector<128x128xf32>
    %87 = vector.extract_strided_slice %79 {offsets = [1, 0, 0], sizes = [8, 16, 384], strides = [1, 1, 1]} : vector<10x16x384xf32> to vector<8x16x384xf32>
    %88 = vector.shape_cast %87 : vector<8x16x384xf32> to vector<128x384xf32>
    %c1_42 = arith.constant 1 : index
    %c0_43 = arith.constant 0 : index
    %c0_44 = arith.constant 0 : index
    %89 = vector.load %arg4[%c1_42, %c0_43, %c0_44] : memref<3x384x128xf32, #tpu.memory_space<vmem>>, vector<1x384x128xf32>
    %90 = vector.shape_cast %89 : vector<1x384x128xf32> to vector<384x128xf32>
    %cst_45 = arith.constant dense<0.000000e+00> : vector<128x128xf32>
    %91 = tpu.matmul %88, %90, %cst_45 {dimension_numbers = #tpu.dot_dimension_numbers<[1], [0], [0], [1], [0, 0, 1, 1], [], []>} : vector<128x384xf32>, vector<384x128xf32>, vector<128x128xf32> -> vector<128x128xf32>
    %92 = arith.addf %86, %91 : vector<128x128xf32>
    %93 = vector.extract_strided_slice %79 {offsets = [2, 0, 0], sizes = [8, 16, 384], strides = [1, 1, 1]} : vector<10x16x384xf32> to vector<8x16x384xf32>
    %94 = vector.shape_cast %93 : vector<8x16x384xf32> to vector<128x384xf32>
    %c2_46 = arith.constant 2 : index
    %c0_47 = arith.constant 0 : index
    %c0_48 = arith.constant 0 : index
    %95 = vector.load %arg4[%c2_46, %c0_47, %c0_48] : memref<3x384x128xf32, #tpu.memory_space<vmem>>, vector<1x384x128xf32>
    %96 = vector.shape_cast %95 : vector<1x384x128xf32> to vector<384x128xf32>
    %cst_49 = arith.constant dense<0.000000e+00> : vector<128x128xf32>
    %97 = tpu.matmul %94, %96, %cst_49 {dimension_numbers = #tpu.dot_dimension_numbers<[1], [0], [0], [1], [0, 0, 1, 1], [], []>} : vector<128x384xf32>, vector<384x128xf32>, vector<128x128xf32> -> vector<128x128xf32>
    %98 = arith.addf %92, %97 : vector<128x128xf32>
    %cst_50 = arith.constant 0.000000e+00 : f32
    %99 = vector.broadcast %cst_50 : f32 to vector<128x128xf32>
    %100 = arith.maximumf %98, %99 : vector<128x128xf32>
    %101 = vector.shape_cast %100 : vector<128x128xf32> to vector<1x8x16x128xf32>
    %c0_51 = arith.constant 0 : index
    %c0_52 = arith.constant 0 : index
    %c0_53 = arith.constant 0 : index
    %c0_54 = arith.constant 0 : index
    %102 = vector.load %arg5[%c0_51, %c0_52, %c0_53, %c0_54] : memref<1x8x16x128xf32, #tpu.memory_space<vmem>>, vector<1x8x16x128xf32>
    tpu.vector_store %arg5[%c0_51, %c0_52, %c0_53, %c0_54], %101 {strides = array<i32>} : memref<1x8x16x128xf32, #tpu.memory_space<vmem>>, vector<1x8x16x128xf32>,
    return
  }
  func.func @transform_1(%arg0: i32, %arg1: i32) -> (i32, i32, i32) {
    %c0_i32 = arith.constant 0 : i32
    %c0_i32_0 = arith.constant 0 : i32
    %c0_i32_1 = arith.constant 0 : i32
    %c0_i32_2 = arith.constant 0 : i32
    return %c0_i32, %c0_i32_0, %c0_i32_1 : i32, i32, i32
  }
  func.func @transform_2(%arg0: i32, %arg1: i32) -> (i32, i32, i32) {
    %c0_i32 = arith.constant 0 : i32
    %c0_i32_0 = arith.constant 0 : i32
    %c0_i32_1 = arith.constant 0 : i32
    %c0_i32_2 = arith.constant 0 : i32
    return %c0_i32, %c0_i32_0, %c0_i32_1 : i32, i32, i32
  }
  func.func @transform_3(%arg0: i32, %arg1: i32) -> (i32, i32, i32, i32) {
    %c0_i32 = arith.constant 0 : i32
    %c0_i32_0 = arith.constant 0 : i32
    %c0_i32_1 = arith.constant 0 : i32
    return %arg0, %arg1, %c0_i32, %c0_i32_0 : i32, i32, i32, i32
  }
}

</mosaic_0001>

<bundles_post_ra>
// kernel: double_conv.1
= control target key start
LH: loop header
LB: loop body
LE: loop exit
PB: predicated region body
PF: predicated region fallthrough
CT: control target
= control target key end

     0   :  { %s9665_s12 = smov 0   ;;  %s9667_s13 = smov 0   ;;  %s13957_s0 = inlined_call_operand.vmem [shape: f32[2,20,20,128], index: 0, kind: input, shape index: {}]   ;;  %s13958_s1 = inlined_call_operand.vmem [shape: f32[3,384,128], index: 1, kind: input, shape index: {}]   ;;  %s13959_s2 = inlined_call_operand.vmem [shape: f32[3,384,128], index: 2, kind: input, shape index: {}]   ;;  %s13960_s3 = inlined_call_operand.vmem [shape: f32[2,16,16,128], index: 3, kind: output, shape index: {}]  }
   0x1   :  { %s9669_s14 = smov 0   ;;  %s9671_s15 = smov 0  }
   0x2   :  { %s9673_s16 = smov 0  }
   0x3 LB: > { %s22_s17 = sadd.s32 1, %s9631_s14  ;;  %s25_s18 = sadd.s32 1, %s9635_s15  ;;  %s9639_s16 = sphi %s9673_s16, %s13_s16   ;;  %s9635_s15 = sphi %s9671_s15, %s14659_s15   ;;  %s9631_s14 = sphi %s9669_s14, %s14658_s14   ;;  %s9627_s13 = sphi %s9667_s13, %s14657_s13   ;;  %s9623_s12 = sphi %s9665_s12, %s14656_s12  }
   0x4   : > { %p23_p0 = scmp.ge.s32.totalorder %s22_s17, 2  ;;  %p7455_p1 = scmp.ge.s32.totalorder %s9639_s16, 1 }
   0x5   : > { %p117_p2 = scmp.lt.s32.totalorder %s9639_s16, 5 }
   0x6   : > { %s14661_s17 = smov (%p23_p0, %s22_s17), 0  ;;  %s14663_s18 = smov (!%p23_p0, %s25_s18), %s9635_s15 }
   0x7   : > { %p118_p3 = pnand %p7455_p1, %p117_p2  ;;  %p27_p4 = scmp.ge.s32.totalorder %s14663_s18, 2 }
   0x9   : > { %s14665_s18 = smov (%p27_p4, %s14663_s18), 0  ;;  %121 = sbr.rel (%p118_p3) target bundleno = 1230 (0x4ce), region = 28 }
  0x10   : > { %s9700_s19 = sshll.u32 %s9623_s12, 3  ;;  %p140_p5 = scmp.lt.s32.totalorder %s9627_s13, 1 }
  0x11   : > { %p142_p6 = scmp.lt.s32.totalorder %s9700_s19, 15  ;;  %p151_p7 = scmp.lt.s32.totalorder %s9623_s12, 0 }
  0x12   : > { %s141_s20 = scalar_select %p140_p5, %s9627_s13, 1 }
  0x13   : > { %s143_s21 = scalar_select %p142_p6, %s9700_s19, 15 }
  0x14   : > { %s7458_s22 = sshll.u32 %s141_s20, 5  ;;  %s152_s23 = ssub.s32 0, %s9623_s12 }
  0x15   : > { %s7457_s24 = sshll.u32 %s143_s21, 1  ;;  %s7461_s25 = smin.u32 %s9623_s12, %s152_s23 }
  0x16   : > { %s146_s26 = sadd.s32 %s7458_s22, %s7457_s24  ;;  %s154_s27 = sand.u32 1, %s7461_s25  }
  0x17   : > { %s7459_s28 = sshll.u32 %s146_s26, 3  ;;  %s155_s29 = ssub.s32 0, %s154_s27 }
  0x18   : > { %s9712_s5 = scalar_lea.vmem %s13960_s3, %s7459_s28  ;;  %s14667_s29 = smov (!%p151_p7, %s155_s29), %s154_s27 }
  0x19   : > { %p7463_p8 = scmp.lt.s32.totalorder %s14667_s29, 0  ;;  %s161_s6 = sadd.s32 2, %s14667_s29 }
  0x1a   : > { %p7464_p9 = scmp.ne.s32.totalorder %s9623_s12, 0 }
  0x1b   : > { %s14669_s6 = smov (!%p7463_p8, %s161_s6), %s14667_s29  ;;  %s7465_s7 = smul.u32 (!%p7464_p9), 192, %s9623_s12 }
  0x1c   : > { %166 = sbr.rel (%p7464_p9) target bundleno = 55 (0x37), region = 32  ;;  %s173_s23 = scalar_lea.sflag (!%p7464_p9), [#allocation4], %s14669_s6 }
  0x1d   : > { %s168_s8 = smul.u32 (!%p7464_p9), 480, %s9627_s13 }
  0x1e   : > { %s171_s9 = smul.u32 (!%p7464_p9), 288, %s14669_s6 }
  0x1f   : > { %s169_s10 = sadd.s32 (!%p7464_p9), %s7465_s7, %s168_s8 }
  0x20   : > { %s9723_s21 = scalar_lea.vmem (!%p7464_p9), %s13957_s0, %s169_s10  ;;  %s9728_s22 = scalar_lea.vmem (!%p7464_p9), [#allocation2], %s171_s9 }
  0x21   : > { %v233_v0 = vld [vmem:[%s9723_s21] sm:$0xff] (!%p7464_p9)  ;;  %v235_v1 = vld [vmem:[%s9723_s21 + $0x8] sm:$0xff] (!%p7464_p9)  ;;  %v237_v2 = vld [vmem:[%s9723_s21 + $0x18] sm:$0xff] (!%p7464_p9) }
  0x22   : > { %234 = vst [vmem:[%s9728_s22] sm:$0xff] (!%p7464_p9), %v233_v0  ;;  %236 = vst [vmem:[%s9728_s22 + $0x8] sm:$0xff] (!%p7464_p9), %v235_v1  ;;  %v239_v3 = vld [vmem:[%s9723_s21 + $0x20] sm:$0xff] (!%p7464_p9)  ;;  %v241_v4 = vld [vmem:[%s9723_s21 + $0x30] sm:$0xff] (!%p7464_p9) }
  0x23   : > { %238 = vst [vmem:[%s9728_s22 + $0x18] sm:$0xff] %v237_v2  ;;  %v243_v5 = vld [vmem:[%s9723_s21 + $0x38] sm:$0xff]  ;;  %240 = vst [vmem:[%s9728_s22 + $0x20] sm:$0xff] %v239_v3  ;;  %v245_v6 = vld [vmem:[%s9723_s21 + $0x48] sm:$0xff] }
  0x24   : > { %242 = vst [vmem:[%s9728_s22 + $0x30] sm:$0xff] %v241_v4  ;;  %244 = vst [vmem:[%s9728_s22 + $0x38] sm:$0xff] %v243_v5  ;;  %v247_v7 = vld [vmem:[%s9723_s21 + $0x50] sm:$0xff]  ;;  %v249_v8 = vld [vmem:[%s9723_s21 + $0x60] sm:$0xff] }
  0x25   : > { %246 = vst [vmem:[%s9728_s22 + $0x48] sm:$0xff] %v245_v6  ;;  %248 = vst [vmem:[%s9728_s22 + $0x50] sm:$0xff] %v247_v7  ;;  %v251_v9 = vld [vmem:[%s9723_s21 + $0x68] sm:$0xff]  ;;  %v253_v10 = vld [vmem:[%s9723_s21 + $0x78] sm:$0xff] }
  0x26   : > { %250 = vst [vmem:[%s9728_s22 + $0x60] sm:$0xff] %v249_v8  ;;  %v255_v11 = vld [vmem:[%s9723_s21 + $0x80] sm:$0xff]  ;;  %252 = vst [vmem:[%s9728_s22 + $0x68] sm:$0xff] %v251_v9  ;;  %v257_v12 = vld [vmem:[%s9723_s21 + $0x90] sm:$0xff] }
  0x27   : > { %254 = vst [vmem:[%s9728_s22 + $0x78] sm:$0xff] %v253_v10  ;;  %256 = vst [vmem:[%s9728_s22 + $0x80] sm:$0xff] %v255_v11  ;;  %v259_v13 = vld [vmem:[%s9723_s21 + $0x98] sm:$0xff]  ;;  %v261_v14 = vld [vmem:[%s9723_s21 + $0xa8] sm:$0xff] }
  0x28   : > { %258 = vst [vmem:[%s9728_s22 + $0x90] sm:$0xff] %v257_v12  ;;  %260 = vst [vmem:[%s9728_s22 + $0x98] sm:$0xff] %v259_v13  ;;  %v263_v15 = vld [vmem:[%s9723_s21 + $0xb0] sm:$0xff]  ;;  %v265_v16 = vld [vmem:[%s9723_s21 + $0xc0] sm:$0xff] }
  0x29   : > { %262 = vst [vmem:[%s9728_s22 + $0xa8] sm:$0xff] %v261_v14  ;;  %v267_v17 = vld [vmem:[%s9723_s21 + $0xc8] sm:$0xff]  ;;  %264 = vst [vmem:[%s9728_s22 + $0xb0] sm:$0xff] %v263_v15  ;;  %v269_v18 = vld [vmem:[%s9723_s21 + $0xd8] sm:$0xff] }
  0x2a   : > { %266 = vst [vmem:[%s9728_s22 + $0xc0] sm:$0xff] %v265_v16  ;;  %268 = vst [vmem:[%s9728_s22 + $0xc8] sm:$0xff] %v267_v17  ;;  %v271_v19 = vld [vmem:[%s9723_s21 + $0xe0] sm:$0xff]  ;;  %v273_v20 = vld [vmem:[%s9723_s21 + $0xf0] sm:$0xff] }
  0x2b   : > { %270 = vst [vmem:[%s9728_s22 + $0xd8] sm:$0xff] %v269_v18  ;;  %272 = vst [vmem:[%s9728_s22 + $0xe0] sm:$0xff] %v271_v19  ;;  %v275_v21 = vld [vmem:[%s9723_s21 + $0xf8] sm:$0xff]  ;;  %v277_v22 = vld [vmem:[%s9723_s21 + $0x108] sm:$0xff] }
  0x2c   : > { %274 = vst [vmem:[%s9728_s22 + $0xf0] sm:$0xff] %v273_v20  ;;  %v279_v23 = vld [vmem:[%s9723_s21 + $0x110] sm:$0xff]  ;;  %276 = vst [vmem:[%s9728_s22 + $0xf8] sm:$0xff] %v275_v21  ;;  %v7468_v25 = vld [vmem:[%s9723_s21 + $0x28] sm:$0xf] }
  0x2d   : > { %278 = vst [vmem:[%s9728_s22 + $0x108] sm:$0xff] %v277_v22  ;;  %280 = vst [vmem:[%s9728_s22 + $0x110] sm:$0xff] %v279_v23  ;;  %v7466_v24 = vld [vmem:[%s9723_s21 + $0x10] sm:$0xf]  ;;  %v7470_v26 = vld [vmem:[%s9723_s21 + $0x40] sm:$0xf] }
  0x2e   : > { %7467 = vst [vmem:[%s9728_s22 + $0x10] sm:$0xf] %v7466_v24  ;;  %7469 = vst [vmem:[%s9728_s22 + $0x28] sm:$0xf] %v7468_v25  ;;  %v7472_v27 = vld [vmem:[%s9723_s21 + $0x58] sm:$0xf] }
  0x2f   : > { %7471 = vst [vmem:[%s9728_s22 + $0x40] sm:$0xf] %v7470_v26  ;;  %v7474_v28 = vld [vmem:[%s9723_s21 + $0x70] sm:$0xf]  ;;  %v7476_v29 = vld [vmem:[%s9723_s21 + $0x88] sm:$0xf] }
  0x30   : > { %7473 = vst [vmem:[%s9728_s22 + $0x58] sm:$0xf] %v7472_v27  ;;  %7475 = vst [vmem:[%s9728_s22 + $0x70] sm:$0xf] %v7474_v28  ;;  %v7478_v30 = vld [vmem:[%s9723_s21 + $0xa0] sm:$0xf] }
  0x31   : > { %7477 = vst [vmem:[%s9728_s22 + $0x88] sm:$0xf] %v7476_v29  ;;  %v7480_v31 = vld [vmem:[%s9723_s21 + $0xb8] sm:$0xf]  ;;  %v7482_v32 = vld [vmem:[%s9723_s21 + $0xd0] sm:$0xf] }
  0x32   : > { %7479 = vst [vmem:[%s9728_s22 + $0xa0] sm:$0xf] %v7478_v30  ;;  %7481 = vst [vmem:[%s9728_s22 + $0xb8] sm:$0xf] %v7480_v31  ;;  %v7484_v33 = vld [vmem:[%s9723_s21 + $0xe8] sm:$0xf] }
  0x33   : > { %7483 = vst [vmem:[%s9728_s22 + $0xd0] sm:$0xf] %v7482_v32  ;;  %v7486_v34 = vld [vmem:[%s9723_s21 + $0x100] sm:$0xf]  ;;  %v7488_v35 = vld [vmem:[%s9723_s21 + $0x118] sm:$0xf] }
  0x34   : > { %7485 = vst [vmem:[%s9728_s22 + $0xe8] sm:$0xf] %v7484_v33  ;;  %7487 = vst [vmem:[%s9728_s22 + $0x100] sm:$0xf] %v7486_v34 }
  0x35   : > { %7489 = vst [vmem:[%s9728_s22 + $0x118] sm:$0xf] %v7488_v35 }
  0x36   : > { %317 = vsyncadd %s173_s23, 3840 }
  0x37 PF: > { %s318_s24 = sadd.s32 1, %s9623_s12 }
  0x38   : > { %p7490_p10 = scmp.ge.s32.totalorder %s318_s24, 2 }
  0x39   : > { %s324_s25 = ssub.s32 (!%p7490_p10), 1, %s14669_s6  ;;  %s7492_s26 = smul.u32 (!%p7490_p10), 192, %s9623_s12 }
  0x3a   : > { %322 = sbr.rel (%p7490_p10) target bundleno = 85 (0x55), region = 73 }
  0x3b   : > { %s7379_s27 = smul.u32 (!%p7490_p10), 480, %s9627_s13  ;;  %s331_s13 = scalar_lea.sflag (!%p7490_p10), [#allocation4], %s324_s25 }
  0x3c   : > { %s329_s28 = smul.u32 (!%p7490_p10), 288, %s324_s25 }
  0x3d   : > { %s7380_s29 = sadd.s32 (!%p7490_p10), %s7492_s26, %s7379_s27 }
  0x3e   : > { %s9809_s7 = scalar_lea.vmem (!%p7490_p10), %s13957_s0, %s7380_s29  ;;  %s9814_s12 = scalar_lea.vmem (!%p7490_p10), [#allocation2], %s329_s28 }
  0x3f   : > { %v7494_v36 = vld [vmem:[%s9809_s7 + $0xc0] sm:$0xff] (!%p7490_p10)  ;;  %v7495_v37 = vld [vmem:[%s9809_s7 + $0xc8] sm:$0xff] (!%p7490_p10)  ;;  %v7496_v38 = vld [vmem:[%s9809_s7 + $0xd8] sm:$0xff] (!%p7490_p10) }
  0x40   : > { %392 = vst [vmem:[%s9814_s12] sm:$0xff] (!%p7490_p10), %v7494_v36  ;;  %394 = vst [vmem:[%s9814_s12 + $0x8] sm:$0xff] (!%p7490_p10), %v7495_v37  ;;  %v7497_v39 = vld [vmem:[%s9809_s7 + $0xe0] sm:$0xff] (!%p7490_p10)  ;;  %v7498_v40 = vld [vmem:[%s9809_s7 + $0xf0] sm:$0xff] (!%p7490_p10) }
  0x41   : > { %396 = vst [vmem:[%s9814_s12 + $0x18] sm:$0xff] %v7496_v38  ;;  %v7499_v41 = vld [vmem:[%s9809_s7 + $0xf8] sm:$0xff]  ;;  %398 = vst [vmem:[%s9814_s12 + $0x20] sm:$0xff] %v7497_v39  ;;  %v7500_v42 = vld [vmem:[%s9809_s7 + $0x108] sm:$0xff] }
  0x42   : > { %400 = vst [vmem:[%s9814_s12 + $0x30] sm:$0xff] %v7498_v40  ;;  %402 = vst [vmem:[%s9814_s12 + $0x38] sm:$0xff] %v7499_v41  ;;  %v7501_v43 = vld [vmem:[%s9809_s7 + $0x110] sm:$0xff]  ;;  %v7502_v44 = vld [vmem:[%s9809_s7 + $0x120] sm:$0xff] }
  0x43   : > { %404 = vst [vmem:[%s9814_s12 + $0x48] sm:$0xff] %v7500_v42  ;;  %406 = vst [vmem:[%s9814_s12 + $0x50] sm:$0xff] %v7501_v43  ;;  %v7503_v45 = vld [vmem:[%s9809_s7 + $0x128] sm:$0xff]  ;;  %v7504_v46 = vld [vmem:[%s9809_s7 + $0x138] sm:$0xff] }
  0x44   : > { %408 = vst [vmem:[%s9814_s12 + $0x60] sm:$0xff] %v7502_v44  ;;  %v7505_v47 = vld [vmem:[%s9809_s7 + $0x140] sm:$0xff]  ;;  %410 = vst [vmem:[%s9814_s12 + $0x68] sm:$0xff] %v7503_v45  ;;  %v7506_v48 = vld [vmem:[%s9809_s7 + $0x150] sm:$0xff] }
  0x45   : > { %412 = vst [vmem:[%s9814_s12 + $0x78] sm:$0xff] %v7504_v46  ;;  %414 = vst [vmem:[%s9814_s12 + $0x80] sm:$0xff] %v7505_v47  ;;  %v7507_v49 = vld [vmem:[%s9809_s7 + $0x158] sm:$0xff]  ;;  %v7508_v50 = vld [vmem:[%s9809_s7 + $0x168] sm:$0xff] }
  0x46   : > { %416 = vst [vmem:[%s9814_s12 + $0x90] sm:$0xff] %v7506_v48  ;;  %418 = vst [vmem:[%s9814_s12 + $0x98] sm:$0xff] %v7507_v49  ;;  %v7509_v51 = vld [vmem:[%s9809_s7 + $0x170] sm:$0xff]  ;;  %v7510_v52 = vld [vmem:[%s9809_s7 + $0x180] sm:$0xff] }
  0x47   : > { %420 = vst [vmem:[%s9814_s12 + $0xa8] sm:$0xff] %v7508_v50  ;;  %v7511_v53 = vld [vmem:[%s9809_s7 + $0x188] sm:$0xff]  ;;  %422 = vst [vmem:[%s9814_s12 + $0xb0] sm:$0xff] %v7509_v51  ;;  %v7512_v54 = vld [vmem:[%s9809_s7 + $0x198] sm:$0xff] }
  0x48   : > { %424 = vst [vmem:[%s9814_s12 + $0xc0] sm:$0xff] %v7510_v52  ;;  %426 = vst [vmem:[%s9814_s12 + $0xc8] sm:$0xff] %v7511_v53  ;;  %v7513_v55 = vld [vmem:[%s9809_s7 + $0x1a0] sm:$0xff]  ;;  %v7514_v56 = vld [vmem:[%s9809_s7 + $0x1b0] sm:$0xff] }
  0x49   : > { %428 = vst [vmem:[%s9814_s12 + $0xd8] sm:$0xff] %v7512_v54  ;;  %430 = vst [vmem:[%s9814_s12 + $0xe0] sm:$0xff] %v7513_v55  ;;  %v7515_v57 = vld [vmem:[%s9809_s7 + $0x1b8] sm:$0xff]  ;;  %v7516_v58 = vld [vmem:[%s9809_s7 + $0x1c8] sm:$0xff] }
  0x4a   : > { %432 = vst [vmem:[%s9814_s12 + $0xf0] sm:$0xff] %v7514_v56  ;;  %v7517_v59 = vld [vmem:[%s9809_s7 + $0x1d0] sm:$0xff]  ;;  %434 = vst [vmem:[%s9814_s12 + $0xf8] sm:$0xff] %v7515_v57  ;;  %v7520_v61 = vld [vmem:[%s9809_s7 + $0xe8] sm:$0xf] }
  0x4b   : > { %436 = vst [vmem:[%s9814_s12 + $0x108] sm:$0xff] %v7516_v58  ;;  %438 = vst [vmem:[%s9814_s12 + $0x110] sm:$0xff] %v7517_v59  ;;  %v7518_v60 = vld [vmem:[%s9809_s7 + $0xd0] sm:$0xf]  ;;  %v7522_v62 = vld [vmem:[%s9809_s7 + $0x100] sm:$0xf] }
  0x4c   : > { %7519 = vst [vmem:[%s9814_s12 + $0x10] sm:$0xf] %v7518_v60  ;;  %7521 = vst [vmem:[%s9814_s12 + $0x28] sm:$0xf] %v7520_v61  ;;  %v7524_v63 = vld [vmem:[%s9809_s7 + $0x118] sm:$0xf] }
  0x4d   : > { %7523 = vst [vmem:[%s9814_s12 + $0x40] sm:$0xf] %v7522_v62  ;;  %v7526_v0 = vld [vmem:[%s9809_s7 + $0x130] sm:$0xf]  ;;  %v7528_v1 = vld [vmem:[%s9809_s7 + $0x148] sm:$0xf] }
  0x4e   : > { %7525 = vst [vmem:[%s9814_s12 + $0x58] sm:$0xf] %v7524_v63  ;;  %7527 = vst [vmem:[%s9814_s12 + $0x70] sm:$0xf] %v7526_v0  ;;  %v7530_v2 = vld [vmem:[%s9809_s7 + $0x160] sm:$0xf] }
  0x4f   : > { %7529 = vst [vmem:[%s9814_s12 + $0x88] sm:$0xf] %v7528_v1  ;;  %v7532_v3 = vld [vmem:[%s9809_s7 + $0x178] sm:$0xf]  ;;  %v7534_v4 = vld [vmem:[%s9809_s7 + $0x190] sm:$0xf] }
  0x50   : > { %7531 = vst [vmem:[%s9814_s12 + $0xa0] sm:$0xf] %v7530_v2  ;;  %7533 = vst [vmem:[%s9814_s12 + $0xb8] sm:$0xf] %v7532_v3  ;;  %v7536_v5 = vld [vmem:[%s9809_s7 + $0x1a8] sm:$0xf] }
  0x51   : > { %7535 = vst [vmem:[%s9814_s12 + $0xd0] sm:$0xf] %v7534_v4  ;;  %v7538_v6 = vld [vmem:[%s9809_s7 + $0x1c0] sm:$0xf]  ;;  %v7540_v7 = vld [vmem:[%s9809_s7 + $0x1d8] sm:$0xf] }
  0x52   : > { %7537 = vst [vmem:[%s9814_s12 + $0xe8] sm:$0xf] %v7536_v5  ;;  %7539 = vst [vmem:[%s9814_s12 + $0x100] sm:$0xf] %v7538_v6 }
  0x53   : > { %7541 = vst [vmem:[%s9814_s12 + $0x118] sm:$0xf] %v7540_v7 }
  0x54   : > { %475 = vsyncadd %s331_s13, 3840 }
  0x55 PF: > { %s476_s8 = smul.u32 288, %s14669_s6  ;;  %s478_s10 = scalar_lea.sflag [#allocation4], %s14669_s6 }
  0x57   : > { %s9888_s9 = scalar_lea.vmem [#allocation2], %s476_s8 }
  0x58   : > { %9619 = dma.done.wait %s478_s10, 3840 }
  0x59   : > { %9620 = vsyncadd %s478_s10, 4294963456  ;;  %v13961_v8 = vmov 0.0|0.0   ;;  %vm9642_vm0 = vmmov 0   ;;  %v13967_v9 = vmov 0.0   ;;  %v7586_v10 = vld [vmem:[%s13958_s1 + $0x280] sm:$0xff]  ;;  %v7587_v11 = vld [vmem:[%s13958_s1 + $0x288] sm:$0xff]  ;;  %v683_v23 = vlaneseq }
  0x5a   : > { %8833 = vmatprep.subr.bf16.mxu0 %v13961_v8  ;;  %8346 = vmatprep.mubr.msk.f32.mxu0 %vm9642_vm0, %v13967_v9  ;;  %v7588_v12 = vld [vmem:[%s13958_s1 + $0x290] sm:$0xff]  ;;  %v9904_v13 = vpack.c.bf16 %v7587_v11, %v7586_v10  ;;  %v7589_v14 = vld [vmem:[%s13958_s1 + $0x298] sm:$0xff]  ;;  %v7590_v16 = vld [vmem:[%s13958_s1 + $0x2a0] sm:$0xff]  ;;  %v9644_v21 = vmov 1983009808   ;;  %vm14195_vm1 = vcmask 1045504  }
  0x5b   : > { %8785 = vmatprep.subr.bf16.mxu1 %v13961_v8  ;;  %v9910_v15 = vpack.c.bf16 %v7589_v14, %v7588_v12  ;;  %v7591_v17 = vld [vmem:[%s13958_s1 + $0x2a8] sm:$0xff]  ;;  %v9920_v18 = vld [vmem:[%s9888_s9 + $0x18] sm:$0xff]  ;;  %v9923_v19 = vld [vmem:[%s9888_s9 + $0x20] sm:$0xff]  ;;  %v681_v22 = vunpack.c.l.s4 %v9644_v21  ;;  %vm14201_vm2 = vcmask 1046528   ;;  %v9949_v37 = vshrl.u32 %v683_v23, 7  ;;  %s7760_s28 = sadd.s32 4294967295, %s9700_s19 }
  0x5c   : > { %14216 = vst [vmem:[#allocation8_spill] sm:$0xff] %v9904_v13  ;;  %8835 = vmatpush3.bf16.msra.mxu0 %v9904_v13  ;;  %v9926_v20 = vpack.c.bf16 %v7591_v17, %v7590_v16  ;;  %v9929_v24 = vld [vmem:[%s9888_s9 + $0x30] sm:$0xff]  ;;  %v7593_v26 = vld [vmem:[%s13958_s1 + $0x2b8] sm:$0xff]  ;;  %v622_v27 = vrot.slane %v9920_v18, 2  ;;  %v623_v28 = vrot.slane %v9923_v19, 2  ;;  %v7594_v39 = vld [vmem:[%s13958_s1 + $0x2c0] sm:$0xff] }
  0x5d   : > { %14217 = vst [vmem:[#allocation9_spill] sm:$0xff] %v9910_v15  ;;  %8836 = vmatprep.subr.bf16.mxu0 %v13961_v8  ;;  %v7592_v25 = vld [vmem:[%s13958_s1 + $0x2b0] sm:$0xff]  ;;  %v490_v29 = vld [vmem:[%s9888_s9 + $0x38] sm:$0xff]  ;;  %v9942_v30 = vld [vmem:[%s9888_s9 + $0x28] sm:$0xf]  ;;  %v566_v31 = vrot.slane %v9929_v24, 1  ;;  %v682_v36 = vunpack.c.0.s8 %v681_v22 }
  0x5e   : > { %14218 = vst [vmem:[#allocation10_spill] sm:$0xff] %v9926_v20  ;;  %v567_v32 = vrot.slane %v490_v29, 1  ;;  %v627_v33 = vrot.slane %v9929_v24, 2  ;;  %v628_v34 = vrot.slane %v490_v29, 2  ;;  %v9947_v35 = vpack.c.bf16 %v7593_v26, %v7592_v25  ;;  %14220 = vst [vmem:[#allocation12_spill] sm:$0xff] %v9949_v37  ;;  %v7595_v40 = vld [vmem:[%s13958_s1 + $0x2c8] sm:$0xff] }
  0x5f   : > { %v9952_v38 = vld [vmem:[%s9888_s9 + $0x40] sm:$0xf]  ;;  %v624_v41 = vsel %vm14195_vm1, %v622_v27, %v623_v28  ;;  %v625_v42 = vrot.slane %v9942_v30, 2  ;;  %v9970_v47 = vpack.c.bf16 %v7595_v40, %v7594_v39  ;;  %v9973_v48 = vsub.s32 %v682_v36, %v9949_v37  ;;  %v7596_v50 = vld [vmem:[%s13958_s1 + $0x2d0] sm:$0xff]  ;;  %v7597_v51 = vld [vmem:[%s13958_s1 + $0x2d8] sm:$0xff] }
  0x60   : > { %8838 = vmatpush3.bf16.msra.mxu0 %v9910_v15  ;;  %14219 = vst [vmem:[#allocation11_spill] sm:$0xff] %v9947_v35  ;;  %v9964_v43 = vsel %vm14201_vm2, %v566_v31, %v567_v32  ;;  %v629_v44 = vsel %vm14195_vm1, %v627_v33, %v628_v34  ;;  %v569_v45 = vrot.slane %v9952_v38, 1  ;;  %v630_v46 = vrot.slane %v9952_v38, 2  ;;  %v7598_v58 = vld [vmem:[%s13958_s1 + $0x2e0] sm:$0xff]  ;;  %v7599_v59 = vld [vmem:[%s13958_s1 + $0x2e8] sm:$0xff]  ;;  %v7600_v7 = vld [vmem:[%s13958_s1 + $0x2f0] sm:$0xff] }
  0x61   : > { %8839 = vmatprep.subr.bf16.mxu0 %v13961_v8  ;;  %14221 = vst [vmem:[#allocation13_spill] sm:$0xff] %v9970_v47  ;;  %v765_v49 = vcombine.high %v624_v41, %v624_v41  ;;  %v626_v52 = vsel %vm14195_vm1, %v623_v28, %v625_v42  ;;  %v850_v53 = vcombine.high %v9929_v24, %v9964_v43  ;;  %v7601_v10 = vld [vmem:[%s13958_s1 + $0x2f8] sm:$0xff]  ;;  %v10050_v26 = vld [vmem:[%s9888_s9 + $0x48] sm:$0xff]  ;;  %v10053_v27 = vld [vmem:[%s9888_s9 + $0x50] sm:$0xff] }
  0x62   : > { %v851_v54 = vcombine.high %v629_v44, %v629_v44  ;;  %v570_v55 = vsel %vm14201_vm2, %v567_v32, %v569_v45  ;;  %v631_v56 = vsel %vm14195_vm1, %v628_v34, %v630_v46  ;;  %v9988_v57 = vpack.c.bf16 %v7597_v51, %v7596_v50  ;;  %v10059_v31 = vld [vmem:[%s9888_s9 + $0x60] sm:$0xff]  ;;  %v10069_v39 = vld [vmem:[%s9888_s9 + $0x68] sm:$0xff] }
  0x63   : > { %v9997_v60 = vrot.slane %v624_v41, %v9973_v48  ;;  %v10000_v61 = vrot.slane %v765_v49, %v9973_v48  ;;  %v800_v62 = vcombine.high %v626_v52, %v626_v52  ;;  %v10004_v63 = vrot.slane %v850_v53, %v9973_v48  ;;  %v1537_v40 = vld [vmem:[%s13958_s1] sm:$0xff]  ;;  %v1538_v41 = vld [vmem:[%s13958_s1 + $0x8] sm:$0xff] }
  0x64   : > { %8841 = vmatpush3.bf16.msra.mxu0 %v9926_v20  ;;  %14222 = vst [vmem:[#allocation14_spill] sm:$0xff] %v9988_v57  ;;  %v10007_v0 = vrot.slane %v851_v54, %v9973_v48  ;;  %v884_v1 = vcombine.low %v490_v29, %v570_v55  ;;  %v885_v2 = vcombine.high %v490_v29, %v570_v55  ;;  %v637_v53 = vrot.slane %v10059_v31, 2  ;;  %v10096_v54 = vld [vmem:[%s9888_s9 + $0x58] sm:$0xf]  ;;  %v10243_v20 = vld [vmem:[%s9888_s9 + $0x88] sm:$0xf] }
  0x65   : > { %8842 = vmatprep.subr.bf16.mxu0 %v13961_v8  ;;  %v886_v3 = vcombine.high %v631_v56, %v631_v56  ;;  %v10009_v4 = vpack.c.bf16 %v7599_v59, %v7598_v58  ;;  %v10012_v5 = vrot.slane %v626_v52, %v9973_v48  ;;  %v10015_v6 = vrot.slane %v625_v42, %v9973_v48 }
  0x66   : > { %14223 = vst [vmem:[#allocation15_spill] sm:$0xff] %v10007_v0  ;;  %v1737_v11 = vrot.slane %v9997_v60, %v9973_v48  ;;  %v1751_v12 = vrot.slane %v10000_v61, %v9973_v48  ;;  %v10029_v14 = vrot.slane %v800_v62, %v9973_v48  ;;  %v10032_v16 = vrot.slane %v629_v44, %v9973_v48 }
  0x67   : > { %14224 = vst [vmem:[#allocation16_spill] sm:$0xff] %v10009_v4  ;;  %14225 = vst [vmem:[#allocation17_spill] sm:$0xff] %v10015_v6  ;;  %v882_v17 = vcombine.low %v10004_v63, %v10007_v0  ;;  %v10038_v21 = vrot.slane %v631_v56, %v9973_v48  ;;  %v10041_v22 = vrot.slane %v884_v1, %v9973_v48  ;;  %v632_v44 = vrot.slane %v10050_v26, 2  ;;  %v1539_v1 = vld [vmem:[%s13958_s1 + $0x10] sm:$0xff] }
  0x68   : > { %8844 = vmatpush3.bf16.msra.mxu0 %v9947_v35  ;;  %14226 = vst [vmem:[#allocation18_spill] sm:$0xff] %v10032_v16  ;;  %v10044_v23 = vrot.slane %v885_v2, %v9973_v48  ;;  %v10047_v25 = vrot.slane %v886_v3, %v9973_v48  ;;  %v919_v28 = vcombine.low %v9952_v38, %v569_v45  ;;  %v10072_v38 = vld [vmem:[%s9888_s9 + $0x70] sm:$0xf]  ;;  %v633_v45 = vrot.slane %v10053_v27, 2  ;;  %v1540_v2 = vld [vmem:[%s13958_s1 + $0x18] sm:$0xff] }
  0x69   : > { %8845 = vmatprep.subr.bf16.mxu0 %v13961_v8  ;;  %14227 = vst [vmem:[#allocation19_spill] sm:$0xff] %v10038_v21  ;;  %v10056_v29 = vpack.c.bf16 %v7601_v10, %v7600_v7  ;;  %v1754_v32 = vcombine.low %v1737_v11, %v1751_v12  ;;  %v1772_v33 = vrot.slane %v10012_v5, %v9973_v48  ;;  %v638_v55 = vrot.slane %v10069_v39, 2  ;;  %v1541_v10 = vld [vmem:[%s13958_s1 + $0x20] sm:$0xff]  ;;  %v1542_v12 = vld [vmem:[%s13958_s1 + $0x28] sm:$0xff]  ;;  %v1548_v35 = vld [vmem:[%s13958_s1 + $0x58] sm:$0xff] }
  0x6a   : > { %14228 = vst [vmem:[#allocation20_spill] sm:$0xff] %v10044_v23  ;;  %14229 = vst [vmem:[#allocation21_spill] sm:$0xff] %v10047_v25  ;;  %v1786_v34 = vrot.slane %v10029_v14, %v9973_v48  ;;  %v7603_v36 = vcombine.low %v10015_v6, %v10032_v16  ;;  %v7605_v42 = vcombine.high %v10032_v16, %v882_v17  ;;  %v576_v56 = vrot.slane %v10059_v31, 1 }
  0x6b   : > { %14230 = vst [vmem:[#allocation22_spill] sm:$0xff] %v10056_v29  ;;  %v10085_v49 = vrot.slane %v630_v46, %v9973_v48  ;;  %v915_v50 = vcombine.low %v10041_v22, %v10038_v21  ;;  %v917_v51 = vcombine.low %v10044_v23, %v10047_v25  ;;  %v10092_v52 = vrot.slane %v919_v28, %v9973_v48 }
  0x6c   : > { %8847 = vmatpush3.bf16.msra.mxu0 %v9970_v47  ;;  %v577_v46 = vrot.slane %v10069_v39, 1  ;;  %v579_v58 = vrot.slane %v10072_v38, 1  ;;  %v8858_v59 = vpack.c.bf16 %v1538_v41, %v1537_v40  ;;  %v1789_v62 = vcombine.low %v1772_v33, %v1786_v34  ;;  %v10124_v33 = vld [vmem:[%s13958_s1 + $0x30] sm:$0xff]  ;;  %v10129_v34 = vld [vmem:[%s13958_s1 + $0x38] sm:$0xff] }
  0x6d   : > { %8848 = vmatprep.subr.bf16.mxu0 %v13961_v8  ;;  %14231 = vst [vmem:[#allocation23_spill] sm:$0xff] %v10085_v49  ;;  %14232 = vst [vmem:[#allocation24_spill] sm:$0xff] %v10092_v52  ;;  %v1807_v3 = vrot.slane %v7603_v36, %v9973_v48  ;;  %v1821_v7 = vrot.slane %v7605_v42, %v9973_v48  ;;  %v634_v11 = vsel %vm14195_vm1, %v632_v44, %v633_v45 }
  0x6e   : > { %v7607_v17 = vcombine.high %v10007_v0, %v915_v50  ;;  %v7609_v28 = vcombine.high %v10038_v21, %v917_v51  ;;  %v934_v36 = vcombine.low %v10092_v52, %v10085_v49  ;;  %v635_v40 = vrot.slane %v10096_v54, 2  ;;  %v10258_v49 = vld [vmem:[%s9888_s9 + $0xa0] sm:$0xf] }
  0x6f   : > { %v639_v41 = vsel %vm14195_vm1, %v637_v53, %v638_v55  ;;  %v10136_v42 = vsel %vm14201_vm2, %v576_v56, %v577_v46  ;;  %v580_v44 = vsel %vm14201_vm2, %v577_v46, %v579_v58  ;;  %v640_v50 = vrot.slane %v10072_v38, 2 }
  0x70   : > { %8850 = vmatpush3.bf16.msra.mxu0 %v9988_v57  ;;  %v8861_v51 = vpack.c.bf16 %v1540_v2, %v1539_v1  ;;  %v937_v37 = vcombine.high %v634_v11, %v634_v11  ;;  %v8864_v53 = vpack.c.bf16 %v1542_v12, %v1541_v10  ;;  %v8867_v56 = vpack.c.bf16 %v10129_v34, %v10124_v33 }
  0x71   : > { %8851 = vmatprep.subr.bf16.mxu0 %v13961_v8  ;;  %v636_v46 = vsel %vm14195_vm1, %v633_v45, %v635_v40  ;;  %v1842_v1 = vrot.slane %v7607_v17, %v9973_v48  ;;  %v1856_v2 = vrot.slane %v7609_v28, %v9973_v48  ;;  %v1091_v28 = vcombine.low %v10072_v38, %v579_v58 }
  0x72   : > { %v10161_v10 = vrot.slane %v937_v37, %v9973_v48  ;;  %v10166_v12 = vrot.slane %v636_v46, %v9973_v48  ;;  %v972_v17 = vcombine.high %v636_v46, %v636_v46  ;;  %v571_v23 = vrot.slane %v10050_v26, 1 }
  0x73   : > { %v1859_v38 = vcombine.low %v1842_v1, %v1856_v2 }
  0x74   : > { %8853 = vmatpush3.bf16.msra.mxu0 %v10009_v4  ;;  %v1023_v4 = vcombine.high %v639_v41, %v639_v41  ;;  %14236 = vst [vmem:[#allocation26_spill] sm:$0xff] %v10161_v10  ;;  %14237 = vst [vmem:[#allocation27_spill] sm:$0xff] %v10166_v12 }
  0x75   : > { %8854 = vmatprep.subr.bf16.mxu0 %v13961_v8 }
  0x76   : > { %v10173_v34 = vrot.slane %v1023_v4, %v9973_v48  ;;  %v10192_v4 = vrot.slane %v639_v41, %v9973_v48  ;;  %v1545_v41 = vld [vmem:[%s13958_s1 + $0x40] sm:$0xff] }
  0x78   : > { %8856 = vmatpush3.bf16.msra.mxu0 %v10056_v29  ;;  %v14234_v29 = vmov 0.0|0.0   ;;  %14239 = vst [vmem:[#allocation29_spill] sm:$0xff] %v10173_v34  ;;  %14243 = vst [vmem:[#allocation33_spill] sm:$0xff] %v10192_v4 }
  0x79   : > { %8857 = vmatprep.subr.bf16.mxu0 %v13961_v8  ;;  %v10143_v8 = vrot.slane %v634_v11, %v9973_v48  ;;  %v7611_v11 = vcombine.high %v10047_v25, %v934_v36  ;;  %v10182_v36 = vld [vmem:[%s9888_s9 + $0x78] sm:$0xff] }
  0x7a   : > { %v642_v2 = vrot.slane %v10182_v36, 2 }
  0x7b   : > { %8347 = vmatmul.mubr.f32.vlgmr.msra.gmra.mrb[0].mxu0 %v1754_v32  ;;  %14233 = vst [vmem:[#allocation25_spill] sm:$0xff] %v10143_v8  ;;  %v1824_v32 = vcombine.low %v1807_v3, %v1821_v7  ;;  %v641_v3 = vsel %vm14195_vm1, %v638_v55, %v640_v50  ;;  %v14235_v7 = vmov 0.0   ;;  %v1891_v45 = vrot.slane %v10143_v8, %v9973_v48 }
  0x7c   : > { %8859 = vmatpush1.bf16.msra.mxu0 %v8858_v59  ;;  %8349 = vmatprep.mubr.msk.f32.mxu0 %vm9642_vm0, %v13967_v9  ;;  %v1022_v59 = vcombine.high %v10059_v31, %v10136_v42  ;;  %v1056_v9 = vcombine.low %v10069_v39, %v580_v44  ;;  %v1058_v55 = vcombine.high %v641_v3, %v641_v3 }
  0x7d   : > { %8860 = vmatprep.subr.bf16.mxu0 %v14234_v29  ;;  %v1877_v58 = vrot.slane %v7611_v11, %v9973_v48 }
  0x7e   : > { %v10170_v33 = vrot.slane %v1022_v59, %v9973_v48  ;;  %v10176_v37 = vrot.slane %v1056_v9, %v9973_v48  ;;  %v1912_v9 = vrot.slane %v10161_v10, %v9973_v48  ;;  %v10205_v59 = vld [vmem:[%s9888_s9 + $0x90] sm:$0xff]  ;;  %v10218_v1 = vrot.slane %v1058_v55, %v9973_v48 }
  0x7f   : > { %8350 = vmatmul.mubr.f32.gmra.mrb[2].mxu0 %v1789_v62  ;;  %v1057_v62 = vcombine.high %v10069_v39, %v580_v44  ;;  %v10179_v39 = vrot.slane %v641_v3, %v9973_v48  ;;  %v10185_v44 = vld [vmem:[%s9888_s9 + $0x80] sm:$0xff]  ;;  %v1926_v3 = vrot.slane %v10166_v12, %v9973_v48  ;;  %v1894_v47 = vcombine.low %v1877_v58, %v1891_v45  ;;  %v10471_v12 = vld [vmem:[%s9888_s9 + $0x10] sm:$0xf] }
  0x80   : > { %8862 = vmatpush1.bf16.msra.mxu0 %v8861_v51  ;;  %8352 = vmatprep.mubr.msk.f32.mxu0 %vm9642_vm0, %v14235_v7  ;;  %14238 = vst [vmem:[#allocation28_spill] sm:$0xff] %v10170_v33  ;;  %14240 = vst [vmem:[#allocation30_spill] sm:$0xff] %v10176_v37  ;;  %v10189_v51 = vrot.slane %v635_v40, %v9973_v48  ;;  %v10208_v40 = vld [vmem:[%s9888_s9 + $0x98] sm:$0xff]  ;;  %v643_v11 = vrot.slane %v10185_v44, 2  ;;  %v1054_v57 = vcombine.low %v10170_v33, %v10173_v34 }
  0x81   : > { %8863 = vmatprep.subr.bf16.mxu0 %v14234_v29  ;;  %14241 = vst [vmem:[#allocation31_spill] sm:$0xff] %v10179_v39  ;;  %v10199_v46 = vrot.slane %v1057_v62, %v9973_v48  ;;  %14246 = vst [vmem:[#allocation36_spill] sm:$0xff] %v10218_v1  ;;  %v10228_v62 = vrot.slane %v972_v17, %v9973_v48  ;;  %v1087_v55 = vcombine.low %v10176_v37, %v10179_v39 }
  0x82   : > { %14242 = vst [vmem:[#allocation32_spill] sm:$0xff] %v10189_v51  ;;  %v7613_v17 = vcombine.low %v10189_v51, %v10192_v4  ;;  %v586_v15 = vrot.slane %v10205_v59, 1  ;;  %v587_v13 = vrot.slane %v10208_v40, 1  ;;  %v648_v58 = vrot.slane %v10208_v40, 2 }
  0x83   : > { %8353 = vmatmul.mubr.f32.gmra.mrb[4].mxu0 %v1824_v32  ;;  %14244 = vst [vmem:[#allocation34_spill] sm:$0xff] %v10199_v46  ;;  %v10202_v32 = vrot.slane %v640_v50, %v9973_v48  ;;  %v10221_v50 = vrot.slane %v1091_v28, %v9973_v48  ;;  %14248 = vst [vmem:[#allocation38_spill] sm:$0xff] %v10228_v62  ;;  %v1547_v28 = vld [vmem:[%s13958_s1 + $0x50] sm:$0xff]  ;;  %v1089_v51 = vcombine.low %v10199_v46, %v10218_v1 }
  0x84   : > { %8865 = vmatpush1.bf16.msra.mxu0 %v8864_v53  ;;  %8355 = vmatprep.mubr.msk.f32.mxu0 %vm9642_vm0, %v14235_v7  ;;  %v1546_v53 = vld [vmem:[%s13958_s1 + $0x48] sm:$0xff]  ;;  %v644_v21 = vsel %vm14195_vm1, %v642_v2, %v643_v11  ;;  %v7615_v6 = vcombine.high %v10192_v4, %v1054_v57  ;;  %v1929_v0 = vcombine.low %v1912_v9, %v1926_v3  ;;  %v589_v2 = vrot.slane %v10258_v49, 1 }
  0x85   : > { %14245 = vst [vmem:[#allocation35_spill] sm:$0xff] %v10202_v32  ;;  %8866 = vmatprep.subr.bf16.mxu0 %v14234_v29  ;;  %14247 = vst [vmem:[#allocation37_spill] sm:$0xff] %v10221_v50  ;;  %v8870_v45 = vpack.c.bf16 %v1546_v53, %v1545_v41  ;;  %v1106_v25 = vcombine.low %v10221_v50, %v10202_v32  ;;  %v7617_v41 = vcombine.high %v10173_v34, %v1087_v55 }
  0x86   : > { %v645_v53 = vrot.slane %v10243_v20, 2  ;;  %v1947_v16 = vrot.slane %v10228_v62, %v9973_v48  ;;  %v1961_v46 = vrot.slane %v7613_v17, %v9973_v48  ;;  %v10267_v32 = vsel %vm14201_vm2, %v586_v15, %v587_v13  ;;  %v1551_v15 = vld [vmem:[%s13958_s1 + $0x70] sm:$0xff] }
  0x87   : > { %8356 = vmatmul.mubr.f32.gmra.mrb[6].mxu0 %v1859_v38  ;;  %v647_v38 = vrot.slane %v10205_v59, 2  ;;  %v1109_v57 = vcombine.high %v644_v21, %v644_v21  ;;  %v7619_v3 = vcombine.high %v10179_v39, %v1089_v51  ;;  %v7621_v55 = vcombine.high %v10218_v1, %v1106_v25  ;;  %v1552_v25 = vld [vmem:[%s13958_s1 + $0x78] sm:$0xff]  ;;  %v10318_v39 = vld [vmem:[%s9888_s9 + $0xa8] sm:$0xff] }
  0x88   : > { %8868 = vmatpush1.bf16.msra.mxu0 %v8867_v56  ;;  %8358 = vmatprep.mubr.msk.f32.mxu0 %vm9642_vm0, %v14235_v7  ;;  %v8873_v56 = vpack.c.bf16 %v1548_v35, %v1547_v28  ;;  %v1549_v35 = vld [vmem:[%s13958_s1 + $0x60] sm:$0xff]  ;;  %v1982_v28 = vrot.slane %v7615_v6, %v9973_v48  ;;  %v1996_v17 = vrot.slane %v7617_v41, %v9973_v48 }
  0x89   : > { %8869 = vmatprep.subr.bf16.mxu0 %v14234_v29  ;;  %v649_v9 = vsel %vm14195_vm1, %v647_v38, %v648_v58  ;;  %v1194_v34 = vcombine.high %v10205_v59, %v10267_v32  ;;  %v1964_v38 = vcombine.low %v1947_v16, %v1961_v46  ;;  %v10295_v6 = vrot.slane %v644_v21, %v9973_v48 }
  0x8a   : > { %v1195_v51 = vcombine.high %v649_v9, %v649_v9  ;;  %v590_v16 = vsel %vm14201_vm2, %v587_v13, %v589_v2  ;;  %v14251_v46 = vrot.slane %v10258_v49, 2  ;;  %v2017_v21 = vrot.slane %v7619_v3, %v9973_v48  ;;  %v10321_v3 = vld [vmem:[%s9888_s9 + $0xb0] sm:$0xff] }
  0x8b   : > { %8359 = vmatmul.mubr.f32.gmra.mrb[8].mxu0 %v1894_v47  ;;  %v1550_v47 = vld [vmem:[%s13958_s1 + $0x68] sm:$0xff]  ;;  %14249 = vst [vmem:[#allocation39_spill] sm:$0xff] %v10295_v6  ;;  %v10310_v1 = vrot.slane %v1194_v34, %v9973_v48  ;;  %v1228_v13 = vcombine.low %v10208_v40, %v590_v16  ;;  %v2052_v34 = vrot.slane %v10295_v6, %v9973_v48 }
  0x8c   : > { %8871 = vmatpush1.bf16.msra.mxu0 %v8870_v45  ;;  %8361 = vmatprep.mubr.msk.f32.mxu0 %vm9642_vm0, %v14235_v7  ;;  %v646_v45 = vsel %vm14195_vm1, %v643_v11, %v645_v53  ;;  %v8876_v4 = vpack.c.bf16 %v1550_v47, %v1549_v35  ;;  %v651_v11 = vsel %vm14195_vm1, %v648_v58, %v14251_v46 }
  0x8d   : > { %8872 = vmatprep.subr.bf16.mxu0 %v14234_v29  ;;  %v1144_v41 = vcombine.high %v646_v45, %v646_v45  ;;  %v1999_v35 = vcombine.low %v1982_v28, %v1996_v17  ;;  %v8879_v47 = vpack.c.bf16 %v1552_v25, %v1551_v15  ;;  %14252 = vst [vmem:[#allocation41_spill] sm:$0xff] %v10310_v1  ;;  %v1553_v28 = vld [vmem:[%s13958_s1 + $0x80] sm:$0xff] }
  0x8e   : > { %v1229_v58 = vcombine.high %v10208_v40, %v590_v16  ;;  %v1230_v46 = vcombine.high %v651_v11, %v651_v11  ;;  %v10349_v25 = vrot.slane %v651_v11, %v9973_v48  ;;  %v14010_v16 = vrot.slane %v10321_v3, 2 }
  0x8f   : > { %8362 = vmatmul.mubr.f32.gmra.mrb[10].mxu0 %v1929_v0  ;;  %v10300_v0 = vrot.slane %v1109_v57, %v9973_v48  ;;  %v10313_v57 = vrot.slane %v1195_v51, %v9973_v48  ;;  %v10340_v17 = vrot.slane %v1144_v41, %v9973_v48  ;;  %v652_v51 = vrot.slane %v10318_v39, 2 }
  0x90   : > { %8874 = vmatpush1.bf16.msra.mxu0 %v8873_v56  ;;  %8364 = vmatprep.mubr.msk.f32.mxu0 %vm9642_vm0, %v14235_v7  ;;  %v2031_v56 = vrot.slane %v7621_v55, %v9973_v48  ;;  %v10330_v55 = vrot.slane %v646_v45, %v9973_v48  ;;  %v10346_v45 = vrot.slane %v649_v9, %v9973_v48 }
  0x91   : > { %14250 = vst [vmem:[#allocation40_spill] sm:$0xff] %v10300_v0  ;;  %8875 = vmatprep.subr.bf16.mxu0 %v14234_v29  ;;  %14253 = vst [vmem:[#allocation42_spill] sm:$0xff] %v10313_v57  ;;  %v2066_v15 = vrot.slane %v10300_v0, %v9973_v48  ;;  %v10357_v41 = vrot.slane %v1228_v13, %v9973_v48  ;;  %v10363_v9 = vrot.slane %v1230_v46, %v9973_v48  ;;  %v10386_v46 = vld [vmem:[%s13958_s1 + $0xa8] sm:$0xff]  ;;  %v10402_v0 = vld [vmem:[%s9888_s9 + $0xb8] sm:$0xf] }
  0x92   : > { %14254 = vst [vmem:[#allocation43_spill] sm:$0xff] %v10330_v55  ;;  %v2034_v40 = vcombine.low %v2017_v21, %v2031_v56  ;;  %14255 = vst [vmem:[#allocation44_spill] sm:$0xff] %v10340_v17  ;;  %v1263_v21 = vcombine.low %v10258_v49, %v589_v2  ;;  %v1226_v56 = vcombine.low %v10310_v1, %v10313_v57  ;;  %v1555_v2 = vld [vmem:[%s13958_s1 + $0x90] sm:$0xff] }
  0x93   : > { %8365 = vmatmul.mubr.f32.gmra.mrb[12].mxu0 %v1964_v38  ;;  %v10343_v38 = vrot.slane %v645_v53, %v9973_v48  ;;  %14257 = vst [vmem:[#allocation46_spill] sm:$0xff] %v10346_v45  ;;  %14258 = vst [vmem:[#allocation47_spill] sm:$0xff] %v10349_v25  ;;  %v10360_v53 = vrot.slane %v1229_v58, %v9973_v48  ;;  %v2087_v13 = vrot.slane %v10330_v55, %v9973_v48  ;;  %v10381_v58 = vld [vmem:[%s13958_s1 + $0xa0] sm:$0xff] }
  0x94   : > { %8877 = vmatpush1.bf16.msra.mxu0 %v8876_v4  ;;  %8367 = vmatprep.mubr.msk.f32.mxu0 %vm9642_vm0, %v14235_v7  ;;  %v1554_v4 = vld [vmem:[%s13958_s1 + $0x88] sm:$0xff]  ;;  %14259 = vst [vmem:[#allocation48_spill] sm:$0xff] %v10357_v41  ;;  %14261 = vst [vmem:[#allocation50_spill] sm:$0xff] %v10363_v9  ;;  %v10394_v1 = vrot.slane %v1263_v21, %v9973_v48  ;;  %v2069_v50 = vcombine.low %v2052_v34, %v2066_v15  ;;  %v10422_v15 = vld [vmem:[%s13958_s1 + $0xb0] sm:$0xff] }
  0x95   : > { %8878 = vmatprep.subr.bf16.mxu0 %v14234_v29  ;;  %14256 = vst [vmem:[#allocation45_spill] sm:$0xff] %v10343_v38  ;;  %14260 = vst [vmem:[#allocation49_spill] sm:$0xff] %v10360_v53  ;;  %v8882_v11 = vpack.c.bf16 %v1554_v4, %v1553_v28  ;;  %v7623_v28 = vcombine.low %v10343_v38, %v10346_v45  ;;  %v654_v4 = vsel %vm14195_vm1, %v652_v51, %v14010_v16  ;;  %v10410_v16 = vld [vmem:[%s9888_s9 + $0xc0] sm:$0xff]  ;;  %v10413_v21 = vld [vmem:[%s9888_s9 + $0xc8] sm:$0xff] }
  0x96   : > { %14262 = vst [vmem:[#allocation51_spill] sm:$0xff] %v10394_v1  ;;  %v7625_v37 = vcombine.high %v10346_v45, %v1226_v56  ;;  %v1259_v38 = vcombine.low %v10357_v41, %v10349_v25  ;;  %v1261_v51 = vcombine.low %v10360_v53, %v10363_v9  ;;  %v8888_v34 = vpack.c.bf16 %v10386_v46, %v10381_v58  ;;  %v10443_v45 = vld [vmem:[%s9888_s9] sm:$0xff]  ;;  %v10446_v53 = vld [vmem:[%s9888_s9 + $0x8] sm:$0xff]  ;;  %v10463_v56 = vld [vmem:[%s13958_s1 + $0xd8] sm:$0xff] }
  0x97   : > { %8368 = vmatmul.mubr.f32.gmra.mrb[14].mxu0 %v1999_v35  ;;  %v1556_v35 = vld [vmem:[%s13958_s1 + $0x98] sm:$0xff]  ;;  %v10439_v58 = vrot.slane %v654_v4, %v9973_v48  ;;  %v655_v46 = vrot.slane %v10402_v0, 2  ;;  %14266 = vst [vmem:[#allocation54_spill] sm:$0xff] %v10443_v45  ;;  %v1281_v41 = vcombine.high %v654_v4, %v654_v4  ;;  %v657_v6 = vrot.slane %v10410_v16, 2 }
  0x98   : > { %8880 = vmatpush1.bf16.msra.mxu0 %v8879_v47  ;;  %8370 = vmatprep.mubr.msk.f32.mxu0 %vm9642_vm0, %v14235_v7  ;;  %v2101_v47 = vrot.slane %v10340_v17, %v9973_v48  ;;  %v14263_v17 = vrot.slane %v10258_v49, 2  ;;  %v8885_v49 = vpack.c.bf16 %v1556_v35, %v1555_v2  ;;  %v2122_v2 = vrot.slane %v7623_v28, %v9973_v48  ;;  %v10436_v35 = vld [vmem:[%s13958_s1 + $0xc0] sm:$0xff]  ;;  %v10458_v28 = vld [vmem:[%s13958_s1 + $0xd0] sm:$0xff] }
  0x99   : > { %8881 = vmatprep.subr.bf16.mxu0 %v14234_v29  ;;  %14265 = vst [vmem:[#allocation53_spill] sm:$0xff] %v10439_v58  ;;  %v2136_v62 = vrot.slane %v7625_v37, %v9973_v48  ;;  %v556_v33 = vrot.slane %v10443_v45, 1  ;;  %v572_v37 = vrot.slane %v10053_v27, 1  ;;  %v14269_v10 = vrot.slane %v10413_v21, 2 }
  0x9a   : > { %v10399_v55 = vrot.slane %v14263_v17, %v9973_v48  ;;  %v561_v17 = vrot.slane %v9920_v18, 1 }
  0x9b   : > { %8371 = vmatmul.mubr.f32.gmra.mrb[16].mxu0 %v2034_v40  ;;  %v10427_v40 = vld [vmem:[%s13958_s1 + $0xb8] sm:$0xff]  ;;  %v10498_v8 = vsel %vm14195_vm1, %v657_v6, %v14269_v10 }
  0x9c   : > { %14264 = vst [vmem:[#allocation52_spill] sm:$0xff] %v10399_v55  ;;  %8883 = vmatpush1.bf16.msra.mxu0 %v8882_v11  ;;  %8373 = vmatprep.mubr.msk.f32.mxu0 %vm9642_vm0, %v14235_v7  ;;  %v2104_v11 = vcombine.low %v2087_v13, %v2101_v47  ;;  %v10451_v13 = vld [vmem:[%s13958_s1 + $0xc8] sm:$0xff]  ;;  %v1278_v47 = vcombine.low %v10394_v1, %v10399_v55  ;;  %14270 = vst [vmem:[#allocation56_spill] sm:$0xff] %v10498_v8 }
  0x9d   : > { %8884 = vmatprep.subr.bf16.mxu0 %v14234_v29  ;;  %v7627_v55 = vcombine.high %v10313_v57, %v1259_v38  ;;  %v7629_v1 = vcombine.high %v10349_v25, %v1261_v51  ;;  %v8891_v4 = vpack.c.bf16 %v10427_v40, %v10422_v15  ;;  %v8894_v38 = vpack.c.bf16 %v10451_v13, %v10436_v35 }
  0x9e   : > { %v2206_v51 = vrot.slane %v10439_v58, %v9973_v48  ;;  %v14267_v25 = vrot.slane %v10321_v3, 2  ;;  %v7631_v40 = vcombine.high %v10363_v9, %v1278_v47  ;;  %v10493_v57 = vrot.slane %v1281_v41, %v9973_v48 }
  0x9f   : > { %8374 = vmatmul.mubr.f32.gmra.mrb[18].mxu0 %v2069_v50  ;;  %v557_v50 = vrot.slane %v10446_v53, 1  ;;  %v559_v35 = vrot.slane %v10471_v12, 1  ;;  %v2139_v13 = vcombine.low %v2122_v2, %v2136_v62  ;;  %v2171_v58 = vrot.slane %v7629_v1, %v9973_v48 }
  0xa0   : > { %8886 = vmatpush1.bf16.msra.mxu0 %v8885_v49  ;;  %8376 = vmatprep.mubr.msk.f32.mxu0 %vm9642_vm0, %v14235_v7  ;;  %v656_v15 = vsel %vm14195_vm1, %v14267_v25, %v655_v46  ;;  %14268 = vst [vmem:[#allocation55_spill] sm:$0xff] %v10493_v57  ;;  %v2157_v49 = vrot.slane %v7627_v55, %v9973_v48  ;;  %v14274_v1 = vrot.slane %v9923_v19, 1 }
  0xa1   : > { %8887 = vmatprep.subr.bf16.mxu0 %v14234_v29  ;;  %v10504_v25 = vsel %vm14201_vm2, %v571_v23, %v572_v37  ;;  %v10510_v10 = vrot.slane %v656_v15, %v9973_v48  ;;  %v1316_v6 = vcombine.high %v656_v15, %v656_v15  ;;  %v558_v41 = vsel %vm14201_vm2, %v556_v33, %v557_v50 }
  0xa2   : > { %v10515_v62 = vrot.slane %v655_v46, %v9973_v48  ;;  %v10519_v23 = vrot.slane %v10498_v8, %v9973_v48  ;;  %v563_v55 = vsel %vm14201_vm2, %v561_v17, %v14274_v1  ;;  %v2227_v33 = vrot.slane %v10493_v57, %v9973_v48 }
  0xa3   : > { %8377 = vmatmul.mubr.f32.gmra.mrb[20].mxu0 %v2104_v11  ;;  %14271 = vst [vmem:[#allocation57_spill] sm:$0xff] %v10510_v10  ;;  %v2192_v11 = vrot.slane %v7631_v40, %v9973_v48  ;;  %v560_v2 = vsel %vm14201_vm2, %v557_v50, %v559_v35  ;;  %v2174_v15 = vcombine.low %v2157_v49, %v2171_v58  ;;  %v1565_v58 = vld [vmem:[%s13958_s1 + $0xe0] sm:$0xff]  ;;  %v14277_v17 = vrot.slane %v10096_v54, 1 }
  0xa4   : > { %8889 = vmatpush1.bf16.msra.mxu0 %v8888_v34  ;;  %8379 = vmatprep.mubr.msk.f32.mxu0 %vm9642_vm0, %v14235_v7  ;;  %14272 = vst [vmem:[#allocation58_spill] sm:$0xff] %v10515_v62  ;;  %14273 = vst [vmem:[#allocation59_spill] sm:$0xff] %v10519_v23  ;;  %v14051_v34 = vrot.slane %v9942_v30, 1  ;;  %v677_v47 = vcombine.low %v10443_v45, %v558_v41  ;;  %v678_v8 = vcombine.high %v10443_v45, %v558_v41 }
  0xa5   : > { %8890 = vmatprep.subr.bf16.mxu0 %v14234_v29  ;;  %v2241_v40 = vrot.slane %v10510_v10, %v9973_v48  ;;  %v10540_v50 = vrot.slane %v1316_v6, %v9973_v48  ;;  %v7633_v49 = vcombine.low %v10515_v62, %v10519_v23  ;;  %v712_v41 = vcombine.low %v10446_v53, %v560_v2 }
  0xa6   : > { %v14276_v6 = vmov %v14274_v1  ;;  %v10561_v46 = vsel %vm14201_vm2, %v572_v37, %v14277_v17  ;;  %v2209_v9 = vcombine.low %v2192_v11, %v2206_v51  ;;  %v713_v10 = vcombine.high %v10446_v53, %v560_v2  ;;  %v1568_v2 = vld [vmem:[%s13958_s1 + $0xf8] sm:$0xff] }
  0xa7   : > { %8380 = vmatmul.mubr.f32.gmra.mrb[22].mxu0 %v2139_v13  ;;  %14275 = vst [vmem:[#allocation60_spill] sm:$0xff] %v10540_v50  ;;  %v763_v13 = vcombine.low %v9920_v18, %v563_v55  ;;  %v565_v1 = vsel %vm14201_vm2, %v14276_v6, %v14051_v34  ;;  %v747_v57 = vcombine.low %v10471_v12, %v559_v35  ;;  %v14052_v37 = vrot.slane %v10243_v20, 1 }
  0xa8   : > { %8892 = vmatpush1.bf16.msra.mxu0 %v8891_v4  ;;  %8382 = vmatprep.mubr.msk.f32.mxu0 %vm9642_vm0, %v14235_v7  ;;  %v1566_v4 = vld [vmem:[%s13958_s1 + $0xe8] sm:$0xff]  ;;  %v686_v62 = vrot.slane %v677_v47, %v9973_v48  ;;  %v693_v45 = vrot.slane %v678_v8, %v9973_v48  ;;  %v764_v6 = vcombine.high %v9920_v18, %v563_v55  ;;  %v581_v17 = vrot.slane %v10182_v36, 1 }
  0xa9   : > { %8893 = vmatprep.subr.bf16.mxu0 %v14234_v29  ;;  %v971_v34 = vcombine.high %v10053_v27, %v10561_v46  ;;  %v8900_v51 = vpack.c.bf16 %v1566_v4, %v1565_v58  ;;  %v10576_v35 = vrot.slane %v763_v13, %v9973_v48  ;;  %v798_v11 = vcombine.low %v9923_v19, %v565_v1 }
  0xaa   : > { %v2244_v8 = vcombine.low %v2227_v33, %v2241_v40  ;;  %v2262_v18 = vrot.slane %v10540_v50, %v9973_v48  ;;  %v2276_v47 = vrot.slane %v7633_v49, %v9973_v48  ;;  %v721_v55 = vrot.slane %v712_v41, %v9973_v48  ;;  %v14288_v33 = vld [vmem:[#allocation26_spill] sm:$0xff] }
  0xab   : > { %8383 = vmatmul.mubr.f32.gmra.mrb[24].mxu0 %v2174_v15  ;;  %v728_v15 = vrot.slane %v713_v10, %v9973_v48  ;;  %v582_v40 = vrot.slane %v10185_v44, 1  ;;  %v2946_v13 = vrot.slane %v686_v62, %v9973_v48  ;;  %v2960_v58 = vrot.slane %v693_v45, %v9973_v48 }
  0xac   : > { %8895 = vmatpush1.bf16.msra.mxu0 %v8894_v38  ;;  %8385 = vmatprep.mubr.msk.f32.mxu0 %vm9642_vm0, %v14235_v7  ;;  %v1567_v38 = vld [vmem:[%s13958_s1 + $0xf0] sm:$0xff]  ;;  %v754_v4 = vrot.slane %v747_v57, %v9973_v48  ;;  %v10599_v49 = vrot.slane %v764_v6, %v9973_v48  ;;  %v14278_v10 = vpack.c.bf16 %v10463_v56, %v10458_v28  ;;  %v1569_v56 = vld [vmem:[%s13958_s1 + $0x100] sm:$0xff]  ;;  %v1570_v28 = vld [vmem:[%s13958_s1 + $0x108] sm:$0xff] }
  0xad   : > { %8896 = vmatprep.subr.bf16.mxu0 %v14234_v29  ;;  %v795_v41 = vcombine.high %v10576_v35, %v9997_v60  ;;  %v10610_v62 = vrot.slane %v798_v11, %v9973_v48  ;;  %v2279_v57 = vcombine.low %v2262_v18, %v2276_v47  ;;  %v8903_v45 = vpack.c.bf16 %v1568_v2, %v1567_v38 }
  0xae   : > { %v2981_v6 = vrot.slane %v721_v55, %v9973_v48  ;;  %v2969_v11 = vcombine.high %v2946_v13, %v2960_v58  ;;  %v7652_v18 = vcombine.low %v754_v4, %v10576_v35  ;;  %v797_v47 = vcombine.high %v10599_v49, %v10000_v61 }
  0xaf   : > { %8386 = vmatmul.mubr.f32.gmra.mrb[26].mxu0 %v2209_v9  ;;  %v799_v9 = vcombine.high %v9923_v19, %v565_v1  ;;  %v10622_v19 = vsel %vm14201_vm2, %v581_v17, %v582_v40  ;;  %v10627_v1 = vsel %vm14201_vm2, %v582_v40, %v14052_v37  ;;  %v14279_v38 = vrot.slane %v9942_v30, 1 }
  0xb0   : > { %8898 = vmatpush1.bf16.msra.mxu0 %v14278_v10  ;;  %8388 = vmatprep.mubr.msk.f32.mxu0 %vm9642_vm0, %v14235_v7  ;;  %v2995_v10 = vrot.slane %v728_v15, %v9973_v48  ;;  %v7654_v2 = vcombine.low %v795_v41, %v10599_v49  ;;  %v2968_v17 = vcombine.low %v2946_v13, %v2960_v58 }
  0xb1   : > { %8899 = vmatprep.subr.bf16.mxu0 %v14234_v29  ;;  %v833_v55 = vcombine.low %v9942_v30, %v14279_v38  ;;  %v10639_v15 = vrot.slane %v799_v9, %v9973_v48  ;;  %v8906_v40 = vpack.c.bf16 %v1570_v28, %v1569_v56  ;;  %v849_v4 = vcombine.low %v9929_v24, %v9964_v43 }
  0xb2   : > { %v3016_v13 = vrot.slane %v7652_v18, %v9973_v48  ;;  %v3030_v56 = vrot.slane %v7654_v2, %v9973_v48  ;;  %v7656_v28 = vcombine.low %v797_v47, %v10610_v62  ;;  %v1572_v18 = vld [vmem:[%s13958_s1 + $0x118] sm:$0xff]  ;;  %v14053_v47 = vrot.slane %v10402_v0, 1 }
  0xb3   : > { %8389 = vmatmul.mubr.f32.gmra.mrb[28].mxu0 %v2244_v8  ;;  %v830_v8 = vcombine.high %v10610_v62, %v10012_v5  ;;  %v832_v58 = vcombine.high %v10639_v15, %v10029_v14  ;;  %v10658_v24 = vrot.slane %v833_v55, %v9973_v48  ;;  %v10673_v55 = vrot.slane %v849_v4, %v9973_v48 }
  0xb4   : > { %8901 = vmatpush1.bf16.msra.mxu0 %v8900_v51  ;;  %8391 = vmatprep.mubr.msk.f32.mxu0 %vm9642_vm0, %v14235_v7  ;;  %v3004_v51 = vcombine.high %v2981_v6, %v2995_v10  ;;  %v3003_v2 = vcombine.low %v2981_v6, %v2995_v10  ;;  %v3039_v38 = vcombine.high %v3016_v13, %v3030_v56  ;;  %v1573_v6 = vld [vmem:[%s13958_s1 + $0x120] sm:$0xff]  ;;  %v1574_v10 = vld [vmem:[%s13958_s1 + $0x128] sm:$0xff] }
  0xb5   : > { %8902 = vmatprep.subr.bf16.mxu0 %v14234_v29  ;;  %v7658_v37 = vcombine.low %v830_v8, %v10639_v15  ;;  %v7660_v43 = vcombine.low %v832_v58, %v10658_v24  ;;  %v3051_v9 = vrot.slane %v7656_v28, %v9973_v48  ;;  %v3038_v4 = vcombine.low %v3016_v13, %v3030_v56 }
  0xb6   : > { %v10684_v30 = vrot.slane %v10673_v55, %v9973_v48  ;;  %v596_v13 = vrot.slane %v10410_v16, 1  ;;  %v14054_v58 = vrot.slane %v10413_v21, 1  ;;  %v14283_v28 = vcombine.high %v10050_v26, %v10504_v25 }
  0xb7   : > { %8392 = vmatmul.mubr.f32.gmra.mrb[30].mxu0 %v2279_v57  ;;  %v1571_v57 = vld [vmem:[%s13958_s1 + $0x110] sm:$0xff]  ;;  %v3065_v41 = vrot.slane %v7658_v37, %v9973_v48  ;;  %v14281_v37 = vcombine.low %v10050_v26, %v10504_v25  ;;  %v3086_v56 = vrot.slane %v7660_v43, %v9973_v48  ;;  %v10721_v43 = vrot.slane %v10004_v63, %v9973_v48 }
  0xb8   : > { %8904 = vmatpush1.bf16.msra.mxu0 %v8903_v45  ;;  %3856 = vmatprep.mubr.f32.mxu0 %v2969_v11  ;;  %v591_v45 = vrot.slane %v10318_v39, 1  ;;  %v592_v11 = vrot.slane %v10321_v3, 1  ;;  %v8909_v8 = vpack.c.bf16 %v1572_v18, %v1571_v57  ;;  %14280 = vst [vmem:[#allocation61_spill] sm:$0xff] %v10684_v30  ;;  %v10710_v57 = vrot.slane %v14283_v28, %v9973_v48 }
  0xb9   : > { %8905 = vmatprep.subr.bf16.mxu0 %v14234_v29  ;;  %14284 = vst [vmem:[#allocation63_spill] sm:$0xff] %v10721_v43  ;;  %v10725_v26 = vrot.slane %v10041_v22, %v9973_v48  ;;  %v14286_v25 = vrot.slane %v10096_v54, 1  ;;  %v3073_v18 = vcombine.low %v3051_v9, %v3065_v41  ;;  %v10757_v23 = vrot.slane %v971_v34, %v9973_v48  ;;  %v1578_v34 = vld [vmem:[%s13958_s1 + $0x148] sm:$0xff] }
  0xbb   : > { %3857 = vmatmul.mubr.f32.vlgmr.msra.gmra.mrb[0].mxu0 %v2968_v17  ;;  %v10693_v17 = vsel %vm14201_vm2, %v591_v45, %v592_v11  ;;  %v10717_v45 = vsel %vm14201_vm2, %v592_v11, %v14053_v47  ;;  %14285 = vst [vmem:[#allocation64_spill] sm:$0xff] %v10725_v26  ;;  %v1005_v28 = vcombine.low %v10096_v54, %v14286_v25  ;;  %v1576_v11 = vld [vmem:[%s13958_s1 + $0x138] sm:$0xff]  ;;  %v14294_v54 = vld [vmem:[#allocation38_spill] sm:$0xff] }
  0xbc   : > { %8907 = vmatpush3.bf16.msra.mxu0 %v8906_v40  ;;  %3861 = vmatprep.mubr.f32.mxu0 %v3004_v51  ;;  %v10699_v40 = vrot.slane %v14281_v37, %v9973_v48  ;;  %v3074_v37 = vcombine.high %v3051_v9, %v3065_v41  ;;  %v10748_v25 = vsel %vm14201_vm2, %v596_v13, %v14054_v58 }
  0xbd   : > { %8908 = vmatprep.subr.bf16.mxu0 %v14234_v29  ;;  %v3109_v51 = vcombine.high %v3086_v56, %v10684_v30  ;;  %v14289_v13 = vcombine.low %v10053_v27, %v10561_v46  ;;  %v3144_v27 = vcombine.high %v10721_v43, %v10725_v26  ;;  %v14290_v46 = vld [vmem:[#allocation20_spill] sm:$0xff] }
  0xbe   : > { %14282 = vst [vmem:[#allocation62_spill] sm:$0xff] %v10699_v40 }
  0xbf   : > { %3862 = vmatmul.mubr.f32.gmra.mrb[2].mxu0 %v3003_v2  ;;  %v8912_v2 = vpack.c.bf16 %v1574_v10, %v1573_v6  ;;  %v7662_v6 = vcombine.low %v10092_v52, %v10699_v40  ;;  %v14287_v10 = vld [vmem:[#allocation25_spill] sm:$0xff]  ;;  %v10763_v58 = vrot.slane %v14289_v13, %v9973_v48  ;;  %v14293_v13 = vld [vmem:[#allocation27_spill] sm:$0xff] }
  0xc0   : > { %3866 = vmatprep.mubr.f32.mxu0 %v3039_v38  ;;  %8910 = vmatpush3.bf16.msra.mxu0 %v8909_v8  ;;  %v1575_v38 = vld [vmem:[%s13958_s1 + $0x130] sm:$0xff]  ;;  %v967_v47 = vcombine.high %v10699_v40, %v14287_v10  ;;  %v969_v8 = vcombine.high %v10710_v57, %v14288_v33 }
  0xc1   : > { %8911 = vmatprep.subr.bf16.mxu0 %v14234_v29  ;;  %v8915_v41 = vpack.c.bf16 %v1576_v11, %v1575_v38  ;;  %v10784_v11 = vrot.slane %v7662_v6, %v9973_v48  ;;  %v1002_v9 = vcombine.high %v10763_v58, %v14293_v13  ;;  %v1580_v6 = vld [vmem:[%s13958_s1 + $0x158] sm:$0xff] }
  0xc2   : > { %v7664_v40 = vcombine.low %v967_v47, %v10710_v57  ;;  %v7666_v52 = vcombine.low %v969_v8, %v10763_v58 }
  0xc3   : > { %3867 = vmatmul.mubr.f32.gmra.mrb[4].mxu0 %v3038_v4  ;;  %v1577_v4 = vld [vmem:[%s13958_s1 + $0x140] sm:$0xff]  ;;  %14292 = vst [vmem:[#allocation26_spill] sm:$0xff] %v10784_v11 }
  0xc4   : > { %3871 = vmatprep.mubr.f32.mxu0 %v3074_v37  ;;  %8913 = vmatpush3.bf16.msra.mxu0 %v8912_v2  ;;  %v3108_v37 = vcombine.low %v3086_v56, %v10684_v30  ;;  %v10779_v2 = vrot.slane %v14290_v46, %v9973_v48  ;;  %v1004_v56 = vcombine.high %v10757_v23, %v14294_v54 }
  0xc5   : > { %8914 = vmatprep.subr.bf16.mxu0 %v14234_v29  ;;  %v10791_v30 = vrot.slane %v1005_v28, %v9973_v48  ;;  %v8918_v38 = vpack.c.bf16 %v1578_v34, %v1577_v4  ;;  %v7668_v28 = vcombine.low %v1002_v9, %v10757_v23  ;;  %v10812_v4 = vrot.slane %v7666_v52, %v9973_v48  ;;  %v1582_v9 = vld [vmem:[%s13958_s1 + $0x168] sm:$0xff] }
  0xc6   : > { %14291 = vst [vmem:[#allocation25_spill] sm:$0xff] %v10779_v2  ;;  %v3179_v47 = vcombine.high %v10779_v2, %v10784_v11  ;;  %v3178_v52 = vcombine.low %v10779_v2, %v10784_v11  ;;  %v14309_v2 = vld [vmem:[#allocation39_spill] sm:$0xff] }
  0xc7   : > { %3872 = vmatmul.mubr.f32.gmra.mrb[6].mxu0 %v3073_v18  ;;  %v1579_v18 = vld [vmem:[%s13958_s1 + $0x150] sm:$0xff]  ;;  %v7670_v8 = vcombine.low %v1004_v56, %v10791_v30  ;;  %14296 = vst [vmem:[#allocation27_spill] sm:$0xff] %v10812_v4 }
  0xc8   : > { %3876 = vmatprep.mubr.f32.mxu0 %v3109_v51  ;;  %8916 = vmatpush3.bf16.msra.mxu0 %v8915_v41  ;;  %v3143_v51 = vcombine.low %v10721_v43, %v10725_v26  ;;  %v10809_v41 = vrot.slane %v7664_v40, %v9973_v48  ;;  %v8921_v34 = vpack.c.bf16 %v1580_v6, %v1579_v18 }
  0xc9   : > { %8917 = vmatprep.subr.bf16.mxu0 %v14234_v29  ;;  %v14297_v40 = vcombine.low %v10059_v31, %v10136_v42  ;;  %v10833_v56 = vrot.slane %v7670_v8, %v9973_v48  ;;  %v14301_v31 = vcombine.low %v10182_v36, %v10622_v19 }
  0xca   : > { %14295 = vst [vmem:[#allocation20_spill] sm:$0xff] %v10809_v41  ;;  %v3214_v18 = vcombine.high %v10809_v41, %v10812_v4 }
  0xcb   : > { %3877 = vmatmul.mubr.f32.gmra.mrb[8].mxu0 %v3108_v37  ;;  %v1581_v37 = vld [vmem:[%s13958_s1 + $0x160] sm:$0xff]  ;;  %14300 = vst [vmem:[#allocation66_spill] sm:$0xff] %v10833_v56  ;;  %v10841_v42 = vrot.slane %v14301_v31, %v9973_v48  ;;  %v14305_v31 = vld [vmem:[#allocation28_spill] sm:$0xff] }
  0xcc   : > { %3881 = vmatprep.mubr.f32.mxu0 %v3144_v27  ;;  %8919 = vmatpush3.bf16.msra.mxu0 %v8918_v38  ;;  %v10825_v27 = vrot.slane %v14297_v40, %v9973_v48  ;;  %v10830_v38 = vrot.slane %v7668_v28, %v9973_v48  ;;  %v8924_v6 = vpack.c.bf16 %v1582_v9, %v1581_v37  ;;  %v14303_v28 = vld [vmem:[#allocation54_spill] sm:$0xff]  ;;  %v618_v37 = vrot.slane %v10446_v53, 2 }
  0xcd   : > { %8920 = vmatprep.subr.bf16.mxu0 %v14234_v29  ;;  %14302 = vst [vmem:[#allocation67_spill] sm:$0xff] %v10841_v42  ;;  %v617_v8 = vrot.slane %v14303_v28, 2  ;;  %v3213_v9 = vcombine.low %v10809_v41, %v10812_v4  ;;  %v14307_v28 = vcombine.high %v10182_v36, %v10622_v19  ;;  %v1139_v43 = vcombine.high %v10841_v42, %v14309_v2  ;;  %v14312_v41 = vld [vmem:[#allocation30_spill] sm:$0xff] }
  0xce   : > { %14298 = vst [vmem:[#allocation38_spill] sm:$0xff] %v10825_v27  ;;  %14299 = vst [vmem:[#allocation65_spill] sm:$0xff] %v10830_v38  ;;  %v10853_v40 = vrot.slane %v10825_v27, %v9973_v48  ;;  %v3249_v11 = vcombine.high %v10830_v38, %v10833_v56  ;;  %v14310_v53 = vcombine.low %v10185_v44, %v10627_v1  ;;  %v14314_v19 = vld [vmem:[#allocation34_spill] sm:$0xff] }
  0xcf   : > { %3882 = vmatmul.mubr.f32.gmra.mrb[10].mxu0 %v3143_v51  ;;  %v1583_v51 = vld [vmem:[%s13958_s1 + $0x170] sm:$0xff]  ;;  %v10868_v26 = vrot.slane %v14307_v28, %v9973_v48  ;;  %v10890_v28 = vsel %vm14195_vm1, %v617_v8, %v618_v37 }
  0xd0   : > { %3886 = vmatprep.mubr.f32.mxu0 %v3179_v47  ;;  %8922 = vmatpush3.bf16.msra.mxu0 %v8921_v34  ;;  %v1584_v47 = vld [vmem:[%s13958_s1 + $0x178] sm:$0xff]  ;;  %14304 = vst [vmem:[#allocation54_spill] sm:$0xff] %v10853_v40  ;;  %v10857_v34 = vrot.slane %v14305_v31, %v9973_v48  ;;  %v10880_v31 = vrot.slane %v14312_v41, %v9973_v48 }
  0xd1   : > { %8923 = vmatprep.subr.bf16.mxu0 %v14234_v29  ;;  %14308 = vst [vmem:[#allocation69_spill] sm:$0xff] %v10868_v26  ;;  %v8927_v4 = vpack.c.bf16 %v1584_v47, %v1583_v51  ;;  %v14316_v51 = vld [vmem:[#allocation37_spill] sm:$0xff]  ;;  %v14317_v41 = vcombine.high %v10185_v44, %v10627_v1  ;;  %v14322_v44 = vrot.slane %v10471_v12, 2 }
  0xd2   : > { %14306 = vst [vmem:[#allocation68_spill] sm:$0xff] %v10857_v34  ;;  %14313 = vst [vmem:[#allocation71_spill] sm:$0xff] %v10880_v31  ;;  %v3284_v36 = vcombine.high %v10853_v40, %v10857_v34  ;;  %v7672_v47 = vcombine.low %v14316_v51, %v10841_v42  ;;  %v14346_v51 = vld [vmem:[#allocation51_spill] sm:$0xff] }
  0xd3   : > { %3887 = vmatmul.mubr.f32.gmra.mrb[12].mxu0 %v3178_v52  ;;  %v10876_v52 = vrot.slane %v14310_v53, %v9973_v48  ;;  %v10901_v27 = vrot.slane %v14317_v41, %v9973_v48  ;;  %v7674_v53 = vcombine.low %v1139_v43, %v10868_v26  ;;  %v10915_v1 = vsel %vm14195_vm1, %v618_v37, %v14322_v44 }
  0xd4   : > { %3891 = vmatprep.mubr.f32.mxu0 %v3214_v18  ;;  %8925 = vmatpush3.bf16.msra.mxu0 %v8924_v6  ;;  %v10887_v18 = vrot.slane %v14314_v19, %v9973_v48  ;;  %v3248_v6 = vcombine.low %v10830_v38, %v10833_v56  ;;  %v14319_v19 = vrot.slane %v10243_v20, 1  ;;  %v14321_v56 = vld [vmem:[#allocation43_spill] sm:$0xff] }
  0xd5   : > { %14311 = vst [vmem:[#allocation70_spill] sm:$0xff] %v10876_v52  ;;  %8926 = vmatprep.subr.bf16.mxu0 %v14234_v29  ;;  %14318 = vst [vmem:[#allocation73_spill] sm:$0xff] %v10901_v27  ;;  %v1174_v38 = vcombine.high %v10876_v52, %v14321_v56  ;;  %v10930_v37 = vrot.slane %v7674_v53, %v9973_v48 }
  0xd6   : > { %14315 = vst [vmem:[#allocation72_spill] sm:$0xff] %v10887_v18  ;;  %v1177_v8 = vcombine.low %v10243_v20, %v14319_v19  ;;  %v3283_v20 = vcombine.low %v10853_v40, %v10857_v34  ;;  %v3319_v43 = vcombine.high %v10880_v31, %v10887_v18  ;;  %v3318_v34 = vcombine.low %v10880_v31, %v10887_v18  ;;  %v10997_v31 = vld [vmem:[%s9888_s9 + $0xe0] sm:$0xff] }
  0xd7   : > { %3892 = vmatmul.mubr.f32.gmra.mrb[14].mxu0 %v3213_v9  ;;  %v14320_v9 = vld [vmem:[#allocation40_spill] sm:$0xff]  ;;  %14326 = vst [vmem:[#allocation76_spill] sm:$0xff] %v10930_v37  ;;  %v7678_v44 = vcombine.low %v1174_v38, %v10901_v27 }
  0xd8   : > { %3896 = vmatprep.mubr.f32.mxu0 %v3249_v11  ;;  %v1141_v2 = vcombine.high %v10868_v26, %v14320_v9  ;;  %8928 = vmatpush3.bf16.msra.mxu0 %v8927_v4  ;;  %v14323_v11 = vld [vmem:[#allocation44_spill] sm:$0xff]  ;;  %v10924_v19 = vrot.slane %v1177_v8, %v9973_v48  ;;  %v10927_v4 = vrot.slane %v7672_v47, %v9973_v48  ;;  %v14331_v47 = vld [vmem:[#allocation18_spill] sm:$0xff]  ;;  %v11047_v26 = vld [vmem:[%s9888_s9 + $0xe8] sm:$0xf] }
  0xd9   : > { %8929 = vmatprep.subr.bf16.mxu0 %v14234_v29  ;;  %v1176_v41 = vcombine.high %v10901_v27, %v14323_v11  ;;  %v14327_v8 = vcombine.low %v10205_v59, %v10267_v32  ;;  %v14332_v32 = vld [vmem:[#allocation15_spill] sm:$0xff]  ;;  %v11018_v11 = vld [vmem:[%s9888_s9 + $0xd0] sm:$0xf] }
  0xda   : > { %14324 = vst [vmem:[#allocation74_spill] sm:$0xff] %v10924_v19  ;;  %14325 = vst [vmem:[#allocation75_spill] sm:$0xff] %v10927_v4  ;;  %v10957_v59 = vrot.slane %v14332_v32, %v9973_v48 }
  0xdb   : > { %3897 = vmatmul.mubr.f32.gmra.mrb[16].mxu0 %v3248_v6  ;;  %v7676_v6 = vcombine.low %v1141_v2, %v10876_v52  ;;  %v10940_v40 = vrot.slane %v14327_v8, %v9973_v48  ;;  %v10948_v2 = vrot.slane %v7678_v44, %v9973_v48  ;;  %v7680_v38 = vcombine.low %v1176_v41, %v10924_v19  ;;  %v14347_v19 = vld [vmem:[#allocation53_spill] sm:$0xff] }
  0xdc   : > { %3901 = vmatprep.mubr.f32.mxu0 %v3284_v36  ;;  %v3354_v36 = vcombine.high %v10927_v4, %v10930_v37  ;;  %v3353_v44 = vcombine.low %v10927_v4, %v10930_v37  ;;  %v14336_v8 = vcombine.high %v10318_v39, %v10693_v17  ;;  %v14339_v37 = vcombine.high %v10321_v3, %v10717_v45 }
  0xdd   : > { %14328 = vst [vmem:[#allocation77_spill] sm:$0xff] %v10940_v40  ;;  %v10945_v53 = vrot.slane %v7676_v6, %v9973_v48  ;;  %14330 = vst [vmem:[#allocation79_spill] sm:$0xff] %v10948_v2  ;;  %v10969_v41 = vrot.slane %v10940_v40, %v9973_v48 }
  0xde   : > { %v10975_v18 = vrot.slane %v14336_v8, %v9973_v48  ;;  %v10988_v4 = vrot.slane %v14339_v37, %v9973_v48  ;;  %v10994_v8 = vld [vmem:[%s9888_s9 + $0xd8] sm:$0xff] }
  0xdf   : > { %3902 = vmatmul.mubr.f32.gmra.mrb[18].mxu0 %v3283_v20  ;;  %14329 = vst [vmem:[#allocation78_spill] sm:$0xff] %v10945_v53  ;;  %v10953_v20 = vrot.slane %v14331_v47, %v9973_v48  ;;  %14335 = vst [vmem:[#allocation15_spill] sm:$0xff] %v10969_v41  ;;  %v662_v9 = vrot.slane %v10994_v8, 2 }
  0xe0   : > { %3906 = vmatprep.mubr.f32.mxu0 %v3319_v43  ;;  %v14333_v43 = vcombine.low %v10318_v39, %v10693_v17  ;;  %14337 = vst [vmem:[#allocation80_spill] sm:$0xff] %v10975_v18  ;;  %14340 = vst [vmem:[#allocation82_spill] sm:$0xff] %v10988_v4  ;;  %v14341_v39 = vrot.slane %v10402_v0, 1 }
  0xe2   : > { %v10963_v6 = vrot.slane %v14333_v43, %v9973_v48  ;;  %v10982_v43 = vrot.slane %v7680_v38, %v9973_v48  ;;  %v1349_v17 = vcombine.low %v10402_v0, %v14341_v39  ;;  %v14344_v38 = vld [vmem:[#allocation48_spill] sm:$0xff]  ;;  %v14348_v0 = vcombine.low %v10321_v3, %v10717_v45  ;;  %v14351_v45 = vld [vmem:[#allocation57_spill] sm:$0xff] }
  0xe3   : > { %3907 = vmatmul.mubr.f32.gmra.mrb[20].mxu0 %v3318_v34  ;;  %v3389_v34 = vcombine.high %v10945_v53, %v10948_v2  ;;  %v11005_v42 = vrot.slane %v14344_v38, %v9973_v48  ;;  %v3388_v38 = vcombine.low %v10945_v53, %v10948_v2  ;;  %v599_v2 = vrot.slane %v11018_v11, 1 }
  0xe4   : > { %14334 = vst [vmem:[#allocation18_spill] sm:$0xff] %v10963_v6  ;;  %3911 = vmatprep.mubr.f32.mxu0 %v3354_v36  ;;  %14338 = vst [vmem:[#allocation81_spill] sm:$0xff] %v10982_v43  ;;  %v14342_v36 = vld [vmem:[#allocation41_spill] sm:$0xff]  ;;  %v7682_v37 = vcombine.low %v14346_v51, %v10963_v6  ;;  %v1311_v27 = vcombine.high %v10963_v6, %v14347_v19  ;;  %v11015_v39 = vrot.slane %v14348_v0, %v9973_v48 }
  0xe5   : > { %v11001_v40 = vrot.slane %v14342_v36, %v9973_v48  ;;  %14345 = vst [vmem:[#allocation84_spill] sm:$0xff] %v11005_v42  ;;  %v14350_v36 = vld [vmem:[#allocation55_spill] sm:$0xff]  ;;  %v601_v51 = vrot.slane %v10994_v8, 1  ;;  %v602_v6 = vrot.slane %v10997_v31, 1  ;;  %v3424_v3 = vcombine.high %v10982_v43, %v10969_v41 }
  0xe6   : > { %14349 = vst [vmem:[#allocation85_spill] sm:$0xff] %v11015_v39  ;;  %v1313_v52 = vcombine.high %v10975_v18, %v14350_v36  ;;  %v1346_v0 = vcombine.high %v11015_v39, %v14351_v45  ;;  %v11033_v19 = vrot.slane %v1349_v17, %v9973_v48  ;;  %v3423_v53 = vcombine.low %v10982_v43, %v10969_v41  ;;  %v14353_v36 = vld [vmem:[#allocation49_spill] sm:$0xff] }
  0xe7   : > { %14343 = vst [vmem:[#allocation83_spill] sm:$0xff] %v11001_v40  ;;  %3912 = vmatmul.mubr.f32.gmra.mrb[22].mxu0 %v3353_v44  ;;  %v1348_v44 = vcombine.high %v10988_v4, %v10540_v50  ;;  %v11043_v56 = vrot.slane %v7682_v37, %v9973_v48  ;;  %v7684_v45 = vcombine.low %v1311_v27, %v10975_v18  ;;  %v663_v41 = vrot.slane %v10997_v31, 2 }
  0xe8   : > { %3916 = vmatprep.mubr.f32.mxu0 %v3389_v34  ;;  %14352 = vst [vmem:[#allocation86_spill] sm:$0xff] %v11033_v19  ;;  %v11040_v34 = vrot.slane %v14353_v36, %v9973_v48  ;;  %v7686_v17 = vcombine.low %v1313_v52, %v11015_v39  ;;  %v603_v50 = vsel %vm14201_vm2, %v601_v51, %v602_v6  ;;  %v14356_v27 = vrot.slane %v10413_v21, 1 }
  0xe9   : > { %14355 = vst [vmem:[#allocation88_spill] sm:$0xff] %v11043_v56  ;;  %v3459_v43 = vcombine.high %v11001_v40, %v11005_v42  ;;  %v7688_v37 = vcombine.low %v1346_v0, %v10988_v4  ;;  %v7690_v36 = vcombine.low %v1348_v44, %v11033_v19  ;;  %v3458_v51 = vcombine.low %v11001_v40, %v11005_v42  ;;  %v7554_v44 = vld [vmem:[%s13958_s1 + $0x180] sm:$0xff] }
  0xea   : > { %14354 = vst [vmem:[#allocation87_spill] sm:$0xff] %v11040_v34  ;;  %v3494_v39 = vcombine.high %v11040_v34, %v11043_v56  ;;  %v1451_v0 = vcombine.low %v10994_v8, %v603_v50  ;;  %v3493_v52 = vcombine.low %v11040_v34, %v11043_v56  ;;  %v11081_v42 = vrot.slane %v7684_v45, %v9973_v48 }
  0xeb   : > { %3917 = vmatmul.mubr.f32.gmra.mrb[24].mxu0 %v3388_v38  ;;  %v600_v38 = vsel %vm14201_vm2, %v14356_v27, %v599_v2  ;;  %v7555_v27 = vld [vmem:[%s13958_s1 + $0x188] sm:$0xff]  ;;  %v664_v40 = vsel %vm14195_vm1, %v662_v9, %v663_v41  ;;  %v11088_v19 = vrot.slane %v7688_v37, %v9973_v48  ;;  %v11091_v4 = vrot.slane %v7690_v36, %v9973_v48  ;;  %v7556_v36 = vld [vmem:[%s13958_s1 + $0x190] sm:$0xff] }
  0xec   : > { %3921 = vmatprep.mubr.f32.mxu0 %v3424_v3  ;;  %v14357_v3 = vcombine.low %v10410_v16, %v10748_v25  ;;  %14359 = vst [vmem:[#allocation90_spill] sm:$0xff] %v11081_v42  ;;  %v1400_v45 = vcombine.low %v10413_v21, %v600_v38  ;;  %v14365_v34 = vrot.slane %v11047_v26, 1  ;;  %v8786_v37 = vpack.c.bf16 %v7555_v27, %v7554_v44 }
  0xed   : > { %14361 = vst [vmem:[#allocation92_spill] sm:$0xff] %v11088_v19  ;;  %14362 = vst [vmem:[#allocation93_spill] sm:$0xff] %v11091_v4  ;;  %v1453_v27 = vcombine.high %v664_v40, %v664_v40 }
  0xee   : > { %v11069_v18 = vrot.slane %v14357_v3, %v9973_v48  ;;  %v11084_v3 = vrot.slane %v7686_v17, %v9973_v48  ;;  %v1401_v17 = vcombine.high %v10413_v21, %v600_v38  ;;  %v605_v9 = vsel %vm14201_vm2, %v602_v6, %v14365_v34  ;;  %8787 = vmatpush1.bf16.msra.mxu1 %v8786_v37 }
  0xef   : > { %3922 = vmatmul.mubr.f32.gmra.mrb[26].mxu0 %v3423_v53  ;;  %v14363_v53 = vcombine.high %v10410_v16, %v10748_v25  ;;  %v7557_v16 = vld [vmem:[%s13958_s1 + $0x198] sm:$0xff]  ;;  %v1435_v25 = vcombine.low %v11018_v11, %v599_v2  ;;  %v11114_v38 = vrot.slane %v1451_v0, %v9973_v48  ;;  %v11117_v6 = vrot.slane %v664_v40, %v9973_v48  ;;  %v7559_v0 = vld [vmem:[%s13958_s1 + $0x1a8] sm:$0xff] }
  0xf0   : > { %14358 = vst [vmem:[#allocation89_spill] sm:$0xff] %v11069_v18  ;;  %14360 = vst [vmem:[#allocation91_spill] sm:$0xff] %v11084_v3  ;;  %3926 = vmatprep.mubr.f32.mxu0 %v3459_v43  ;;  %v14135_v43 = vrot.slane %v11047_v26, 2  ;;  %v3529_v34 = vcombine.high %v11081_v42, %v11084_v3  ;;  %v3528_v44 = vcombine.low %v11081_v42, %v11084_v3  ;;  %8788 = vmatprep.subr.bf16.mxu1 %v14234_v29 }
  0xf1   : > { %v11097_v56 = vrot.slane %v14363_v53, %v9973_v48  ;;  %v1452_v53 = vcombine.high %v10994_v8, %v603_v50  ;;  %14366 = vst [vmem:[#allocation95_spill] sm:$0xff] %v11114_v38  ;;  %v11125_v2 = vrot.slane %v11069_v18, %v9973_v48  ;;  %v1486_v50 = vcombine.low %v10997_v31, %v605_v9 }
  0xf2   : > { %v8789_v8 = vpack.c.bf16 %v7557_v16, %v7556_v36  ;;  %v3564_v40 = vcombine.high %v11088_v19, %v11091_v4  ;;  %v11142_v37 = vrot.slane %v1400_v45, %v9973_v48  ;;  %v666_v36 = vsel %vm14195_vm1, %v663_v41, %v14135_v43 }
  0xf3   : > { %14364 = vst [vmem:[#allocation94_spill] sm:$0xff] %v11097_v56  ;;  %3927 = vmatmul.mubr.f32.gmra.mrb[28].mxu0 %v3458_v51  ;;  %14367 = vst [vmem:[#allocation96_spill] sm:$0xff] %v11125_v2  ;;  %v7558_v51 = vld [vmem:[%s13958_s1 + $0x1a0] sm:$0xff]  ;;  %v11148_v16 = vrot.slane %v1401_v17, %v9973_v48  ;;  %v11151_v3 = vrot.slane %v1435_v25, %v9973_v48  ;;  %v11154_v42 = vrot.slane %v1452_v53, %v9973_v48 }
  0xf4   : > { %3931 = vmatprep.mubr.f32.mxu0 %v3494_v39  ;;  %v11139_v39 = vrot.slane %v11097_v56, %v9973_v48  ;;  %v1483_v56 = vcombine.high %v11114_v38, %v11117_v6  ;;  %v11159_v45 = vrot.slane %v1453_v27, %v9973_v48  ;;  %v1487_v18 = vcombine.high %v10997_v31, %v605_v9  ;;  %v7561_v31 = vld [vmem:[%s13958_s1 + $0x1b8] sm:$0xff] }
  0xf5   : > { %14369 = vst [vmem:[#allocation98_spill] sm:$0xff] %v11148_v16  ;;  %8790 = vmatpush1.bf16.msra.mxu1 %v8789_v8  ;;  %v8792_v41 = vpack.c.bf16 %v7559_v0, %v7558_v51  ;;  %v11163_v17 = vrot.slane %v1486_v50, %v9973_v48  ;;  %v11166_v25 = vrot.slane %v666_v36, %v9973_v48  ;;  %v14371_v51 = vrot.slane %v11047_v26, 1 }
  0xf6   : > { %14368 = vst [vmem:[#allocation97_spill] sm:$0xff] %v11139_v39  ;;  %v1488_v53 = vcombine.high %v666_v36, %v666_v36  ;;  %8791 = vmatprep.subr.bf16.mxu1 %v14234_v29  ;;  %v3563_v9 = vcombine.low %v11088_v19, %v11091_v4  ;;  %v11181_v27 = vrot.slane %v11142_v37, %v9973_v48 }
  0xf7   : > { %3932 = vmatmul.mubr.f32.gmra.mrb[30].mxu0 %v3493_v52  ;;  %v7560_v52 = vld [vmem:[%s13958_s1 + $0x1b0] sm:$0xff]  ;;  %v11185_v50 = vrot.slane %v11148_v16, %v9973_v48  ;;  %v7692_v8 = vcombine.low %v11151_v3, %v11114_v38  ;;  %v1521_v0 = vcombine.low %v11047_v26, %v14371_v51  ;;  %v7694_v36 = vcombine.low %v1483_v56, %v11154_v42  ;;  %v7562_v56 = vld [vmem:[%s13958_s1 + $0x1c0] sm:$0xff] }
  0xf8   : > { %3936 = vmatprep.mubr.f32.mxu0 %v3529_v34  ;;  %v3599_v34 = vcombine.high %v11125_v2, %v11139_v39  ;;  %v1485_v43 = vcombine.high %v11154_v42, %v11159_v45  ;;  %v8795_v4 = vpack.c.bf16 %v7561_v31, %v7560_v52  ;;  %v11196_v19 = vrot.slane %v1487_v18, %v9973_v48 }
  0xf9   : > { %14370 = vst [vmem:[#allocation99_spill] sm:$0xff] %v11185_v50  ;;  %8793 = vmatpush1.bf16.msra.mxu1 %v8792_v41  ;;  %v1518_v16 = vcombine.high %v11163_v17, %v11166_v25  ;;  %v11201_v38 = vrot.slane %v1488_v53, %v9973_v48  ;;  %v3598_v18 = vcombine.low %v11125_v2, %v11139_v39 }
  0xfa   : > { %8794 = vmatprep.subr.bf16.mxu1 %v14234_v29  ;;  %v11215_v41 = vrot.slane %v7692_v8, %v9973_v48  ;;  %v11218_v53 = vrot.slane %v7694_v36, %v9973_v48  ;;  %v11221_v52 = vrot.slane %v1521_v0, %v9973_v48  ;;  %v7696_v51 = vcombine.low %v1485_v43, %v11163_v17  ;;  %v7565_v8 = vld [vmem:[%s13958_s1 + $0x1d8] sm:$0xff] }
  0xfb   : > { %3937 = vmatmul.mubr.f32.gmra.mrb[32].mxu0 %v3528_v44  ;;  %v7563_v44 = vld [vmem:[%s13958_s1 + $0x1c8] sm:$0xff]  ;;  %v7698_v39 = vcombine.low %v1518_v16, %v11196_v19  ;;  %v1520_v2 = vcombine.high %v11196_v19, %v11201_v38 }
  0xfc   : > { %3941 = vmatprep.mubr.f32.mxu0 %v3564_v40  ;;  %v3634_v40 = vcombine.high %v11181_v27, %v11185_v50  ;;  %14372 = vst [vmem:[#allocation100_spill] sm:$0xff] %v11218_v53  ;;  %v8798_v31 = vpack.c.bf16 %v7563_v44, %v7562_v56  ;;  %v3669_v43 = vcombine.high %v11215_v41, %v11218_v53  ;;  %v7566_v56 = vld [vmem:[%s13958_s1 + $0x1e0] sm:$0xff]  ;;  %v7567_v44 = vld [vmem:[%s13958_s1 + $0x1e8] sm:$0xff] }
  0xfd   : > { %8796 = vmatpush1.bf16.msra.mxu1 %v8795_v4  ;;  %v3633_v4 = vcombine.low %v11181_v27, %v11185_v50  ;;  %v11242_v0 = vrot.slane %v7698_v39, %v9973_v48  ;;  %v7700_v36 = vcombine.low %v1520_v2, %v11221_v52  ;;  %v3668_v39 = vcombine.low %v11215_v41, %v11218_v53 }
  0xfe   : > { %8797 = vmatprep.subr.bf16.mxu1 %v14234_v29 }
  0xff   : > { %3942 = vmatmul.mubr.f32.gmra.mrb[34].mxu0 %v3563_v9  ;;  %v7564_v9 = vld [vmem:[%s13958_s1 + $0x1d0] sm:$0xff]  ;;  %14374 = vst [vmem:[#allocation102_spill] sm:$0xff] %v11242_v0 }
 0x100   : > { %3946 = vmatprep.mubr.f32.mxu0 %v3599_v34  ;;  %v8801_v16 = vpack.c.bf16 %v7565_v8, %v7564_v9  ;;  %v11239_v34 = vrot.slane %v7696_v51, %v9973_v48  ;;  %v7568_v51 = vld [vmem:[%s13958_s1 + $0x1f0] sm:$0xff]  ;;  %v7569_v9 = vld [vmem:[%s13958_s1 + $0x1f8] sm:$0xff]  ;;  %v700_v8 = vrot.slane %v10890_v28, %v9973_v48 }
 0x101   : > { %8799 = vmatpush1.bf16.msra.mxu1 %v8798_v31  ;;  %v11259_v31 = vrot.slane %v7700_v36, %v9973_v48  ;;  %v8807_v36 = vpack.c.bf16 %v7569_v9, %v7568_v51  ;;  %v735_v9 = vrot.slane %v10915_v1, %v9973_v48 }
 0x102   : > { %14373 = vst [vmem:[#allocation101_spill] sm:$0xff] %v11239_v34  ;;  %8800 = vmatprep.subr.bf16.mxu1 %v14234_v29  ;;  %v3704_v2 = vcombine.high %v11239_v34, %v11242_v0 }
 0x103   : > { %3947 = vmatmul.mubr.f32.gmra.mrb[36].mxu0 %v3598_v18  ;;  %v679_v18 = vcombine.high %v10890_v28, %v10890_v28  ;;  %14375 = vst [vmem:[#allocation103_spill] sm:$0xff] %v11259_v31  ;;  %v7570_v28 = vld [vmem:[%s13958_s1 + $0x200] sm:$0xff] }
 0x104   : > { %3951 = vmatprep.mubr.f32.mxu0 %v3634_v40  ;;  %v8804_v40 = vpack.c.bf16 %v7567_v44, %v7566_v56  ;;  %v3722_v56 = vcombine.high %v11259_v31, %v11259_v31  ;;  %v7571_v44 = vld [vmem:[%s13958_s1 + $0x208] sm:$0xff] }
 0x105   : > { %8802 = vmatpush1.bf16.msra.mxu1 %v8801_v16  ;;  %v714_v16 = vcombine.high %v10915_v1, %v10915_v1  ;;  %v8810_v53 = vpack.c.bf16 %v7571_v44, %v7570_v28  ;;  %v7702_v1 = vld [vmem:[%s13958_s1 + $0x300] sm:$0xff]  ;;  %v2988_v44 = vrot.slane %v735_v9, %v9973_v48 }
 0x106   : > { %8803 = vmatprep.subr.bf16.mxu1 %v14234_v29 }
 0x107   : > { %3952 = vmatmul.mubr.f32.gmra.mrb[38].mxu0 %v3633_v4  ;;  %v707_v4 = vrot.slane %v679_v18, %v9973_v48  ;;  %v14376_v18 = vrot.slane %v10471_v12, 2  ;;  %v7572_v12 = vld [vmem:[%s13958_s1 + $0x210] sm:$0xff] }
 0x108   : > { %3956 = vmatprep.mubr.f32.mxu0 %v3669_v43  ;;  %v3703_v43 = vcombine.low %v11239_v34, %v11242_v0  ;;  %v742_v0 = vrot.slane %v714_v16, %v9973_v48  ;;  %v831_v34 = vcombine.low %v10639_v15, %v10029_v14 }
 0x109   : > { %8805 = vmatpush1.bf16.msra.mxu1 %v8804_v40  ;;  %v796_v40 = vcombine.low %v10599_v49, %v10000_v61  ;;  %v2967_v51 = vrot.slane %v707_v4, %v9973_v48  ;;  %v7703_v4 = vld [vmem:[%s13958_s1 + $0x308] sm:$0xff] }
 0x10a   : > { %8806 = vmatprep.subr.bf16.mxu1 %v14234_v29 }
 0x10b   : > { %3957 = vmatmul.mubr.f32.gmra.mrb[40].mxu0 %v3668_v39  ;;  %v761_v39 = vrot.slane %v14376_v18, %v9973_v48  ;;  %v7655_v16 = vcombine.high %v9997_v60, %v796_v40  ;;  %v829_v18 = vcombine.low %v10610_v62, %v10012_v5  ;;  %v7574_v40 = vld [vmem:[%s13958_s1 + $0x220] sm:$0xff] }
 0x10c   : > { %3961 = vmatprep.mubr.f32.mxu0 %v3704_v2  ;;  %v2953_v2 = vrot.slane %v700_v8, %v9973_v48  ;;  %v7573_v8 = vld [vmem:[%s13958_s1 + $0x218] sm:$0xff] }
 0x10d   : > { %8808 = vmatpush1.bf16.msra.mxu1 %v8807_v36  ;;  %v11311_v36 = vrot.slane %v10576_v35, %v9973_v48  ;;  %v8813_v35 = vpack.c.bf16 %v7573_v8, %v7572_v12  ;;  %v3037_v9 = vrot.slane %v7655_v16, %v9973_v48  ;;  %v7657_v12 = vcombine.high %v10000_v61, %v829_v18  ;;  %v7577_v61 = vld [vmem:[%s13958_s1 + $0x238] sm:$0xff] }
 0x10e   : > { %8809 = vmatprep.subr.bf16.mxu1 %v14234_v29  ;;  %v2970_v28 = vcombine.low %v2953_v2, %v2967_v51  ;;  %v7575_v2 = vld [vmem:[%s13958_s1 + $0x228] sm:$0xff]  ;;  %v7659_v8 = vcombine.high %v10012_v5, %v831_v34  ;;  %v7706_v5 = vld [vmem:[%s13958_s1 + $0x320] sm:$0xff] }
 0x10f   : > { %3962 = vmatmul.mubr.f32.gmra.mrb[42].mxu0 %v3703_v43  ;;  %v7653_v43 = vcombine.low %v761_v39, %v9997_v60  ;;  %v3002_v60 = vrot.slane %v742_v0, %v9973_v48  ;;  %v7705_v0 = vld [vmem:[%s13958_s1 + $0x318] sm:$0xff]  ;;  %v8816_v50 = vpack.c.bf16 %v7575_v2, %v7574_v40  ;;  %v7707_v34 = vld [vmem:[%s13958_s1 + $0x328] sm:$0xff] }
 0x110   : > { %3966 = vmatprep.mubr.f32.mxu0 %v3722_v56  ;;  %v11315_v56 = vrot.slane %v10599_v49, %v9973_v48  ;;  %v8930_v49 = vpack.c.bf16 %v7703_v4, %v7702_v1  ;;  %v14377_v4 = vld [vmem:[#allocation17_spill] sm:$0xff]  ;;  %v7579_v40 = vld [vmem:[%s13958_s1 + $0x248] sm:$0xff] }
 0x111   : > { %8811 = vmatpush1.bf16.msra.mxu1 %v8810_v53  ;;  %v7704_v53 = vld [vmem:[%s13958_s1 + $0x310] sm:$0xff]  ;;  %v3023_v51 = vrot.slane %v7653_v43, %v9973_v48  ;;  %v3005_v1 = vcombine.low %v2988_v44, %v3002_v60  ;;  %v3072_v44 = vrot.slane %v7659_v8, %v9973_v48  ;;  %v7581_v8 = vld [vmem:[%s13958_s1 + $0x258] sm:$0xff] }
 0x112   : > { %v1753_v39 = vcombine.high %v11311_v36, %v11315_v56  ;;  %8812 = vmatprep.subr.bf16.mxu1 %v14234_v29  ;;  %v7576_v43 = vld [vmem:[%s13958_s1 + $0x230] sm:$0xff] }
 0x113   : > { %3967 = vmatmul.mubr.f32.gmra.mrb[44].mxu0 %v11259_v31  ;;  %v848_v31 = vcombine.low %v10658_v24, %v14377_v4  ;;  %v3040_v16 = vcombine.low %v3023_v51, %v3037_v9  ;;  %v8819_v60 = vpack.c.bf16 %v7577_v61, %v7576_v43  ;;  %v14378_v51 = vld [vmem:[#allocation23_spill] sm:$0xff]  ;;  %v1001_v43 = vcombine.low %v10763_v58, %v14293_v13 }
 0x114   : > { %8447 = vmatprep.mubr.msk.f32.mxu0 %vm9642_vm0, %v14235_v7  ;;  %2640 = vmatprep.mubr.f32.mxu1 %v1753_v39  ;;  %v8933_v39 = vpack.c.bf16 %v7705_v0, %v7704_v53  ;;  %v7663_v9 = vcombine.low %v14378_v51, %v14287_v10  ;;  %v7711_v4 = vld [vmem:[%s13958_s1 + $0x348] sm:$0xff]  ;;  %v881_v51 = vcombine.high %v10673_v55, %v14331_v47  ;;  %v7584_v47 = vld [vmem:[%s13958_s1 + $0x270] sm:$0xff] }
 0x115   : > { %8814 = vmatpush1.bf16.msra.mxu1 %v8813_v35  ;;  %v7661_v18 = vcombine.high %v10029_v14, %v848_v31  ;;  %v8936_v35 = vpack.c.bf16 %v7707_v34, %v7706_v5  ;;  %v7708_v14 = vld [vmem:[%s13958_s1 + $0x330] sm:$0xff]  ;;  %v14379_v61 = vld [vmem:[#allocation19_spill] sm:$0xff] }
 0x116   : > { %8815 = vmatprep.subr.bf16.mxu1 %v14234_v29  ;;  %v11407_v5 = vrot.slane %v14379_v61, %v9973_v48 }
 0x117   : > { %8448 = vmatmul.mubr.f32.vlgmr.msra.gmra.mrb[0].mxu0 %v2970_v28  ;;  %v3058_v28 = vrot.slane %v7657_v12, %v9973_v48  ;;  %v3093_v2 = vrot.slane %v7661_v18, %v9973_v48  ;;  %v7580_v12 = vld [vmem:[%s13958_s1 + $0x250] sm:$0xff]  ;;  %v11417_v18 = vrot.slane %v7663_v9, %v9973_v48 }
 0x118   : > { %8931 = vmatpush1.bf16.msra.mxu0 %v8930_v49  ;;  %8450 = vmatprep.mubr.msk.f32.mxu0 %vm9642_vm0, %v14235_v7  ;;  %v7578_v49 = vld [vmem:[%s13958_s1 + $0x240] sm:$0xff]  ;;  %14380 = vst [vmem:[#allocation17_spill] sm:$0xff] %v11407_v5 }
 0x119   : > { %8932 = vmatprep.subr.bf16.mxu0 %v14234_v29  ;;  %8817 = vmatpush1.bf16.msra.mxu1 %v8816_v50  ;;  %v7709_v50 = vld [vmem:[%s13958_s1 + $0x338] sm:$0xff]  ;;  %v3075_v31 = vcombine.low %v3058_v28, %v3072_v44  ;;  %v8822_v53 = vpack.c.bf16 %v7579_v40, %v7578_v49  ;;  %v3110_v34 = vcombine.low %v3093_v2, %v10953_v20  ;;  %v7582_v49 = vld [vmem:[%s13958_s1 + $0x260] sm:$0xff]  ;;  %v7583_v40 = vld [vmem:[%s13958_s1 + $0x268] sm:$0xff] }
 0x11a   : > { %8818 = vmatprep.subr.bf16.mxu1 %v14234_v29  ;;  %v8939_v0 = vpack.c.bf16 %v7709_v50, %v7708_v14  ;;  %v8825_v44 = vpack.c.bf16 %v7581_v8, %v7580_v12  ;;  %14383 = vst [vmem:[#allocation19_spill] sm:$0xff] %v11417_v18  ;;  %v7667_v50 = vcombine.high %v14288_v33, %v1001_v43  ;;  %v7713_v2 = vld [vmem:[%s13958_s1 + $0x358] sm:$0xff] }
 0x11b   : > { %8451 = vmatmul.mubr.f32.gmra.mrb[2].mxu0 %v3005_v1  ;;  %v7710_v1 = vld [vmem:[%s13958_s1 + $0x340] sm:$0xff] }
 0x11c   : > { %8453 = vmatprep.mubr.msk.f32.mxu0 %vm9642_vm0, %v14235_v7  ;;  %8934 = vmatpush1.bf16.msra.mxu0 %v8933_v39  ;;  %v968_v39 = vcombine.low %v10710_v57, %v14288_v33  ;;  %v3145_v33 = vcombine.low %v10957_v59, %v11407_v5  ;;  %v14435_v5 = vld [vmem:[#allocation86_spill] sm:$0xff] }
 0x11d   : > { %8935 = vmatprep.subr.bf16.mxu0 %v14234_v29  ;;  %8820 = vmatpush1.bf16.msra.mxu1 %v8819_v60  ;;  %v8942_v60 = vpack.c.bf16 %v7711_v4, %v7710_v1  ;;  %v7585_v1 = vld [vmem:[%s13958_s1 + $0x278] sm:$0xff] }
 0x11e   : > { %8821 = vmatprep.subr.bf16.mxu1 %v14234_v29  ;;  %v7665_v14 = vcombine.high %v14287_v10, %v968_v39  ;;  %v8828_v10 = vpack.c.bf16 %v7583_v40, %v7582_v49  ;;  %v11458_v39 = vrot.slane %v7667_v50, %v9973_v48  ;;  %v8831_v49 = vpack.c.bf16 %v7585_v1, %v7584_v47  ;;  %v14395_v1 = vld [vmem:[#allocation39_spill] sm:$0xff] }
 0x11f   : > { %8454 = vmatmul.mubr.f32.gmra.mrb[4].mxu0 %v3040_v16  ;;  %v14381_v16 = vld [vmem:[#allocation21_spill] sm:$0xff]  ;;  %v883_v40 = vcombine.high %v10004_v63, %v14332_v32 }
 0x120   : > { %8456 = vmatprep.mubr.msk.f32.mxu0 %vm9642_vm0, %v14235_v7  ;;  %8937 = vmatpush1.bf16.msra.mxu0 %v8936_v35  ;;  %v11412_v28 = vrot.slane %v14381_v16, %v9973_v48  ;;  %v1003_v35 = vcombine.low %v10757_v23, %v14294_v54  ;;  %v11455_v4 = vrot.slane %v7665_v14, %v9973_v48  ;;  %v7717_v32 = vld [vmem:[%s13958_s1 + $0x378] sm:$0xff] }
 0x121   : > { %8938 = vmatprep.subr.bf16.mxu0 %v14234_v29  ;;  %8823 = vmatpush1.bf16.msra.mxu1 %v8822_v53  ;;  %v14384_v53 = vld [vmem:[#allocation32_spill] sm:$0xff]  ;;  %v916_v14 = vcombine.high %v10041_v22, %v14379_v61  ;;  %v1752_v61 = vcombine.low %v11311_v36, %v11315_v56  ;;  %v14389_v36 = vld [vmem:[#allocation33_spill] sm:$0xff] }
 0x122   : > { %14382 = vst [vmem:[#allocation23_spill] sm:$0xff] %v11412_v28  ;;  %8824 = vmatprep.subr.bf16.mxu1 %v14234_v29  ;;  %v3180_v9 = vcombine.low %v11412_v28, %v11417_v18  ;;  %v7669_v8 = vcombine.high %v14293_v13, %v1003_v35  ;;  %14385 = vst [vmem:[#allocation21_spill] sm:$0xff] %v11455_v4  ;;  %v7714_v13 = vld [vmem:[%s13958_s1 + $0x360] sm:$0xff]  ;;  %v7602_v35 = vcombine.low %v10658_v24, %v10673_v55 }
 0x123   : > { %8457 = vmatmul.mubr.f32.gmra.mrb[6].mxu0 %v3075_v31  ;;  %v7712_v31 = vld [vmem:[%s13958_s1 + $0x350] sm:$0xff]  ;;  %14386 = vst [vmem:[#allocation32_spill] sm:$0xff] %v11458_v39  ;;  %v11510_v56 = vrot.slane %v14389_v36, %v9973_v48  ;;  %v14410_v18 = vld [vmem:[#allocation74_spill] sm:$0xff] }
 0x124   : > { %8459 = vmatprep.mubr.msk.f32.mxu0 %vm9642_vm0, %v14235_v7  ;;  %8940 = vmatpush1.bf16.msra.mxu0 %v8939_v0  ;;  %v1020_v0 = vcombine.low %v10791_v30, %v14384_v53  ;;  %v8945_v12 = vpack.c.bf16 %v7713_v2, %v7712_v31  ;;  %v11485_v24 = vrot.slane %v7669_v8, %v9973_v48 }
 0x125   : > { %8941 = vmatprep.subr.bf16.mxu0 %v14234_v29  ;;  %8826 = vmatpush1.bf16.msra.mxu1 %v8825_v44  ;;  %v1765_v44 = vrot.slane %v10610_v62, %v9973_v48  ;;  %v1800_v31 = vrot.slane %v7602_v35, %v9973_v48  ;;  %v7606_v53 = vcombine.low %v883_v40, %v10041_v22  ;;  %v14393_v22 = vld [vmem:[#allocation40_spill] sm:$0xff] }
 0x126   : > { %v7671_v43 = vcombine.high %v14294_v54, %v1020_v0  ;;  %8827 = vmatprep.subr.bf16.mxu1 %v14234_v29  ;;  %v7604_v54 = vcombine.low %v881_v51, %v10004_v63  ;;  %14387 = vst [vmem:[#allocation104_spill] sm:$0xff] %v11485_v24  ;;  %v7716_v63 = vld [vmem:[%s13958_s1 + $0x370] sm:$0xff]  ;;  %v7608_v0 = vcombine.low %v916_v14, %v14290_v46  ;;  %14390 = vst [vmem:[#allocation33_spill] sm:$0xff] %v11510_v56 }
 0x127   : > { %8460 = vmatmul.mubr.f32.gmra.mrb[8].mxu0 %v3110_v34  ;;  %v7715_v34 = vld [vmem:[%s13958_s1 + $0x368] sm:$0xff]  ;;  %v918_v51 = vcombine.high %v14290_v46, %v14381_v16  ;;  %v7718_v46 = vld [vmem:[%s13958_s1 + $0x380] sm:$0xff]  ;;  %v14397_v40 = vld [vmem:[#allocation24_spill] sm:$0xff] }
 0x128   : > { %8462 = vmatprep.mubr.msk.f32.mxu0 %vm9642_vm0, %v14235_v7  ;;  %8943 = vmatpush1.bf16.msra.mxu0 %v8942_v60  ;;  %v1779_v60 = vrot.slane %v10639_v15, %v9973_v48  ;;  %v8948_v62 = vpack.c.bf16 %v7715_v34, %v7714_v13  ;;  %v3215_v15 = vcombine.low %v11455_v4, %v11458_v39  ;;  %v7719_v16 = vld [vmem:[%s13958_s1 + $0x388] sm:$0xff] }
 0x129   : > { %8944 = vmatprep.subr.bf16.mxu0 %v14234_v29  ;;  %8829 = vmatpush1.bf16.msra.mxu1 %v8828_v10  ;;  %v11488_v55 = vrot.slane %v7671_v43, %v9973_v48  ;;  %v1814_v2 = vrot.slane %v7604_v54, %v9973_v48  ;;  %v14391_v10 = vld [vmem:[#allocation29_spill] sm:$0xff]  ;;  %v14396_v43 = vld [vmem:[#allocation35_spill] sm:$0xff]  ;;  %v1835_v54 = vrot.slane %v7606_v53, %v9973_v48 }
 0x12a   : > { %8830 = vmatprep.subr.bf16.mxu1 %v14234_v29  ;;  %v1788_v50 = vcombine.high %v1765_v44, %v1779_v60  ;;  %v7673_v13 = vcombine.low %v14396_v43, %v14395_v1  ;;  %v1787_v34 = vcombine.low %v1765_v44, %v1779_v60  ;;  %v7610_v14 = vcombine.low %v918_v51, %v14397_v40  ;;  %v7721_v51 = vld [vmem:[%s13958_s1 + $0x398] sm:$0xff] }
 0x12b   : > { %8463 = vmatmul.mubr.f32.gmra.mrb[10].mxu0 %v3145_v33  ;;  %14388 = vst [vmem:[#allocation105_spill] sm:$0xff] %v11488_v55  ;;  %v8951_v33 = vpack.c.bf16 %v7717_v32, %v7716_v63  ;;  %v3250_v47 = vcombine.low %v11485_v24, %v11488_v55  ;;  %v1823_v35 = vcombine.high %v1800_v31, %v1814_v2  ;;  %v14398_v63 = vld [vmem:[#allocation43_spill] sm:$0xff]  ;;  %v14399_v32 = vld [vmem:[#allocation70_spill] sm:$0xff] }
 0x12c   : > { %8465 = vmatprep.mubr.msk.f32.mxu0 %vm9642_vm0, %v14235_v7  ;;  %8946 = vmatpush1.bf16.msra.mxu0 %v8945_v12  ;;  %v14394_v12 = vld [vmem:[#allocation69_spill] sm:$0xff]  ;;  %v1173_v55 = vcombine.low %v14399_v32, %v14398_v63  ;;  %v1822_v43 = vcombine.low %v1800_v31, %v1814_v2  ;;  %v1870_v39 = vrot.slane %v7610_v14, %v9973_v48  ;;  %v14408_v24 = vld [vmem:[#allocation62_spill] sm:$0xff] }
 0x12d   : > { %8947 = vmatprep.subr.bf16.mxu0 %v14234_v29  ;;  %8832 = vmatpush1.bf16.msra.mxu1 %v8831_v49  ;;  %v1140_v8 = vcombine.low %v14394_v12, %v14393_v22  ;;  %v1849_v49 = vrot.slane %v7608_v0, %v9973_v48  ;;  %v7720_v0 = vld [vmem:[%s13958_s1 + $0x390] sm:$0xff] }
 0x12e   : > { %9193 = vmatprep.subr.bf16.mxu1 %v14234_v29  ;;  %v8957_v4 = vpack.c.bf16 %v7721_v51, %v7720_v0  ;;  %v1940_v0 = vrot.slane %v10757_v23, %v9973_v48 }
 0x12f   : > { %8466 = vmatmul.mubr.f32.gmra.mrb[12].mxu0 %v3180_v9  ;;  %v11514_v9 = vrot.slane %v14391_v10, %v9973_v48  ;;  %v7675_v60 = vcombine.high %v14395_v1, %v1140_v8  ;;  %v14405_v8 = vld [vmem:[#allocation36_spill] sm:$0xff]  ;;  %v11559_v1 = vrot.slane %v7673_v13, %v9973_v48  ;;  %v1858_v40 = vcombine.high %v1835_v54, %v1849_v49 }
 0x130   : > { %8468 = vmatprep.mubr.msk.f32.mxu0 %vm9642_vm0, %v14235_v7  ;;  %8949 = vmatpush1.bf16.msra.mxu0 %v8948_v62  ;;  %v8954_v62 = vpack.c.bf16 %v7719_v16, %v7718_v46  ;;  %v11556_v16 = vrot.slane %v14405_v8, %v9973_v48 }
 0x131   : > { %14392 = vst [vmem:[#allocation29_spill] sm:$0xff] %v11514_v9  ;;  %8950 = vmatprep.subr.bf16.mxu0 %v14234_v29  ;;  %2641 = vmatmul.mubr.f32.vlgmr.msra.gmra.mrb[0].mxu1 %v1752_v61  ;;  %v14400_v61 = vld [vmem:[#allocation31_spill] sm:$0xff]  ;;  %v3285_v46 = vcombine.low %v11510_v56, %v11514_v9  ;;  %14407 = vst [vmem:[#allocation39_spill] sm:$0xff] %v11559_v1  ;;  %v7677_v9 = vcombine.high %v14393_v22, %v1173_v55  ;;  %v14409_v56 = vld [vmem:[#allocation45_spill] sm:$0xff] }
 0x132   : > { %2645 = vmatprep.mubr.f32.mxu1 %v1788_v50  ;;  %v11539_v44 = vrot.slane %v14400_v61, %v9973_v48  ;;  %v14403_v50 = vld [vmem:[#allocation73_spill] sm:$0xff]  ;;  %14406 = vst [vmem:[#allocation69_spill] sm:$0xff] %v11556_v16  ;;  %v1192_v13 = vcombine.low %v14410_v18, %v14409_v56  ;;  %v11570_v31 = vrot.slane %v7675_v60, %v9973_v48 }
 0x133   : > { %8469 = vmatmul.mubr.f32.gmra.mrb[14].mxu0 %v3215_v15  ;;  %v14402_v15 = vld [vmem:[#allocation44_spill] sm:$0xff]  ;;  %v1857_v55 = vcombine.low %v1835_v54, %v1849_v49  ;;  %v11582_v56 = vrot.slane %v10710_v57, %v9973_v48  ;;  %v11586_v22 = vrot.slane %v10763_v58, %v9973_v48  ;;  %v11600_v58 = vrot.slane %v7677_v9, %v9973_v48  ;;  %v7725_v9 = vld [vmem:[%s13958_s1 + $0x3b8] sm:$0xff] }
 0x134   : > { %8471 = vmatprep.mubr.msk.f32.mxu0 %vm9642_vm0, %v14235_v7  ;;  %8952 = vmatpush1.bf16.msra.mxu0 %v8951_v33  ;;  %14401 = vst [vmem:[#allocation40_spill] sm:$0xff] %v11539_v44  ;;  %v1175_v53 = vcombine.low %v14403_v50, %v14402_v15  ;;  %v14404_v33 = vld [vmem:[#allocation8_spill] sm:$0xff]  ;;  %14411 = vst [vmem:[#allocation35_spill] sm:$0xff] %v11570_v31  ;;  %v3320_v54 = vcombine.low %v11539_v44, %v11556_v16  ;;  %v14434_v44 = vld [vmem:[#allocation58_spill] sm:$0xff] }
 0x135   : > { %8953 = vmatprep.subr.bf16.mxu0 %v14234_v29  ;;  %9201 = vmatpush3.bf16.msra.mxu1 %v14404_v33  ;;  %v1884_v33 = vrot.slane %v14408_v24, %v9973_v48  ;;  %v7722_v24 = vld [vmem:[%s13958_s1 + $0x3a0] sm:$0xff]  ;;  %v14413_v49 = vld [vmem:[#allocation28_spill] sm:$0xff]  ;;  %14414 = vst [vmem:[#allocation24_spill] sm:$0xff] %v11600_v58  ;;  %v1364_v28 = vcombine.low %v14435_v5, %v14434_v44 }
 0x136   : > { %2646 = vmatmul.mubr.f32.gmra.mrb[2].mxu1 %v1787_v34  ;;  %v7679_v2 = vcombine.high %v14398_v63, %v1175_v53  ;;  %v14412_v34 = vld [vmem:[#allocation38_spill] sm:$0xff]  ;;  %9194 = vmatprep.subr.bf16.mxu1 %v14234_v29  ;;  %v3355_v63 = vcombine.low %v11559_v1, %v11570_v31  ;;  %v7728_v16 = vld [vmem:[%s13958_s1 + $0x3d0] sm:$0xff] }
 0x137   : > { %8472 = vmatmul.mubr.f32.gmra.mrb[16].mxu0 %v3250_v47  ;;  %2650 = vmatprep.mubr.f32.mxu1 %v1823_v35  ;;  %v7723_v47 = vld [vmem:[%s13958_s1 + $0x3a8] sm:$0xff]  ;;  %v7612_v35 = vcombine.low %v10791_v30, %v14412_v34  ;;  %v1053_v14 = vcombine.high %v14412_v34, %v14389_v36  ;;  %v1893_v57 = vcombine.high %v1870_v39, %v1884_v33  ;;  %v14422_v34 = vld [vmem:[#allocation53_spill] sm:$0xff]  ;;  %v7730_v44 = vld [vmem:[%s13958_s1 + $0x3e0] sm:$0xff] }
 0x138   : > { %8474 = vmatprep.mubr.msk.f32.mxu0 %vm9642_vm0, %v14235_v7  ;;  %8955 = vmatpush1.bf16.msra.mxu0 %v8954_v62  ;;  %v1055_v62 = vcombine.high %v14413_v49, %v14391_v10  ;;  %v7681_v30 = vcombine.high %v14402_v15, %v1192_v13  ;;  %v8960_v36 = vpack.c.bf16 %v7723_v47, %v7722_v24  ;;  %v7724_v10 = vld [vmem:[%s13958_s1 + $0x3b0] sm:$0xff]  ;;  %v14416_v15 = vld [vmem:[#allocation9_spill] sm:$0xff] }
 0x139   : > { %8956 = vmatprep.subr.bf16.mxu0 %v14234_v29  ;;  %v11606_v60 = vrot.slane %v7679_v2, %v9973_v48  ;;  %v1892_v53 = vcombine.low %v1870_v39, %v1884_v33  ;;  %9202 = vmatpush3.bf16.msra.mxu1 %v14416_v15  ;;  %v1954_v51 = vrot.slane %v7612_v35, %v9973_v48  ;;  %v14418_v33 = vld [vmem:[#allocation34_spill] sm:$0xff] }
 0x13a   : > { %2651 = vmatmul.mubr.f32.gmra.mrb[4].mxu1 %v1822_v43  ;;  %v14417_v43 = vld [vmem:[#allocation30_spill] sm:$0xff]  ;;  %v1090_v13 = vcombine.high %v14418_v33, %v14405_v8  ;;  %v8963_v24 = vpack.c.bf16 %v7725_v9, %v7724_v10  ;;  %v14425_v8 = vld [vmem:[#allocation80_spill] sm:$0xff]  ;;  %v1927_v10 = vcombine.low %v11582_v56, %v11586_v22  ;;  %9195 = vmatprep.subr.bf16.mxu1 %v14234_v29 }
 0x13b   : > { %8475 = vmatmul.mubr.f32.gmra.mrb[18].mxu0 %v3285_v46  ;;  %2655 = vmatprep.mubr.f32.mxu1 %v1858_v40  ;;  %14415 = vst [vmem:[#allocation43_spill] sm:$0xff] %v11606_v60  ;;  %v7614_v46 = vcombine.low %v1053_v14, %v14413_v49  ;;  %v7616_v40 = vcombine.low %v1055_v62, %v14417_v43  ;;  %v14419_v2 = vld [vmem:[#allocation46_spill] sm:$0xff]  ;;  %v14424_v14 = vld [vmem:[#allocation55_spill] sm:$0xff]  ;;  %v14426_v62 = vld [vmem:[#allocation57_spill] sm:$0xff] }
 0x13c   : > { %8477 = vmatprep.mubr.msk.f32.mxu0 %vm9642_vm0, %v14235_v7  ;;  %8958 = vmatpush1.bf16.msra.mxu0 %v8957_v4  ;;  %v1928_v4 = vcombine.high %v11582_v56, %v11586_v22  ;;  %v1088_v39 = vcombine.high %v14417_v43, %v14400_v61  ;;  %v11631_v23 = vrot.slane %v14419_v2, %v9973_v48  ;;  %v14423_v61 = vld [vmem:[#allocation52_spill] sm:$0xff]  ;;  %v7727_v49 = vld [vmem:[%s13958_s1 + $0x3c8] sm:$0xff] }
 0x13d   : > { %8959 = vmatprep.subr.bf16.mxu0 %v14234_v29  ;;  %v3390_v47 = vcombine.low %v11600_v58, %v11606_v60  ;;  %v7683_v35 = vcombine.low %v14423_v61, %v14422_v34  ;;  %v1963_v9 = vcombine.high %v1940_v0, %v1954_v51  ;;  %v1975_v15 = vrot.slane %v7614_v46, %v9973_v48  ;;  %v14428_v60 = vld [vmem:[#allocation37_spill] sm:$0xff]  ;;  %v14429_v58 = vld [vmem:[#allocation42_spill] sm:$0xff]  ;;  %v14430_v56 = vld [vmem:[#allocation47_spill] sm:$0xff] }
 0x13e   : > { %2656 = vmatmul.mubr.f32.gmra.mrb[6].mxu1 %v1857_v55  ;;  %14420 = vst [vmem:[#allocation70_spill] sm:$0xff] %v11631_v23  ;;  %v11636_v55 = vrot.slane %v7681_v30, %v9973_v48  ;;  %v1989_v43 = vrot.slane %v7616_v40, %v9973_v48  ;;  %v7618_v61 = vcombine.low %v1088_v39, %v14418_v33  ;;  %v14432_v39 = vld [vmem:[#allocation60_spill] sm:$0xff]  ;;  %v14433_v33 = vld [vmem:[#allocation82_spill] sm:$0xff] }
 0x13f   : > { %8478 = vmatmul.mubr.f32.gmra.mrb[20].mxu0 %v3320_v54  ;;  %2660 = vmatprep.mubr.f32.mxu1 %v1893_v57  ;;  %v1312_v54 = vcombine.low %v14425_v8, %v14424_v14  ;;  %v7726_v57 = vld [vmem:[%s13958_s1 + $0x3c0] sm:$0xff]  ;;  %v7620_v31 = vcombine.low %v1090_v13, %v14428_v60  ;;  %v11665_v22 = vrot.slane %v14430_v56, %v9973_v48 }
 0x140   : > { %8480 = vmatprep.mubr.msk.f32.mxu0 %vm9642_vm0, %v14235_v7  ;;  %8961 = vmatpush1.bf16.msra.mxu0 %v8960_v36  ;;  %14421 = vst [vmem:[#allocation31_spill] sm:$0xff] %v11636_v55  ;;  %v14427_v36 = vld [vmem:[#allocation85_spill] sm:$0xff]  ;;  %v11672_v40 = vrot.slane %v7683_v35, %v9973_v48  ;;  %v1347_v13 = vcombine.low %v14433_v33, %v14432_v39 }
 0x141   : > { %8962 = vmatprep.subr.bf16.mxu0 %v14234_v29  ;;  %v1345_v30 = vcombine.low %v14427_v36, %v14426_v62  ;;  %v7685_v60 = vcombine.high %v14422_v34, %v1312_v54  ;;  %v1962_v34 = vcombine.low %v1940_v0, %v1954_v51  ;;  %v1998_v54 = vcombine.high %v1975_v15, %v1989_v43 }
 0x142   : > { %2661 = vmatmul.mubr.f32.gmra.mrb[8].mxu1 %v1892_v53  ;;  %v11661_v53 = vrot.slane %v14429_v58, %v9973_v48  ;;  %v2024_v1 = vrot.slane %v7620_v31, %v9973_v48  ;;  %v7689_v31 = vcombine.high %v14426_v62, %v1347_v13 }
 0x143   : > { %8481 = vmatmul.mubr.f32.gmra.mrb[22].mxu0 %v3355_v63  ;;  %2665 = vmatprep.mubr.f32.mxu1 %v1928_v4  ;;  %v8966_v63 = vpack.c.bf16 %v7727_v49, %v7726_v57  ;;  %v14431_v4 = vld [vmem:[#allocation50_spill] sm:$0xff]  ;;  %v3425_v57 = vcombine.low %v11636_v55, %v11631_v23  ;;  %v7687_v35 = vcombine.high %v14424_v14, %v1345_v30  ;;  %v660_v23 = vrot.slane %v11018_v11, 2  ;;  %v7731_v11 = vld [vmem:[%s13958_s1 + $0x3e8] sm:$0xff] }
 0x144   : > { %8483 = vmatprep.mubr.msk.f32.mxu0 %vm9642_vm0, %v14235_v7  ;;  %8964 = vmatpush1.bf16.msra.mxu0 %v8963_v24  ;;  %v11669_v46 = vrot.slane %v14431_v4, %v9973_v48  ;;  %v7729_v24 = vld [vmem:[%s13958_s1 + $0x3d8] sm:$0xff]  ;;  %v2010_v49 = vrot.slane %v7618_v61, %v9973_v48  ;;  %v3460_v0 = vcombine.low %v11661_v53, %v11665_v22  ;;  %v14436_v14 = vld [vmem:[#allocation67_spill] sm:$0xff] }
 0x145   : > { %8965 = vmatprep.subr.bf16.mxu0 %v14234_v29  ;;  %v8969_v55 = vpack.c.bf16 %v7729_v24, %v7728_v16  ;;  %v1997_v16 = vcombine.low %v1975_v15, %v1989_v43  ;;  %v2045_v30 = vrot.slane %v14436_v14, %v9973_v48  ;;  %v11715_v62 = vrot.slane %v7687_v35, %v9973_v48  ;;  %v14437_v61 = vld [vmem:[#allocation77_spill] sm:$0xff]  ;;  %v14438_v43 = vld [vmem:[#allocation56_spill] sm:$0xff] }
 0x146   : > { %2666 = vmatmul.mubr.f32.gmra.mrb[10].mxu1 %v1927_v10  ;;  %v3495_v51 = vcombine.low %v11669_v46, %v11672_v40  ;;  %v2059_v10 = vrot.slane %v14394_v12, %v9973_v48  ;;  %v7691_v15 = vcombine.high %v14432_v39, %v1364_v28  ;;  %v8972_v12 = vpack.c.bf16 %v7731_v11, %v7730_v44  ;;  %v7733_v28 = vld [vmem:[%s13958_s1 + $0x3f8] sm:$0xff] }
 0x147   : > { %8484 = vmatmul.mubr.f32.gmra.mrb[24].mxu0 %v3390_v47  ;;  %2670 = vmatprep.mubr.f32.mxu1 %v1963_v9  ;;  %v11699_v47 = vrot.slane %v7685_v60, %v9973_v48  ;;  %v2033_v9 = vcombine.high %v2010_v49, %v2024_v1  ;;  %v1367_v60 = vcombine.high %v14438_v43, %v14438_v43  ;;  %v14439_v24 = vrot.slane %v10413_v21, 2 }
 0x148   : > { %8486 = vmatprep.mubr.msk.f32.mxu0 %vm9642_vm0, %v14235_v7  ;;  %8967 = vmatpush1.bf16.msra.mxu0 %v8966_v63  ;;  %v1225_v63 = vcombine.high %v14437_v61, %v14419_v2  ;;  %v11725_v13 = vrot.slane %v7689_v31, %v9973_v48  ;;  %v7732_v2 = vld [vmem:[%s13958_s1 + $0x3f0] sm:$0xff]  ;;  %v2032_v39 = vcombine.low %v2010_v49, %v2024_v1  ;;  %v14441_v31 = vld [vmem:[#allocation41_spill] sm:$0xff] }
 0x149   : > { %8968 = vmatprep.subr.bf16.mxu0 %v14234_v29  ;;  %v2068_v35 = vcombine.high %v2045_v30, %v2059_v10  ;;  %v2080_v21 = vrot.slane %v14399_v32, %v9973_v48  ;;  %v1227_v1 = vcombine.high %v14441_v31, %v14429_v58  ;;  %v14442_v49 = vld [vmem:[#allocation48_spill] sm:$0xff]  ;;  %v3530_v32 = vcombine.low %v11699_v47, %v11715_v62 }
 0x14a   : > { %2671 = vmatmul.mubr.f32.gmra.mrb[12].mxu1 %v1962_v34  ;;  %v2094_v34 = vrot.slane %v14403_v50, %v9973_v48  ;;  %v7624_v44 = vcombine.low %v1225_v63, %v14441_v31  ;;  %v1260_v11 = vcombine.high %v14442_v49, %v14430_v56  ;;  %v11754_v50 = vrot.slane %v7691_v15, %v9973_v48 }
 0x14b   : > { %8487 = vmatmul.mubr.f32.gmra.mrb[26].mxu0 %v3425_v57  ;;  %2675 = vmatprep.mubr.f32.mxu1 %v1998_v54  ;;  %v661_v57 = vsel %vm14195_vm1, %v14439_v24, %v660_v23  ;;  %v7622_v54 = vcombine.low %v14410_v18, %v14437_v61  ;;  %v8975_v18 = vpack.c.bf16 %v7733_v28, %v7732_v2  ;;  %v14444_v61 = vld [vmem:[#allocation49_spill] sm:$0xff]  ;;  %v14448_v2 = vld [vmem:[#allocation11_spill] sm:$0xff] }
 0x14c   : > { %8489 = vmatprep.mubr.msk.f32.mxu0 %vm9642_vm0, %v14235_v7  ;;  %8970 = vmatpush1.bf16.msra.mxu0 %v8969_v55  ;;  %v14440_v55 = vld [vmem:[#allocation10_spill] sm:$0xff]  ;;  %14443 = vst [vmem:[#allocation44_spill] sm:$0xff] %v11754_v50  ;;  %v11760_v58 = vrot.slane %v660_v23, %v9973_v48  ;;  %v2067_v56 = vcombine.low %v2045_v30, %v2059_v10 }
 0x14d   : > { %8971 = vmatprep.subr.bf16.mxu0 %v14234_v29  ;;  %9203 = vmatpush3.bf16.msra.mxu1 %v14440_v55  ;;  %v2103_v14 = vcombine.high %v2080_v21, %v2094_v34  ;;  %v1262_v63 = vcombine.high %v14444_v61, %v14431_v4  ;;  %v2129_v15 = vrot.slane %v7624_v44, %v9973_v48 }
 0x14e   : > { %2676 = vmatmul.mubr.f32.gmra.mrb[14].mxu1 %v1997_v16  ;;  %v1402_v16 = vcombine.high %v661_v57, %v661_v57  ;;  %9196 = vmatprep.subr.bf16.mxu1 %v14234_v29  ;;  %v7626_v43 = vcombine.low %v1227_v1, %v14442_v49  ;;  %v7628_v23 = vcombine.low %v1260_v11, %v14444_v61  ;;  %v14452_v11 = vld [vmem:[#allocation13_spill] sm:$0xff] }
 0x14f   : > { %8490 = vmatmul.mubr.f32.gmra.mrb[28].mxu0 %v3460_v0  ;;  %2680 = vmatprep.mubr.f32.mxu1 %v2033_v9  ;;  %v11757_v0 = vrot.slane %v1367_v60, %v9973_v48  ;;  %v2115_v9 = vrot.slane %v7622_v54, %v9973_v48  ;;  %v14445_v60 = vld [vmem:[#allocation59_spill] sm:$0xff]  ;;  %v11777_v10 = vrot.slane %v661_v57, %v9973_v48 }
 0x150   : > { %8492 = vmatprep.mubr.msk.f32.mxu0 %vm9642_vm0, %v14235_v7  ;;  %8973 = vmatpush1.bf16.msra.mxu0 %v8972_v12  ;;  %v11774_v30 = vrot.slane %v14445_v60, %v9973_v48  ;;  %v1484_v4 = vcombine.low %v11154_v42, %v11159_v45  ;;  %v11788_v24 = vrot.slane %v1402_v16, %v9973_v48  ;;  %v14453_v16 = vld [vmem:[#allocation18_spill] sm:$0xff] }
 0x151   : > { %8974 = vmatprep.subr.bf16.mxu0 %v14234_v29  ;;  %v11785_v12 = vrot.slane %v11757_v0, %v9973_v48  ;;  %9204 = vmatpush3.bf16.msra.mxu1 %v14448_v2  ;;  %v7693_v57 = vcombine.low %v11760_v58, %v11117_v6  ;;  %v2102_v28 = vcombine.low %v2080_v21, %v2094_v34 }
 0x152   : > { %2681 = vmatmul.mubr.f32.gmra.mrb[16].mxu1 %v2032_v39  ;;  %14446 = vst [vmem:[#allocation73_spill] sm:$0xff] %v11774_v30  ;;  %v14449_v39 = vld [vmem:[#allocation51_spill] sm:$0xff]  ;;  %9197 = vmatprep.subr.bf16.mxu1 %v14234_v29  ;;  %v2150_v54 = vrot.slane %v7626_v43, %v9973_v48  ;;  %v2164_v31 = vrot.slane %v7628_v23, %v9973_v48  ;;  %v14456_v23 = vrot.slane %v11047_v26, 2 }
 0x153   : > { %8493 = vmatmul.mubr.f32.gmra.mrb[30].mxu0 %v3495_v51  ;;  %2685 = vmatprep.mubr.f32.mxu1 %v2068_v35  ;;  %v3565_v51 = vcombine.low %v11725_v13, %v11754_v50  ;;  %14447 = vst [vmem:[#allocation8_spill] sm:$0xff] %v11785_v12  ;;  %v7630_v55 = vcombine.low %v1262_v63, %v14449_v39  ;;  %v11842_v39 = vld [vmem:[%s9888_s9 + $0xf8] sm:$0xff] }
 0x154   : > { %8495 = vmatprep.mubr.msk.f32.mxu0 %vm9642_vm0, %v14235_v7  ;;  %8976 = vmatpush1.bf16.msra.mxu0 %v8975_v18  ;;  %v2138_v35 = vcombine.high %v2115_v9, %v2129_v15  ;;  %v7695_v44 = vcombine.high %v11117_v6, %v1484_v4  ;;  %v1517_v1 = vcombine.low %v11163_v17, %v11166_v25 }
 0x155   : > { %8977 = vmatprep.subr.bf16.mxu0 %v14234_v29  ;;  %v1519_v21 = vcombine.low %v11196_v19, %v11201_v38  ;;  %v11807_v34 = vrot.slane %v11777_v10, %v9973_v48  ;;  %v11811_v49 = vrot.slane %v11788_v24, %v9973_v48  ;;  %9205 = vmatpush3.bf16.msra.mxu1 %v14452_v11 }
 0x156   : > { %2686 = vmatmul.mubr.f32.gmra.mrb[18].mxu1 %v2067_v56  ;;  %v2185_v18 = vrot.slane %v7630_v55, %v9973_v48  ;;  %v2199_v56 = vrot.slane %v14453_v16, %v9973_v48  ;;  %9198 = vmatprep.subr.bf16.mxu1 %v14234_v29  ;;  %v11821_v61 = vrot.slane %v7693_v57, %v9973_v48  ;;  %v14457_v57 = vld [vmem:[#allocation14_spill] sm:$0xff]  ;;  %v607_v16 = vrot.slane %v11842_v39, 1 }
 0x157   : > { %8496 = vmatmul.mubr.f32.gmra.mrb[32].mxu0 %v3530_v32  ;;  %2690 = vmatprep.mubr.f32.mxu1 %v2103_v14  ;;  %14450 = vst [vmem:[#allocation36_spill] sm:$0xff] %v11807_v34  ;;  %14451 = vst [vmem:[#allocation62_spill] sm:$0xff] %v11811_v49  ;;  %v2137_v32 = vcombine.low %v2115_v9, %v2129_v15  ;;  %v3600_v14 = vcombine.low %v11774_v30, %v11785_v12  ;;  %v14475_v30 = vld [vmem:[#allocation27_spill] sm:$0xff] }
 0x158   : > { %8498 = vmatprep.mubr.msk.f32.mxu0 %vm9642_vm0, %v14235_v7  ;;  %14454 = vst [vmem:[#allocation45_spill] sm:$0xff] %v11821_v61  ;;  %v2173_v63 = vcombine.high %v2150_v54, %v2164_v31  ;;  %v11826_v9 = vrot.slane %v7695_v44, %v9973_v48  ;;  %v7697_v15 = vcombine.high %v11159_v45, %v1517_v1  ;;  %v14458_v44 = vld [vmem:[#allocation89_spill] sm:$0xff]  ;;  %v14459_v1 = vld [vmem:[#allocation94_spill] sm:$0xff] }
 0x159   : > { %v7699_v43 = vcombine.high %v11166_v25, %v1519_v21  ;;  %v11833_v4 = vrot.slane %v14456_v23, %v9973_v48  ;;  %v2172_v2 = vcombine.low %v2150_v54, %v2164_v31  ;;  %9206 = vmatpush3.bf16.msra.mxu1 %v14457_v57  ;;  %v2208_v55 = vcombine.high %v2185_v18, %v2199_v56  ;;  %v14462_v23 = vld [vmem:[#allocation16_spill] sm:$0xff] }
 0x15a   : > { %2691 = vmatmul.mubr.f32.gmra.mrb[20].mxu1 %v2102_v28  ;;  %14455 = vst [vmem:[#allocation74_spill] sm:$0xff] %v11826_v9  ;;  %v11839_v28 = vld [vmem:[%s9888_s9 + $0xf0] sm:$0xff]  ;;  %v7632_v26 = vcombine.low %v14435_v5, %v14458_v44  ;;  %9199 = vmatprep.subr.bf16.mxu1 %v14234_v29  ;;  %v2234_v54 = vrot.slane %v14427_v36, %v9973_v48 }
 0x15b   : > { %8499 = vmatmul.mubr.f32.gmra.mrb[34].mxu0 %v3565_v51  ;;  %2695 = vmatprep.mubr.f32.mxu1 %v2138_v35  ;;  %v3635_v51 = vcombine.low %v11807_v34, %v11811_v49  ;;  %v2220_v35 = vrot.slane %v14425_v8, %v9973_v48  ;;  %v1397_v31 = vcombine.high %v14458_v44, %v14445_v60  ;;  %v667_v57 = vrot.slane %v11839_v28, 2 }
 0x15c   : > { %8501 = vmatprep.mubr.msk.f32.mxu0 %vm9642_vm0, %v14235_v7  ;;  %v1399_v21 = vcombine.high %v14459_v1, %v11757_v0  ;;  %v3670_v5 = vcombine.low %v11821_v61, %v11826_v9  ;;  %v11860_v8 = vrot.slane %v7697_v15, %v9973_v48  ;;  %v11863_v11 = vrot.slane %v7699_v43, %v9973_v48  ;;  %v11874_v15 = vld [vmem:[%s9888_s9 + $0x100] sm:$0xf] }
 0x15d   : > { %v1536_v36 = vcombine.low %v11221_v52, %v11833_v4  ;;  %9207 = vmatpush3.bf16.msra.mxu1 %v14462_v23  ;;  %v2269_v43 = vrot.slane %v7632_v26, %v9973_v48  ;;  %v1432_v44 = vcombine.high %v11142_v37, %v11777_v10  ;;  %v14463_v9 = vld [vmem:[#allocation98_spill] sm:$0xff]  ;;  %v668_v23 = vrot.slane %v11842_v39, 2 }
 0x15e   : > { %2696 = vmatmul.mubr.f32.gmra.mrb[22].mxu1 %v2137_v32  ;;  %14460 = vst [vmem:[#allocation38_spill] sm:$0xff] %v11860_v8  ;;  %14461 = vst [vmem:[#allocation28_spill] sm:$0xff] %v11863_v11  ;;  %v606_v32 = vrot.slane %v11839_v28, 1  ;;  %v1434_v49 = vcombine.high %v14463_v9, %v11788_v24  ;;  %9200 = vmatprep.subr.bf16.mxu1 %v14234_v29 }
 0x15f   : > { %8502 = vmatmul.mubr.f32.gmra.mrb[36].mxu0 %v3600_v14  ;;  %2700 = vmatprep.mubr.f32.mxu1 %v2173_v63  ;;  %v2207_v14 = vcombine.low %v2185_v18, %v2199_v56  ;;  %v2255_v63 = vrot.slane %v14433_v33, %v9973_v48  ;;  %v2243_v33 = vcombine.high %v2220_v35, %v2234_v54 }
 0x160   : > { %8504 = vmatprep.mubr.msk.f32.mxu0 %vm9642_vm0, %v14235_v7  ;;  %v7634_v18 = vcombine.low %v1397_v31, %v14459_v1  ;;  %v7636_v56 = vcombine.low %v1399_v21, %v11142_v37  ;;  %v7701_v26 = vcombine.high %v11201_v38, %v1536_v36  ;;  %v608_v61 = vsel %vm14201_vm2, %v606_v32, %v607_v16 }
 0x161   : > { %v2242_v31 = vcombine.low %v2220_v35, %v2234_v54  ;;  %v2278_v12 = vcombine.high %v2255_v63, %v2269_v43  ;;  %v7638_v21 = vcombine.low %v1432_v44, %v14463_v9  ;;  %v7640_v34 = vcombine.low %v1434_v49, %v11151_v3 }
 0x162   : > { %2701 = vmatmul.mubr.f32.gmra.mrb[24].mxu1 %v2172_v2  ;;  %v3705_v2 = vcombine.low %v11860_v8, %v11863_v11  ;;  %v2290_v50 = vrot.slane %v7634_v18, %v9973_v48  ;;  %v2304_v11 = vrot.slane %v7636_v56, %v9973_v48  ;;  %v669_v36 = vsel %vm14195_vm1, %v667_v57, %v668_v23  ;;  %v14467_v56 = vld [vmem:[#allocation61_spill] sm:$0xff] }
 0x163   : > { %8505 = vmatmul.mubr.f32.gmra.mrb[38].mxu0 %v3635_v51  ;;  %2705 = vmatprep.mubr.f32.mxu1 %v2208_v55  ;;  %v14182_v51 = vrot.slane %v11874_v15, 1  ;;  %v14464_v55 = vld [vmem:[#allocation22_spill] sm:$0xff]  ;;  %v1585_v32 = vcombine.low %v11839_v28, %v608_v61  ;;  %v14181_v35 = vrot.slane %v11874_v15, 2  ;;  %v2277_v49 = vcombine.low %v2255_v63, %v2269_v43  ;;  %v14469_v8 = vld [vmem:[#allocation25_spill] sm:$0xff] }
 0x164   : > { %8507 = vmatprep.mubr.msk.f32.mxu0 %vm9642_vm0, %v14235_v7  ;;  %9208 = vmatpush3.bf16.msra.mxu1 %v14464_v55  ;;  %v11908_v44 = vrot.slane %v669_v36, %v9973_v48  ;;  %v11911_v57 = vrot.slane %v7701_v26, %v9973_v48  ;;  %v1587_v18 = vcombine.high %v669_v36, %v669_v36  ;;  %v7735_v26 = vld [vmem:[%s13958_s1 + $0x408] sm:$0xff] }
 0x165   : > { %v610_v54 = vsel %vm14201_vm2, %v607_v16, %v14182_v51  ;;  %v14466_v16 = vld [vmem:[#allocation63_spill] sm:$0xff]  ;;  %v1586_v43 = vcombine.high %v11839_v28, %v608_v61  ;;  %v2374_v28 = vrot.slane %v11154_v42, %v9973_v48 }
 0x166   : > { %2706 = vmatmul.mubr.f32.gmra.mrb[26].mxu1 %v2207_v14  ;;  %v2339_v14 = vrot.slane %v7640_v34, %v9973_v48  ;;  %14465 = vst [vmem:[#allocation9_spill] sm:$0xff] %v11911_v57  ;;  %v4288_v63 = vcombine.high %v14467_v56, %v14466_v16  ;;  %v11919_v34 = vrot.slane %v1585_v32, %v9973_v48 }
 0x167   : > { %8508 = vmatmul.mubr.f32.gmra.mrb[40].mxu0 %v3670_v5  ;;  %2710 = vmatprep.mubr.f32.mxu1 %v2243_v33  ;;  %v2325_v5 = vrot.slane %v7638_v21, %v9973_v48  ;;  %v2313_v33 = vcombine.high %v2290_v50, %v2304_v11  ;;  %v1620_v55 = vcombine.low %v11842_v39, %v610_v54 }
 0x168   : > { %8510 = vmatprep.mubr.msk.f32.mxu0 %vm9642_vm0, %v14235_v7  ;;  %v4287_v21 = vcombine.low %v14467_v56, %v14466_v16  ;;  %v1617_v32 = vcombine.high %v11919_v34, %v11908_v44  ;;  %v14470_v16 = vld [vmem:[#allocation64_spill] sm:$0xff]  ;;  %v1621_v56 = vcombine.high %v11842_v39, %v610_v54 }
 0x169   : > { %v2348_v36 = vcombine.high %v2325_v5, %v2339_v14 }
 0x16a   : > { %2711 = vmatmul.mubr.f32.gmra.mrb[28].mxu1 %v2242_v31  ;;  %v14468_v31 = vld [vmem:[#allocation95_spill] sm:$0xff] }
 0x16b   : > { %8511 = vmatmul.mubr.f32.gmra.mrb[42].mxu0 %v3705_v2  ;;  %2715 = vmatprep.mubr.f32.mxu1 %v2278_v12  ;;  %v671_v2 = vsel %vm14195_vm1, %v668_v23, %v14181_v35  ;;  %v7734_v12 = vld [vmem:[%s13958_s1 + $0x400] sm:$0xff]  ;;  %v2360_v61 = vrot.slane %v14468_v31, %v9973_v48  ;;  %v2312_v23 = vcombine.low %v2290_v50, %v2304_v11 }
 0x16c   : > { %8513 = vmatprep.mubr.msk.f32.mxu0 %vm9642_vm0, %v14235_v7  ;;  %v11941_v35 = vrot.slane %v1587_v18, %v9973_v48  ;;  %v11944_v31 = vrot.slane %v671_v2, %v9973_v48  ;;  %v1622_v51 = vcombine.high %v671_v2, %v671_v2  ;;  %v8978_v42 = vpack.c.bf16 %v7735_v26, %v7734_v12  ;;  %v7737_v18 = vld [vmem:[%s13958_s1 + $0x418] sm:$0xff] }
 0x16d   : > { %v4290_v50 = vcombine.low %v14470_v16, %v14469_v8  ;;  %v11951_v11 = vrot.slane %v1586_v43, %v9973_v48  ;;  %v2347_v2 = vcombine.low %v2325_v5, %v2339_v14  ;;  %v2383_v12 = vcombine.high %v2360_v61, %v2374_v28 }
 0x16e   : > { %2716 = vmatmul.mubr.f32.gmra.mrb[30].mxu1 %v2277_v49  ;;  %v4291_v49 = vcombine.high %v14470_v16, %v14469_v8  ;;  %v2395_v8 = vrot.slane %v11163_v17, %v9973_v48  ;;  %v2409_v43 = vrot.slane %v11196_v19, %v9973_v48  ;;  %v7642_v26 = vcombine.low %v11221_v52, %v11919_v34  ;;  %v14471_v17 = vld [vmem:[#allocation20_spill] sm:$0xff]  ;;  %v14472_v19 = vld [vmem:[#allocation26_spill] sm:$0xff] }
 0x16f   : > { %8514 = vmatmul.mubr.f32.gmra.mrb[44].mxu0 %v11911_v57  ;;  %2720 = vmatprep.mubr.f32.mxu1 %v2313_v33  ;;  %v7736_v33 = vld [vmem:[%s13958_s1 + $0x410] sm:$0xff]  ;;  %v7644_v16 = vcombine.low %v1617_v32, %v11951_v11  ;;  %v1619_v39 = vcombine.high %v11951_v11, %v11941_v35  ;;  %v11975_v5 = vrot.slane %v1622_v51, %v9973_v48  ;;  %v7739_v51 = vld [vmem:[%s13958_s1 + $0x428] sm:$0xff]  ;;  %v14474_v57 = vld [vmem:[#allocation65_spill] sm:$0xff] }
 0x170   : > { %4631 = vmatprep.mubr.f32.mxu0 %v4288_v63  ;;  %v11961_v63 = vrot.slane %v1620_v55, %v9973_v48  ;;  %v4294_v14 = vcombine.high %v14472_v19, %v14471_v17  ;;  %v8981_v55 = vpack.c.bf16 %v7737_v18, %v7736_v33  ;;  %v4293_v52 = vcombine.low %v14472_v19, %v14471_v17 }
 0x171   : > { %v2430_v33 = vrot.slane %v7642_v26, %v9973_v48  ;;  %v2444_v18 = vrot.slane %v7644_v16, %v9973_v48  ;;  %v2417_v26 = vcombine.low %v2395_v8, %v2409_v43 }
 0x172   : > { %2721 = vmatmul.mubr.f32.gmra.mrb[32].mxu1 %v2312_v23  ;;  %v1652_v54 = vcombine.high %v11961_v63, %v11944_v31  ;;  %v11989_v23 = vrot.slane %v1621_v56, %v9973_v48  ;;  %v7646_v17 = vcombine.low %v1619_v39, %v11961_v63 }
 0x173   : > { %4632 = vmatmul.mubr.f32.vlgmr.msra.gmra.mrb[0].mxu0 %v4287_v21  ;;  %2725 = vmatprep.mubr.f32.mxu1 %v2348_v36  ;;  %v7738_v21 = vld [vmem:[%s13958_s1 + $0x420] sm:$0xff]  ;;  %v14473_v36 = vrot.slane %v11874_v15, 1  ;;  %v2453_v16 = vcombine.high %v2430_v33, %v2444_v18 }
 0x174   : > { %8979 = vmatpush3.bf16.msra.mxu0 %v8978_v42  ;;  %4636 = vmatprep.mubr.f32.mxu0 %v4291_v49  ;;  %v2382_v42 = vcombine.low %v2360_v61, %v2374_v28  ;;  %v2418_v49 = vcombine.high %v2395_v8, %v2409_v43  ;;  %v7648_v19 = vcombine.low %v1652_v54, %v11989_v23  ;;  %v7740_v28 = vld [vmem:[%s13958_s1 + $0x430] sm:$0xff] }
 0x175   : > { %8980 = vmatprep.subr.bf16.mxu0 %v14234_v29  ;;  %v1655_v32 = vcombine.low %v11874_v15, %v14473_v36  ;;  %v1654_v56 = vcombine.high %v11989_v23, %v11975_v5  ;;  %v4297_v36 = vcombine.high %v14475_v30, %v14474_v57  ;;  %v8984_v61 = vpack.c.bf16 %v7739_v51, %v7738_v21  ;;  %v14477_v21 = vld [vmem:[#allocation66_spill] sm:$0xff] }
 0x176   : > { %2726 = vmatmul.mubr.f32.gmra.mrb[34].mxu1 %v2347_v2  ;;  %v2465_v39 = vrot.slane %v7646_v17, %v9973_v48  ;;  %v2479_v54 = vrot.slane %v7648_v19, %v9973_v48  ;;  %v2452_v8 = vcombine.low %v2430_v33, %v2444_v18  ;;  %v1398_v43 = vcombine.low %v14459_v1, %v11757_v0  ;;  %v14478_v19 = vld [vmem:[#allocation71_spill] sm:$0xff]  ;;  %v7745_v1 = vld [vmem:[%s13958_s1 + $0x458] sm:$0xff] }
 0x177   : > { %4637 = vmatmul.mubr.f32.gmra.mrb[2].mxu0 %v4290_v50  ;;  %2730 = vmatprep.mubr.f32.mxu1 %v2383_v12  ;;  %v7741_v50 = vld [vmem:[%s13958_s1 + $0x438] sm:$0xff]  ;;  %v12010_v2 = vrot.slane %v1655_v32, %v9973_v48  ;;  %v4296_v12 = vcombine.low %v14475_v30, %v14474_v57  ;;  %v7742_v30 = vld [vmem:[%s13958_s1 + $0x440] sm:$0xff]  ;;  %v7743_v57 = vld [vmem:[%s13958_s1 + $0x448] sm:$0xff] }
 0x178   : > { %4641 = vmatprep.mubr.f32.mxu0 %v4294_v14  ;;  %8982 = vmatpush3.bf16.msra.mxu0 %v8981_v55  ;;  %v14476_v55 = vld [vmem:[#allocation54_spill] sm:$0xff]  ;;  %v8987_v32 = vpack.c.bf16 %v7741_v50, %v7740_v28  ;;  %v8990_v33 = vpack.c.bf16 %v7743_v57, %v7742_v30  ;;  %v2487_v18 = vcombine.low %v2465_v39, %v2479_v54  ;;  %v14483_v30 = vld [vmem:[#allocation76_spill] sm:$0xff] }
 0x179   : > { %8983 = vmatprep.subr.bf16.mxu0 %v14234_v29  ;;  %v7650_v14 = vcombine.low %v1654_v56, %v12010_v2  ;;  %v4300_v51 = vcombine.high %v14477_v21, %v14476_v55  ;;  %v14479_v56 = vld [vmem:[#allocation68_spill] sm:$0xff]  ;;  %v1433_v50 = vcombine.low %v14463_v9, %v11788_v24 }
 0x17a   : > { %2731 = vmatmul.mubr.f32.gmra.mrb[36].mxu1 %v2382_v42  ;;  %v4299_v42 = vcombine.low %v14477_v21, %v14476_v55 }
 0x17b   : > { %4642 = vmatmul.mubr.f32.gmra.mrb[4].mxu0 %v4293_v52  ;;  %2735 = vmatprep.mubr.f32.mxu1 %v2418_v49  ;;  %v1431_v52 = vcombine.low %v11142_v37, %v11777_v10  ;;  %v2488_v49 = vcombine.high %v2465_v39, %v2479_v54  ;;  %v2498_v17 = vrot.slane %v7650_v14, %v9973_v48  ;;  %v7744_v37 = vld [vmem:[%s13958_s1 + $0x450] sm:$0xff]  ;;  %v14480_v14 = vld [vmem:[#allocation75_spill] sm:$0xff] }
 0x17c   : > { %4646 = vmatprep.mubr.f32.mxu0 %v4297_v36  ;;  %8985 = vmatpush3.bf16.msra.mxu0 %v8984_v61  ;;  %v4303_v36 = vcombine.high %v14479_v56, %v14478_v19  ;;  %v7635_v61 = vcombine.high %v14445_v60, %v1398_v43  ;;  %v14481_v39 = vld [vmem:[#allocation72_spill] sm:$0xff]  ;;  %v8993_v60 = vpack.c.bf16 %v7745_v1, %v7744_v37 }
 0x17d   : > { %8986 = vmatprep.subr.bf16.mxu0 %v14234_v29  ;;  %v7637_v28 = vcombine.high %v11757_v0, %v1431_v52  ;;  %v4306_v54 = vcombine.high %v14481_v39, %v14480_v14  ;;  %v7746_v0 = vld [vmem:[%s13958_s1 + $0x460] sm:$0xff]  ;;  %v7639_v55 = vcombine.high %v11777_v10, %v1433_v50  ;;  %v7748_v43 = vld [vmem:[%s13958_s1 + $0x470] sm:$0xff]  ;;  %v7749_v10 = vld [vmem:[%s13958_s1 + $0x478] sm:$0xff]  ;;  %v2367_v37 = vrot.slane %v11117_v6, %v9973_v48 }
 0x17e   : > { %2736 = vmatmul.mubr.f32.gmra.mrb[38].mxu1 %v2417_v26  ;;  %v4302_v26 = vcombine.low %v14479_v56, %v14478_v19  ;;  %v14484_v19 = vld [vmem:[#allocation81_spill] sm:$0xff]  ;;  %v14485_v56 = vld [vmem:[#allocation79_spill] sm:$0xff]  ;;  %v2381_v1 = vrot.slane %v11159_v45, %v9973_v48  ;;  %v2402_v6 = vrot.slane %v11166_v25, %v9973_v48  ;;  %v2416_v45 = vrot.slane %v11201_v38, %v9973_v48 }
 0x17f   : > { %4647 = vmatmul.mubr.f32.gmra.mrb[6].mxu0 %v4296_v12  ;;  %2740 = vmatprep.mubr.f32.mxu1 %v2453_v16  ;;  %v1450_v12 = vcombine.low %v11151_v3, %v11760_v58  ;;  %v2506_v16 = vcombine.high %v2498_v17, %v2498_v17  ;;  %v7747_v3 = vld [vmem:[%s13958_s1 + $0x468] sm:$0xff]  ;;  %v2297_v58 = vrot.slane %v7635_v61, %v9973_v48 }
 0x180   : > { %4651 = vmatprep.mubr.f32.mxu0 %v4300_v51  ;;  %8988 = vmatpush3.bf16.msra.mxu0 %v8987_v32  ;;  %v2311_v9 = vrot.slane %v7637_v28, %v9973_v48  ;;  %v4305_v51 = vcombine.low %v14481_v39, %v14480_v14  ;;  %v14482_v32 = vld [vmem:[#allocation78_spill] sm:$0xff]  ;;  %v2332_v52 = vrot.slane %v7639_v55, %v9973_v48  ;;  %v14487_v28 = vld [vmem:[#allocation15_spill] sm:$0xff] }
 0x181   : > { %8989 = vmatprep.subr.bf16.mxu0 %v14234_v29  ;;  %v7641_v21 = vcombine.high %v11788_v24, %v1450_v12  ;;  %v4309_v57 = vcombine.high %v14483_v30, %v14482_v32  ;;  %v4311_v61 = vcombine.low %v14485_v56, %v14484_v19  ;;  %v7643_v12 = vcombine.low %v11833_v4, %v11908_v44 }
 0x182   : > { %2741 = vmatmul.mubr.f32.gmra.mrb[40].mxu1 %v2452_v8  ;;  %v8996_v8 = vpack.c.bf16 %v7747_v3, %v7746_v0  ;;  %v2314_v24 = vcombine.low %v2297_v58, %v2311_v9  ;;  %v1651_v14 = vcombine.low %v11961_v63, %v11944_v31  ;;  %v1653_v39 = vcombine.low %v11989_v23, %v11975_v5 }
 0x183   : > { %4652 = vmatmul.mubr.f32.gmra.mrb[8].mxu0 %v4299_v42  ;;  %2745 = vmatprep.mubr.f32.mxu1 %v2488_v49  ;;  %v2346_v42 = vrot.slane %v7641_v21, %v9973_v48  ;;  %v4308_v49 = vcombine.low %v14483_v30, %v14482_v32  ;;  %v4358_v38 = vrot.slane %v11908_v44, %v9973_v48 }
 0x184   : > { %4656 = vmatprep.mubr.f32.mxu0 %v4303_v36  ;;  %8991 = vmatpush3.bf16.msra.mxu0 %v8990_v33  ;;  %v4312_v36 = vcombine.high %v14485_v56, %v14484_v19  ;;  %v8999_v33 = vpack.c.bf16 %v7749_v10, %v7748_v43  ;;  %v4372_v4 = vrot.slane %v11941_v35, %v9973_v48  ;;  %v14493_v19 = vld [vmem:[#allocation92_spill] sm:$0xff]  ;;  %v14494_v56 = vld [vmem:[#allocation91_spill] sm:$0xff] }
 0x185   : > { %8992 = vmatprep.subr.bf16.mxu0 %v14234_v29  ;;  %v2419_v3 = vcombine.low %v2402_v6, %v2416_v45  ;;  %v2437_v58 = vrot.slane %v7643_v12, %v9973_v48  ;;  %v7647_v21 = vcombine.high %v11941_v35, %v1651_v14  ;;  %v12162_v45 = vld [vmem:[%s9888_s9 + $0x118] sm:$0xf] }
 0x186   : > { %2746 = vmatmul.mubr.f32.gmra.mrb[42].mxu1 %v2487_v18  ;;  %v1618_v18 = vcombine.low %v11951_v11, %v11941_v35  ;;  %v12117_v9 = vcombine.low %v4358_v38, %v4372_v4  ;;  %v4407_v35 = vrot.slane %v11975_v5, %v9973_v48  ;;  %v614_v38 = vrot.slane %v12162_v45, 1 }
 0x187   : > { %4657 = vmatmul.mubr.f32.gmra.mrb[10].mxu0 %v4302_v26  ;;  %2750 = vmatprep.mubr.f32.mxu1 %v2506_v16  ;;  %v2384_v26 = vcombine.low %v2367_v37, %v2381_v1 }
 0x188   : > { %4661 = vmatprep.mubr.f32.mxu0 %v4306_v54  ;;  %8994 = vmatpush3.bf16.msra.mxu0 %v8993_v60  ;;  %v7645_v16 = vcombine.high %v11908_v44, %v1618_v18  ;;  %v14488_v54 = vld [vmem:[#allocation87_spill] sm:$0xff]  ;;  %v14489_v60 = vld [vmem:[#allocation84_spill] sm:$0xff]  ;;  %v14490_v44 = vrot.slane %v11874_v15, 2  ;;  %v4323_v18 = vcombine.low %v14494_v56, %v14493_v19 }
 0x189   : > { %8995 = vmatprep.subr.bf16.mxu0 %v14234_v29  ;;  %v4318_v0 = vcombine.high %v14489_v60, %v14488_v54  ;;  %v4317_v30 = vcombine.low %v14489_v60, %v14488_v54  ;;  %v14492_v15 = vld [vmem:[#allocation88_spill] sm:$0xff]  ;;  %v14498_v60 = vld [vmem:[#allocation99_spill] sm:$0xff] }
 0x18a   : > { %2751 = vmatmul.mubr.f32.gmra.mrb[44].mxu1 %v2498_v17  ;;  %v2349_v17 = vcombine.low %v2332_v52, %v2346_v42  ;;  %v2451_v55 = vrot.slane %v7645_v16, %v9973_v48  ;;  %v12125_v32 = vrot.slane %v14490_v44, %v9973_v48  ;;  %v2472_v52 = vrot.slane %v7647_v21, %v9973_v48 }
 0x18b   : > { %4662 = vmatmul.mubr.f32.gmra.mrb[12].mxu0 %v4305_v51  ;;  %8394 = vmatprep.mubr.msk.f32.mxu1 %vm9642_vm0, %v14235_v7  ;;  %v7649_v51 = vcombine.high %v11944_v31, %v1653_v39  ;;  %v4332_v21 = vcombine.low %v14498_v60, %v11215_v41 }
 0x18c   : > { %4666 = vmatprep.mubr.f32.mxu0 %v4309_v57  ;;  %8997 = vmatpush3.bf16.msra.mxu0 %v8996_v8  ;;  %v4393_v57 = vrot.slane %v11944_v31, %v9973_v48  ;;  %v14491_v8 = vld [vmem:[#allocation90_spill] sm:$0xff] }
 0x18d   : > { %8998 = vmatprep.subr.bf16.mxu0 %v14234_v29  ;;  %v14486_v29 = vld [vmem:[#allocation83_spill] sm:$0xff]  ;;  %v4321_v43 = vcombine.high %v14492_v15, %v14491_v8  ;;  %v2486_v42 = vrot.slane %v7649_v51, %v9973_v48  ;;  %v4320_v31 = vcombine.low %v14492_v15, %v14491_v8 }
 0x18e   : > { %8395 = vmatmul.mubr.f32.vlgmr.msra.gmra.mrb[32].mxu1 %v2314_v24  ;;  %v4315_v50 = vcombine.high %v14487_v28, %v14486_v29  ;;  %v4314_v25 = vcombine.low %v14487_v28, %v14486_v29  ;;  %v12137_v10 = vcombine.low %v4393_v57, %v4407_v35  ;;  %v2454_v24 = vcombine.low %v2437_v58, %v2451_v55  ;;  %v14496_v29 = vld [vmem:[#allocation93_spill] sm:$0xff]  ;;  %v14500_v35 = vld [vmem:[#allocation100_spill] sm:$0xff] }
 0x18f   : > { %4667 = vmatmul.mubr.f32.gmra.mrb[14].mxu0 %v4308_v49  ;;  %8397 = vmatprep.mubr.msk.f32.mxu1 %vm9642_vm0, %v14235_v7  ;;  %v1670_v49 = vcombine.low %v12010_v2, %v12125_v32  ;;  %v2489_v37 = vcombine.low %v2472_v52, %v2486_v42  ;;  %v675_v55 = vrot.slane %v12162_v45, 2  ;;  %v14499_v57 = vld [vmem:[#allocation101_spill] sm:$0xff]  ;;  %v4365_v52 = vrot.slane %v11951_v11, %v9973_v48  ;;  %v14501_v42 = vld [vmem:[#allocation103_spill] sm:$0xff] }
 0x190   : > { %4671 = vmatprep.mubr.f32.mxu0 %v4312_v36  ;;  %9000 = vmatpush3.bf16.msra.mxu0 %v8999_v33  ;;  %v4324_v36 = vcombine.high %v14494_v56, %v14493_v19  ;;  %v516_v33 = vld [vmem:[%s9888_s9 + $0x108] sm:$0xff]  ;;  %v4336_v8 = vcombine.high %v14500_v35, %v14499_v57 }
 0x191   : > { %v7651_v1 = vcombine.high %v11975_v5, %v1670_v49  ;;  %v672_v39 = vrot.slane %v516_v33, 2  ;;  %v14502_v49 = vld [vmem:[#allocation102_spill] sm:$0xff] }
 0x192   : > { %8398 = vmatmul.mubr.f32.gmra.mrb[34].mxu1 %v2349_v17  ;;  %v12151_v17 = vld [vmem:[%s9888_s9 + $0x110] sm:$0xff] }
 0x193   : > { %4672 = vmatmul.mubr.f32.gmra.mrb[16].mxu0 %v4311_v61  ;;  %8400 = vmatprep.mubr.msk.f32.mxu1 %vm9642_vm0, %v14235_v7  ;;  %v14495_v61 = vld [vmem:[#allocation96_spill] sm:$0xff]  ;;  %v612_v6 = vrot.slane %v12151_v17, 1  ;;  %v2505_v12 = vrot.slane %v7651_v1, %v9973_v48  ;;  %v4338_v1 = vcombine.low %v14502_v49, %v14501_v42 }
 0x194   : > { %4676 = vmatprep.mubr.f32.mxu0 %v4315_v50  ;;  %v4327_v28 = vcombine.high %v14496_v29, %v14495_v61  ;;  %v611_v50 = vrot.slane %v516_v33, 1  ;;  %v4326_v5 = vcombine.low %v14496_v29, %v14495_v61  ;;  %v4386_v61 = vrot.slane %v11961_v63, %v9973_v48 }
 0x195   : > { %v615_v58 = vsel %vm14201_vm2, %v612_v6, %v614_v38  ;;  %v4400_v29 = vrot.slane %v11989_v23, %v9973_v48 }
 0x196   : > { %8401 = vmatmul.mubr.f32.gmra.mrb[36].mxu1 %v2384_v26  ;;  %v14497_v26 = vld [vmem:[#allocation97_spill] sm:$0xff]  ;;  %v613_v14 = vsel %vm14201_vm2, %v611_v50, %v612_v6  ;;  %v4187_v15 = vcombine.low %v12151_v17, %v615_v58 }
 0x197   : > { %4677 = vmatmul.mubr.f32.gmra.mrb[18].mxu0 %v4314_v25  ;;  %8403 = vmatprep.mubr.msk.f32.mxu1 %vm9642_vm0, %v14235_v7  ;;  %v4330_v16 = vcombine.high %v14497_v26, %v11181_v27  ;;  %v673_v25 = vrot.slane %v12151_v17, 2  ;;  %v4329_v4 = vcombine.low %v14497_v26, %v11181_v27  ;;  %v4152_v54 = vcombine.low %v516_v33, %v613_v14 }
 0x198   : > { %4681 = vmatprep.mubr.f32.mxu0 %v4318_v0  ;;  %v4333_v0 = vcombine.high %v14498_v60, %v11215_v41  ;;  %v4153_v51 = vcombine.high %v516_v33, %v613_v14  ;;  %v4335_v41 = vcombine.low %v14500_v35, %v14499_v57  ;;  %v4188_v33 = vcombine.high %v12151_v17, %v615_v58  ;;  %v14504_v35 = vld [vmem:[#allocation23_spill] sm:$0xff] }
 0x199   : > { %v4161_v44 = vrot.slane %v4152_v54, %v9973_v48  ;;  %v14503_v57 = vcombine.low %v10953_v20, %v10957_v59  ;;  %v14510_v20 = vld [vmem:[#allocation33_spill] sm:$0xff] }
 0x19a   : > { %8404 = vmatmul.mubr.f32.gmra.mrb[38].mxu1 %v2419_v3  ;;  %v674_v3 = vsel %vm14195_vm1, %v672_v39, %v673_v25  ;;  %v12202_v19 = vrot.slane %v4153_v51, %v9973_v48  ;;  %v12226_v6 = vrot.slane %v4188_v33, %v9973_v48  ;;  %v14511_v59 = vld [vmem:[#allocation105_spill] sm:$0xff] }
 0x19b   : > { %4682 = vmatmul.mubr.f32.gmra.mrb[20].mxu0 %v4317_v30  ;;  %8406 = vmatprep.mubr.msk.f32.mxu1 %vm9642_vm0, %v14235_v7  ;;  %v12185_v27 = vrot.slane %v674_v3, %v9973_v48  ;;  %v4154_v30 = vcombine.high %v674_v3, %v674_v3  ;;  %v7750_v17 = vcombine.low %v12010_v2, %v4161_v44  ;;  %v14513_v33 = vld [vmem:[#allocation29_spill] sm:$0xff] }
 0x19c   : > { %4686 = vmatprep.mubr.f32.mxu0 %v4321_v43  ;;  %v676_v43 = vsel %vm14195_vm1, %v673_v25, %v675_v55  ;;  %v4409_v2 = vcombine.high %v4386_v61, %v4400_v29 }
 0x19d   : > { %v4184_v56 = vcombine.high %v4161_v44, %v12185_v27  ;;  %v12213_v11 = vrot.slane %v676_v43, %v9973_v48  ;;  %v4421_v26 = vrot.slane %v7750_v17, %v9973_v48  ;;  %v14517_v17 = vld [vmem:[#allocation35_spill] sm:$0xff] }
 0x19e   : > { %8407 = vmatmul.mubr.f32.gmra.mrb[40].mxu1 %v2454_v24  ;;  %v4351_v24 = vrot.slane %v11919_v34, %v9973_v48  ;;  %v12210_v34 = vrot.slane %v4187_v15, %v9973_v48 }
 0x19f   : > { %4687 = vmatmul.mubr.f32.gmra.mrb[22].mxu0 %v4320_v31  ;;  %8409 = vmatprep.mubr.msk.f32.mxu1 %vm9642_vm0, %v14235_v7  ;;  %v4339_v31 = vcombine.high %v14502_v49, %v14501_v42  ;;  %v14509_v42 = vld [vmem:[#allocation32_spill] sm:$0xff] }
 0x1a0   : > { %4691 = vmatprep.mubr.f32.mxu0 %v4324_v36  ;;  %v12206_v36 = vrot.slane %v4154_v30, %v9973_v48  ;;  %v4373_v23 = vcombine.low %v4351_v24, %v4365_v52 }
 0x1a2   : > { %8410 = vmatmul.mubr.f32.gmra.mrb[42].mxu1 %v2489_v37  ;;  %v4189_v37 = vcombine.high %v676_v43, %v676_v43  ;;  %v4186_v50 = vcombine.high %v12202_v19, %v12206_v36  ;;  %v14506_v43 = vld [vmem:[#allocation21_spill] sm:$0xff] }
 0x1a3   : > { %4692 = vmatmul.mubr.f32.gmra.mrb[24].mxu0 %v4323_v18  ;;  %8412 = vmatprep.mubr.msk.f32.mxu1 %vm9642_vm0, %v14235_v7  ;;  %v4374_v18 = vcombine.high %v4351_v24, %v4365_v52  ;;  %v14508_v52 = vld [vmem:[#allocation104_spill] sm:$0xff] }
 0x1a4   : > { %4696 = vmatprep.mubr.f32.mxu0 %v4327_v28  ;;  %v7752_v28 = vcombine.low %v4184_v56, %v12202_v19  ;;  %v12231_v63 = vrot.slane %v4189_v37, %v9973_v48  ;;  %v7754_v14 = vcombine.low %v4186_v50, %v12210_v34  ;;  %v4298_v49 = vcombine.low %v14509_v42, %v14508_v52  ;;  %v14512_v56 = vld [vmem:[#allocation40_spill] sm:$0xff]  ;;  %v14518_v50 = vld [vmem:[#allocation31_spill] sm:$0xff] }
 0x1a5   : > { %v4304_v37 = vcombine.low %v14513_v33, %v14512_v56  ;;  %v4218_v52 = vcombine.low %v12210_v34, %v12213_v11 }
 0x1a6   : > { %8413 = vmatmul.mubr.f32.gmra.mrb[44].mxu1 %v2505_v12  ;;  %v4219_v12 = vcombine.high %v12210_v34, %v12213_v11  ;;  %v4221_v25 = vcombine.high %v12226_v6, %v12231_v63  ;;  %v4456_v60 = vrot.slane %v7754_v14, %v9973_v48  ;;  %v14521_v14 = vld [vmem:[#allocation73_spill] sm:$0xff]  ;;  %v4220_v42 = vcombine.low %v12226_v6, %v12231_v63 }
 0x1a7   : > { %4697 = vmatmul.mubr.f32.gmra.mrb[26].mxu0 %v4326_v5  ;;  %v4222_v5 = vcombine.low %v12162_v45, %v614_v38  ;;  %v4408_v38 = vcombine.low %v4386_v61, %v4400_v29  ;;  %v14516_v29 = vld [vmem:[#allocation24_spill] sm:$0xff]  ;;  %v4236_v34 = vrot.slane %v675_v55, %v9973_v48 }
 0x1a8   : > { %4701 = vmatprep.mubr.f32.mxu0 %v4330_v16  ;;  %v4435_v16 = vrot.slane %v7752_v28, %v9973_v48  ;;  %v7756_v39 = vcombine.low %v4219_v12, %v12226_v6  ;;  %v4310_v28 = vcombine.low %v14517_v17, %v14516_v29  ;;  %v14519_v12 = vld [vmem:[#allocation43_spill] sm:$0xff] }
 0x1a9   : > { %v7762_v17 = vld [vmem:[%s13959_s2 + $0x188] sm:$0xff] }
 0x1aa   : > { %v4444_v54 = vcombine.high %v4421_v26, %v4435_v16  ;;  %v4443_v58 = vcombine.low %v4421_v26, %v4435_v16  ;;  %v4319_v26 = vcombine.low %v11665_v22, %v11669_v46  ;;  %v4322_v16 = vcombine.low %v11672_v40, %v11699_v47  ;;  %v14522_v22 = vld [vmem:[#allocation44_spill] sm:$0xff] }
 0x1ab   : > { %4702 = vmatmul.mubr.f32.gmra.mrb[28].mxu0 %v4329_v4  ;;  %v12241_v4 = vrot.slane %v4222_v5, %v9973_v48  ;;  %v4313_v5 = vcombine.low %v14519_v12, %v14518_v50  ;;  %v4328_v46 = vcombine.low %v14522_v22, %v14521_v14  ;;  %v14524_v40 = vld [vmem:[#allocation8_spill] sm:$0xff]  ;;  %v7781_v22 = vld [vmem:[%s13959_s2 + $0x220] sm:$0xff] }
 0x1ac   : > { %4706 = vmatprep.mubr.f32.mxu0 %v4333_v0  ;;  %v4470_v0 = vrot.slane %v7756_v39, %v9973_v48  ;;  %v14523_v39 = vld [vmem:[#allocation36_spill] sm:$0xff] }
 0x1ad   : > { %v7758_v3 = vcombine.low %v4221_v25, %v12241_v4  ;;  %v4331_v47 = vcombine.low %v14524_v40, %v14523_v39  ;;  %v7765_v40 = vld [vmem:[%s13959_s2 + $0x1a0] sm:$0xff] }
 0x1ae   : > { %v4478_v44 = vcombine.low %v4456_v60, %v4470_v0 }
 0x1af   : > { %4707 = vmatmul.mubr.f32.gmra.mrb[30].mxu0 %v4332_v21  ;;  %v4479_v21 = vcombine.high %v4456_v60, %v4470_v0  ;;  %v4489_v51 = vrot.slane %v7758_v3, %v9973_v48  ;;  %v14527_v3 = vld [vmem:[#allocation38_spill] sm:$0xff] }
 0x1b0   : > { %4711 = vmatprep.mubr.f32.mxu0 %v4336_v8  ;;  %v14505_v8 = vld [vmem:[#allocation17_spill] sm:$0xff] }
 0x1b1   : > { %v4497_v30 = vcombine.high %v4489_v51, %v4489_v51  ;;  %v4292_v15 = vcombine.low %v14505_v8, %v14504_v35  ;;  %v4185_v8 = vcombine.low %v12202_v19, %v12206_v36 }
 0x1b3   : > { %4712 = vmatmul.mubr.f32.gmra.mrb[32].mxu0 %v4335_v41  ;;  %v14507_v41 = vld [vmem:[#allocation19_spill] sm:$0xff] }
 0x1b4   : > { %4716 = vmatprep.mubr.f32.mxu0 %v4339_v31  ;;  %v4295_v24 = vcombine.low %v14507_v41, %v14506_v43  ;;  %v4301_v31 = vcombine.low %v14511_v59, %v14510_v20  ;;  %v7751_v43 = vcombine.low %v12125_v32, %v12185_v27  ;;  %v7757_v59 = vcombine.high %v12213_v11, %v4220_v42 }
 0x1b6   : > { %v4477_v33 = vrot.slane %v7757_v59, %v9973_v48  ;;  %v7771_v59 = vld [vmem:[%s13959_s2 + $0x1d0] sm:$0xff] }
 0x1b7   : > { %4717 = vmatmul.mubr.f32.gmra.mrb[34].mxu0 %v4338_v1  ;;  %v14514_v1 = vld [vmem:[#allocation39_spill] sm:$0xff] }
 0x1b8   : > { %4721 = vmatprep.mubr.f32.mxu0 %v4374_v18  ;;  %v14515_v18 = vld [vmem:[#allocation69_spill] sm:$0xff] }
 0x1b9   : > { %v4307_v61 = vcombine.low %v14515_v18, %v14514_v1  ;;  %v7778_v18 = vld [vmem:[%s13959_s2 + $0x208] sm:$0xff] }
 0x1bb   : > { %4722 = vmatmul.mubr.f32.gmra.mrb[36].mxu0 %v4373_v23  ;;  %v14520_v23 = vld [vmem:[#allocation70_spill] sm:$0xff] }
 0x1bc   : > { %4726 = vmatprep.mubr.f32.mxu0 %v4409_v2  ;;  %v4316_v2 = vcombine.low %v14520_v23, %v11661_v53  ;;  %v4325_v53 = vcombine.low %v11715_v62, %v11725_v13  ;;  %v14525_v13 = vld [vmem:[#allocation45_spill] sm:$0xff] }
 0x1bd   : > { %v7780_v23 = vld [vmem:[%s13959_s2 + $0x218] sm:$0xff] }
 0x1bf   : > { %4727 = vmatmul.mubr.f32.gmra.mrb[38].mxu0 %v4408_v38  ;;  %v14526_v38 = vld [vmem:[#allocation62_spill] sm:$0xff] }
 0x1c0   : > { %4731 = vmatprep.mubr.f32.mxu0 %v4444_v54  ;;  %v4334_v54 = vcombine.low %v14526_v38, %v14525_v13  ;;  %v7783_v38 = vld [vmem:[%s13959_s2 + $0x230] sm:$0xff] }
 0x1c3   : > { %4732 = vmatmul.mubr.f32.gmra.mrb[40].mxu0 %v4443_v58  ;;  %v14528_v58 = vld [vmem:[#allocation74_spill] sm:$0xff] }
 0x1c4   : > { %4736 = vmatprep.mubr.f32.mxu0 %v4479_v21  ;;  %v4337_v21 = vcombine.low %v14528_v58, %v14527_v3  ;;  %v7767_v58 = vld [vmem:[%s13959_s2 + $0x1b0] sm:$0xff] }
 0x1c7   : > { %4737 = vmatmul.mubr.f32.gmra.mrb[42].mxu0 %v4478_v44 }
 0x1c8   : > { %4741 = vmatprep.mubr.f32.mxu0 %v4497_v30  ;;  %v14529_v30 = vld [vmem:[#allocation9_spill] sm:$0xff] }
 0x1cb   : > { %4742 = vmatmul.mubr.f32.gmra.mrb[44].mxu0 %v4489_v51 }
 0x1cc   : > { %8548 = vmatprep.mubr.msk.f32.mxu0 %vm9642_vm0, %v14235_v7 }
 0x1cf   : > { %8549 = vmatmul.mubr.f32.vlgmr.msra.gmra.mrb[0].mxu0 %v14503_v57  ;;  %v14530_v57 = vld [vmem:[#allocation28_spill] sm:$0xff] }
 0x1d0   : > { %8551 = vmatprep.mubr.msk.f32.mxu0 %vm9642_vm0, %v14235_v7  ;;  %v4340_v35 = vcombine.low %v14530_v57, %v14529_v30  ;;  %v7785_v57 = vld [vmem:[%s13959_s2 + $0x240] sm:$0xff] }
 0x1d3   : > { %8552 = vmatmul.mubr.f32.gmra.mrb[2].mxu0 %v4292_v15 }
 0x1d4   : > { %8554 = vmatprep.mubr.msk.f32.mxu0 %vm9642_vm0, %v14235_v7 }
 0x1d7   : > { %8555 = vmatmul.mubr.f32.gmra.mrb[4].mxu0 %v4295_v24  ;;  %v7753_v24 = vcombine.high %v12185_v27, %v4185_v8  ;;  %v7755_v27 = vcombine.high %v12206_v36, %v4218_v52  ;;  %v4237_v36 = vcombine.low %v12241_v4, %v4236_v34  ;;  %v7777_v4 = vld [vmem:[%s13959_s2 + $0x200] sm:$0xff]  ;;  %v7772_v34 = vld [vmem:[%s13959_s2 + $0x1d8] sm:$0xff] }
 0x1d8   : > { %8557 = vmatprep.mubr.msk.f32.mxu0 %vm9642_vm0, %v14235_v7  ;;  %v9001_v29 = vpack.c.bf16 %v7778_v18, %v7777_v4 }
 0x1d9   : > { %v4442_v32 = vrot.slane %v7753_v24, %v9973_v48  ;;  %v7770_v24 = vld [vmem:[%s13959_s2 + $0x1c8] sm:$0xff] }
 0x1da   : > { %9002 = vmatprep.subr.bf16.mxu0 %v9001_v29  ;;  %9209 = vmatprep.subr.bf16.mxu1 %v9001_v29  ;;  %v7792_v29 = vld [vmem:[%s13959_s2 + $0x278] sm:$0xff] }
 0x1db   : > { %8558 = vmatmul.mubr.f32.gmra.mrb[6].mxu0 %v4298_v49  ;;  %v4428_v49 = vrot.slane %v7751_v43, %v9973_v48 }
 0x1dc   : > { %8560 = vmatprep.mubr.msk.f32.mxu0 %vm9642_vm0, %v14235_v7 }
 0x1dd   : > { %v4445_v56 = vcombine.low %v4428_v49, %v4442_v32  ;;  %v7787_v49 = vld [vmem:[%s13959_s2 + $0x250] sm:$0xff] }
 0x1df   : > { %8561 = vmatmul.mubr.f32.gmra.mrb[8].mxu0 %v4301_v31 }
 0x1e0   : > { %8563 = vmatprep.mubr.msk.f32.mxu0 %vm9642_vm0, %v14235_v7 }
 0x1e3   : > { %8564 = vmatmul.mubr.f32.gmra.mrb[10].mxu0 %v4304_v37  ;;  %v7759_v37 = vcombine.high %v12231_v63, %v4237_v36  ;;  %v7761_v63 = vld [vmem:[%s13959_s2 + $0x180] sm:$0xff]  ;;  %v7790_v36 = vld [vmem:[%s13959_s2 + $0x268] sm:$0xff] }
 0x1e4   : > { %8566 = vmatprep.mubr.msk.f32.mxu0 %vm9642_vm0, %v14235_v7 }
 0x1e7   : > { %8567 = vmatmul.mubr.f32.gmra.mrb[12].mxu0 %v4307_v61  ;;  %v4496_v61 = vrot.slane %v7759_v37, %v9973_v48  ;;  %v7774_v37 = vld [vmem:[%s13959_s2 + $0x1e8] sm:$0xff] }
 0x1e8   : > { %8569 = vmatprep.mubr.msk.f32.mxu0 %vm9642_vm0, %v14235_v7 }
 0x1eb   : > { %8570 = vmatmul.mubr.f32.gmra.mrb[14].mxu0 %v4310_v28  ;;  %v9003_v28 = vpack.c.bf16 %v7762_v17, %v7761_v63  ;;  %v7775_v17 = vld [vmem:[%s13959_s2 + $0x1f0] sm:$0xff] }
 0x1ec   : > { %8572 = vmatprep.mubr.msk.f32.mxu0 %vm9642_vm0, %v14235_v7 }
 0x1ed   : > { %9004 = vmatpush3.bf16.msra.mxu0 %v9003_v28  ;;  %9217 = vmatpush3.bf16.msra.mxu1 %v9003_v28  ;;  %v7776_v28 = vld [vmem:[%s13959_s2 + $0x1f8] sm:$0xff] }
 0x1ef   : > { %8573 = vmatmul.mubr.f32.gmra.mrb[16].mxu0 %v4313_v5  ;;  %v7779_v5 = vld [vmem:[%s13959_s2 + $0x210] sm:$0xff] }
 0x1f0   : > { %8575 = vmatprep.mubr.msk.f32.mxu0 %vm9642_vm0, %v14235_v7 }
 0x1f3   : > { %8576 = vmatmul.mubr.f32.gmra.mrb[18].mxu0 %v4316_v2  ;;  %v9005_v2 = vpack.c.bf16 %v7780_v23, %v7779_v5 }
 0x1f4   : > { %8578 = vmatprep.mubr.msk.f32.mxu0 %vm9642_vm0, %v14235_v7 }
 0x1f5   : > { %9006 = vmatprep.subr.bf16.mxu0 %v9005_v2  ;;  %9210 = vmatprep.subr.bf16.mxu1 %v9005_v2 }
 0x1f7   : > { %8579 = vmatmul.mubr.f32.gmra.mrb[20].mxu0 %v4319_v26  ;;  %v7764_v26 = vld [vmem:[%s13959_s2 + $0x198] sm:$0xff] }
 0x1f8   : > { %8581 = vmatprep.mubr.msk.f32.mxu0 %vm9642_vm0, %v14235_v7 }
 0x1fb   : > { %8582 = vmatmul.mubr.f32.gmra.mrb[22].mxu0 %v4322_v16 }
 0x1fc   : > { %8584 = vmatprep.mubr.msk.f32.mxu0 %vm9642_vm0, %v14235_v7 }
 0x1ff   : > { %8585 = vmatmul.mubr.f32.gmra.mrb[24].mxu0 %v4325_v53 }
 0x200   : > { %8587 = vmatprep.mubr.msk.f32.mxu0 %vm9642_vm0, %v14235_v7 }
 0x203   : > { %8588 = vmatmul.mubr.f32.gmra.mrb[26].mxu0 %v4328_v46  ;;  %v7782_v46 = vld [vmem:[%s13959_s2 + $0x228] sm:$0xff] }
 0x204   : > { %8590 = vmatprep.mubr.msk.f32.mxu0 %vm9642_vm0, %v14235_v7  ;;  %v12308_v25 = vpop.f32.mrb[0].mxu1  ;;  %v9009_v39 = vpack.c.bf16 %v7782_v46, %v7781_v22  ;;  %v7794_v22 = vld [vmem:[%s13959_s2 + $0x288] sm:$0xff] }
 0x205   : > { %v2644_v62 = vpop.f32.mrb[1].mxu1 }
 0x207   : > { %8591 = vmatmul.mubr.f32.gmra.mrb[28].mxu0 %v4331_v47  ;;  %v7766_v47 = vld [vmem:[%s13959_s2 + $0x1a8] sm:$0xff] }
 0x208   : > { %8593 = vmatprep.mubr.msk.f32.mxu0 %vm9642_vm0, %v14235_v7  ;;  %v9011_v62 = vpack.c.bf16 %v7766_v47, %v7765_v40 }
 0x209   : > { %v12314_v60 = vpop.f32.mrb[2].mxu1 }
 0x20a   : > { %v2649_v0 = vpop.f32.mrb[3].mxu1 }
 0x20b   : > { %8594 = vmatmul.mubr.f32.gmra.mrb[30].mxu0 %v4334_v54  ;;  %v7784_v54 = vld [vmem:[%s13959_s2 + $0x238] sm:$0xff] }
 0x20c   : > { %8596 = vmatprep.mubr.msk.f32.mxu0 %vm9642_vm0, %v14235_v7  ;;  %v9013_v3 = vpack.c.bf16 %v7784_v54, %v7783_v38 }
 0x20d   : > { %v12320_v51 = vpop.f32.mrb[4].mxu1 }
 0x20e   : > { %v2654_v44 = vpop.f32.mrb[5].mxu1 }
 0x20f   : > { %8597 = vmatmul.mubr.f32.gmra.mrb[32].mxu0 %v4337_v21  ;;  %v7768_v21 = vld [vmem:[%s13959_s2 + $0x1b8] sm:$0xff] }
 0x210   : > { %8599 = vmatprep.mubr.msk.f32.mxu0 %vm9642_vm0, %v14235_v7  ;;  %v9015_v44 = vpack.c.bf16 %v7768_v21, %v7767_v58 }
 0x211   : > { %v12328_v15 = vpop.f32.mrb[6].mxu1 }
 0x212   : > { %v2659_v41 = vpop.f32.mrb[7].mxu1 }
 0x213   : > { %8600 = vmatmul.mubr.f32.gmra.mrb[34].mxu0 %v4340_v35  ;;  %v7786_v35 = vld [vmem:[%s13959_s2 + $0x248] sm:$0xff]  ;;  %v7769_v41 = vld [vmem:[%s13959_s2 + $0x1c0] sm:$0xff] }
 0x214   : > { %8602 = vmatprep.mubr.msk.f32.mxu0 %vm9642_vm0, %v14235_v7  ;;  %v9017_v43 = vpack.c.bf16 %v7786_v35, %v7785_v57  ;;  %v9019_v52 = vpack.c.bf16 %v7770_v24, %v7769_v41 }
 0x215   : > { %v12339_v19 = vpop.f32.mrb[8].mxu1 }
 0x216   : > { %v2664_v20 = vpop.f32.mrb[9].mxu1 }
 0x217   : > { %8603 = vmatmul.mubr.f32.gmra.mrb[36].mxu0 %v12117_v9  ;;  %v4463_v9 = vrot.slane %v7755_v27, %v9973_v48  ;;  %v7788_v20 = vld [vmem:[%s13959_s2 + $0x258] sm:$0xff] }
 0x218   : > { %8605 = vmatprep.mubr.msk.f32.mxu0 %vm9642_vm0, %v14235_v7  ;;  %v9021_v27 = vpack.c.bf16 %v7788_v20, %v7787_v49  ;;  %v12508_v20 = vstv %s7760_s28 }
 0x219   : > { %v12351_v6 = vpop.f32.mrb[10].mxu1  ;;  %v4480_v11 = vcombine.low %v4463_v9, %v4477_v33  ;;  %v7789_v33 = vld [vmem:[%s13959_s2 + $0x260] sm:$0xff]  ;;  %vm5393_vm3 = vcmp.ge.s32.totalorder %v12508_v20, 0  ;;  %vm5403_vm4 = vcmp.lt.s32.totalorder %v12508_v20, 16 }
 0x21a   : > { %v2669_v31 = vpop.f32.mrb[11].mxu1  ;;  %vm12520_vm5 = vmand %vm5393_vm3, %vm5403_vm4 }
 0x21b   : > { %8606 = vmatmul.mubr.f32.gmra.mrb[38].mxu0 %v12137_v10  ;;  %v9023_v31 = vpack.c.bf16 %v7772_v34, %v7771_v59 }
 0x21c   : > { %8608 = vmatprep.mubr.msk.f32.mxu0 %vm9642_vm0, %v14235_v7 }
 0x21d   : > { %v12359_v45 = vpop.f32.mrb[12].mxu1 }
 0x21e   : > { %v2674_v55 = vpop.f32.mrb[13].mxu1 }
 0x21f   : > { %8609 = vmatmul.mubr.f32.gmra.mrb[40].mxu0 %v4445_v56  ;;  %v9025_v55 = vpack.c.bf16 %v7790_v36, %v7789_v33 }
 0x220   : > { %8611 = vmatprep.mubr.msk.f32.mxu0 %vm9642_vm0, %v14235_v7 }
 0x221   : > { %v12364_v10 = vpop.f32.mrb[14].mxu1 }
 0x222   : > { %v2679_v1 = vpop.f32.mrb[15].mxu1 }
 0x223   : > { %8612 = vmatmul.mubr.f32.gmra.mrb[42].mxu0 %v4480_v11  ;;  %v7773_v11 = vld [vmem:[%s13959_s2 + $0x1e0] sm:$0xff] }
 0x224   : > { %8614 = vmatprep.mubr.msk.f32.mxu0 %vm9642_vm0, %v14235_v7  ;;  %v7763_v7 = vld [vmem:[%s13959_s2 + $0x190] sm:$0xff]  ;;  %v9027_v1 = vpack.c.bf16 %v7774_v37, %v7773_v11  ;;  %v5380_v37 = vadd.s32 1, %v12508_v20 }
 0x225   : > { %v12381_v50 = vpop.f32.mrb[16].mxu1  ;;  %v9007_v16 = vpack.c.bf16 %v7764_v26, %v7763_v7 }
 0x226   : > { %v2684_v12 = vpop.f32.mrb[17].mxu1  ;;  %vm5394_vm9 = vcmp.ge.s32.totalorder %v5380_v37, 0  ;;  %vm5404_vm10 = vcmp.lt.s32.totalorder %v5380_v37, 16 }
 0x227   : > { %8615 = vmatmul.mubr.f32.gmra.mrb[44].mxu0 %v4496_v61  ;;  %9218 = vmatpush3.bf16.msra.mxu1 %v9007_v16  ;;  %v7791_v61 = vld [vmem:[%s13959_s2 + $0x270] sm:$0xff]  ;;  %v9031_v12 = vpack.c.bf16 %v7776_v28, %v7775_v17  ;;  %vm12556_vm12 = vmand %vm5394_vm9, %vm5404_vm10 }
 0x228   : > { %9008 = vmatpush3.bf16.msra.mxu0 %v9007_v16  ;;  %9211 = vmatprep.subr.bf16.mxu1 %v9009_v39  ;;  %v9029_v63 = vpack.c.bf16 %v7792_v29, %v7791_v61 }
 0x229   : > { %v12395_v53 = vpop.f32.mrb[18].mxu1  ;;  %9010 = vmatprep.subr.bf16.mxu0 %v9009_v39 }
 0x22a   : > { %v2689_v14 = vpop.f32.mrb[19].mxu1 }
 0x22b   : > { %9219 = vmatpush3.bf16.msra.mxu1 %v9011_v62  ;;  %v7793_v14 = vld [vmem:[%s13959_s2 + $0x280] sm:$0xff] }
 0x22c   : > { %9012 = vmatpush3.bf16.msra.mxu0 %v9011_v62  ;;  %9212 = vmatprep.subr.bf16.mxu1 %v9013_v3  ;;  %v12491_v46 = vpack.c.bf16 %v7794_v22, %v7793_v14 }
 0x22d   : > { %v12409_v13 = vpop.f32.mrb[20].mxu1  ;;  %9014 = vmatprep.subr.bf16.mxu0 %v9013_v3 }
 0x22e   : > { %v2694_v0 = vpop.f32.mrb[21].mxu1 }
 0x22f   : > { %9220 = vmatpush3.bf16.msra.mxu1 %v9015_v44 }
 0x230   : > { %9016 = vmatpush3.bf16.msra.mxu0 %v9015_v44  ;;  %9213 = vmatprep.subr.bf16.mxu1 %v9017_v43 }
 0x231   : > { %v12423_v30 = vpop.f32.mrb[22].mxu1  ;;  %9018 = vmatprep.subr.bf16.mxu0 %v9017_v43 }
 0x232   : > { %v2699_v8 = vpop.f32.mrb[23].mxu1 }
 0x233   : > { %9221 = vmatpush3.bf16.msra.mxu1 %v9019_v52 }
 0x234   : > { %9020 = vmatpush3.bf16.msra.mxu0 %v9019_v52  ;;  %9214 = vmatprep.subr.bf16.mxu1 %v9021_v27 }
 0x235   : > { %v12437_v42 = vpop.f32.mrb[24].mxu1  ;;  %9022 = vmatprep.subr.bf16.mxu0 %v9021_v27 }
 0x236   : > { %v2704_v32 = vpop.f32.mrb[25].mxu1 }
 0x237   : > { %9222 = vmatpush3.bf16.msra.mxu1 %v9023_v31 }
 0x238   : > { %9024 = vmatpush3.bf16.msra.mxu0 %v9023_v31  ;;  %9215 = vmatprep.subr.bf16.mxu1 %v9025_v55  ;;  %v14531_v31 = vld [vmem:[#allocation12_spill] sm:$0xff] }
 0x239   : > { %v12451_v56 = vpop.f32.mrb[26].mxu1  ;;  %9026 = vmatprep.subr.bf16.mxu0 %v9025_v55  ;;  %vm5423_vm6 = vcmp.ge.s32.totalorder %v14531_v31, 1 }
 0x23a   : > { %v2709_v9 = vpop.f32.mrb[27].mxu1  ;;  %vm12534_vm8 = vmand %vm12520_vm5, %vm5423_vm6 }
 0x23b   : > { %9223 = vmatpush3.bf16.msra.mxu1 %v9027_v1  ;;  %v12512_v9 = vadd.s32 16, %v14531_v31  ;;  %vm12572_vm15 = vmand %vm12556_vm12, %vm5423_vm6 }
 0x23c   : > { %9028 = vmatpush3.bf16.msra.mxu0 %v9027_v1  ;;  %9216 = vmatprep.subr.bf16.mxu1 %v9029_v63 }
 0x23d   : > { %v12465_v4 = vpop.f32.mrb[28].mxu1  ;;  %9030 = vmatprep.subr.bf16.mxu0 %v9029_v63  ;;  %vm14196_vm7 = vcmp.le.s32.totalorder %v12512_v9, 16 }
 0x23e   : > { %v2714_v18 = vpop.f32.mrb[29].mxu1  ;;  %vm5461_vm11 = vmand %vm12520_vm5, %vm14196_vm7 }
 0x23f   : > { %9224 = vmatpush3.bf16.msra.mxu1 %v9031_v12  ;;  %vm12593_vm0 = vmand %vm12556_vm12, %vm14196_vm7 }
 0x240   : > { %9032 = vmatpush3.bf16.msra.mxu0 %v9031_v12  ;;  %9034 = vmatprep.subr.bf16.mxu1 %v12491_v46 }
 0x241   : > { %v12479_v5 = vpop.f32.mrb[30].mxu1 }
 0x242   : > { %v2719_v23 = vpop.f32.mrb[31].mxu1 }
 0x261   : > { %v12481_v2 = vpop.f32.mrb[32].mxu1 }
 0x262   : > { %v8396_v7 = vpop.f32.mrb[33].mxu1 }
 0x265   : > { %v12483_v26 = vpop.f32.mrb[34].mxu1 }
 0x266   : > { %v8399_v16 = vpop.f32.mrb[35].mxu1 }
 0x269   : > { %v12493_v39 = vpop.f32.mrb[36].mxu1 }
 0x26a   : > { %v8402_v40 = vpop.f32.mrb[37].mxu1 }
 0x26d   : > { %v12496_v47 = vpop.f32.mrb[38].mxu1 }
 0x26e   : > { %v8405_v62 = vpop.f32.mrb[39].mxu1 }
 0x271   : > { %v12498_v38 = vpop.f32.mrb[40].mxu1 }
 0x272   : > { %v8408_v54 = vpop.f32.mrb[41].mxu1 }
 0x275   : > { %v12500_v0 = vpop.f32.mrb[42].mxu1 }
 0x276   : > { %v8411_v3 = vpop.f32.mrb[43].mxu1 }
 0x277   : > { %v12543_v3 = vadd.s32 2, %v12508_v20 }
 0x279   : > { %v12502_v58 = vpop.f32.mrb[44].mxu1  ;;  %vm5395_vm13 = vcmp.ge.s32.totalorder %v12543_v3, 0  ;;  %vm5405_vm14 = vcmp.lt.s32.totalorder %v12543_v3, 16  ;;  %v7798_v3 = vld [vmem:[%s13959_s2 + $0x2a8] sm:$0xff] }
 0x27a   : > { %v8414_v21 = vpop.f32.mrb[45].mxu1 }
 0x2a2   : > { %v4813_v44 = vpop.f32.mrb[0].mxu0 }
 0x2a3   : > { %v9225_v57 = vadd.f32 %v4813_v44, %v12308_v25  ;;  %v8550_v35 = vpop.f32.mrb[1].mxu0 }
 0x2a5   : > { %v4950_v8 = vmax.f32 %v9225_v57, 0.0 }
 0x2a6   : > { %v4818_v43 = vpop.f32.mrb[2].mxu0 }
 0x2a7   : > { %v4996_v41 = vcombine.high %v4950_v8, %v4950_v8  ;;  %v5003_v24 = vrot.slane %v4950_v8, %v9973_v48  ;;  %v9226_v52 = vadd.f32 %v4818_v43, %v12314_v60  ;;  %v8553_v49 = vpop.f32.mrb[3].mxu0 }
 0x2a9   : > { %v5010_v32 = vrot.slane %v4996_v41, %v9973_v48  ;;  %v5011_v27 = vcombine.high %v5003_v24, %v5003_v24  ;;  %v4951_v59 = vmax.f32 %v9226_v52, 0.0 }
 0x2aa   : > { %v4823_v34 = vpop.f32.mrb[4].mxu0 }
 0x2ab   : > { %v5012_v25 = vcombine.high %v5010_v32, %v5010_v32  ;;  %v5549_v33 = vcombine.low %v5003_v24, %v5011_v27  ;;  %v5013_v36 = vcombine.high %v4951_v59, %v4951_v59  ;;  %v5020_v60 = vrot.slane %v4951_v59, %v9973_v48  ;;  %v8556_v55 = vpop.f32.mrb[5].mxu0 }
 0x2ac   : > { %v9227_v11 = vadd.f32 %v4823_v34, %v12320_v51 }
 0x2ad   : > { %v5550_v1 = vcombine.low %v5010_v32, %v5012_v25  ;;  %v5027_v18 = vrot.slane %v5013_v36, %v9973_v48  ;;  %v5028_v61 = vcombine.high %v5020_v60, %v5020_v60  ;;  %v5557_v63 = vrot.slane %v5549_v33, %v9973_v48 }
 0x2ae   : > { %v4952_v17 = vmax.f32 %v9227_v11, 0.0  ;;  %v4828_v28 = vpop.f32.mrb[6].mxu0 }
 0x2af   : > { %v5564_v51 = vrot.slane %v5550_v1, %v9973_v48  ;;  %v5029_v12 = vcombine.high %v5027_v18, %v5027_v18  ;;  %v5566_v23 = vcombine.low %v5020_v60, %v5028_v61  ;;  %v9228_v7 = vadd.f32 %v4828_v28, %v12328_v15  ;;  %v8559_v16 = vpop.f32.mrb[7].mxu0 }
 0x2b0   : > { %v5030_v14 = vcombine.high %v4952_v17, %v4952_v17  ;;  %v5037_v22 = vrot.slane %v4952_v17, %v9973_v48  ;;  %v12583_v16 = vadd.s32 5, %v12508_v20 }
 0x2b1   : > { %v5565_v62 = vcombine.low %v5557_v63, %v5564_v51  ;;  %v5567_v54 = vcombine.low %v5027_v18, %v5029_v12  ;;  %v4953_v15 = vmax.f32 %v9228_v7, 0.0  ;;  %v5574_v21 = vrot.slane %v5566_v23, %v9973_v48 }
 0x2b2   : > { %v5044_v44 = vrot.slane %v5030_v14, %v9973_v48  ;;  %v5045_v57 = vcombine.high %v5037_v22, %v5037_v22  ;;  %v5589_v35 = vrot.slane %v5037_v22, %v9973_v48  ;;  %v4833_v8 = vpop.f32.mrb[8].mxu0  ;;  %v12580_v7 = vadd.s32 4, %v12508_v20 }
 0x2b3   : > { %v5581_v43 = vrot.slane %v5567_v54, %v9973_v48  ;;  %v5989_v41 = vsel %vm12534_vm8, %v5565_v62, 0.0  ;;  %v5047_v24 = vcombine.high %v4953_v15, %v4953_v15  ;;  %v5054_v52 = vrot.slane %v4953_v15, %v9973_v48  ;;  %v8562_v49 = vpop.f32.mrb[9].mxu0 }
 0x2b4   : > { %v5590_v32 = vcombine.low %v5045_v57, %v5044_v44  ;;  %v5991_v27 = vsel %vm5461_vm11, %v5589_v35, 0.0  ;;  %6019 = vst [vmem:[#allocation3] sm:$0xff] %v5989_v41  ;;  %v5046_v59 = vcombine.high %v5044_v44, %v5044_v44  ;;  %v9229_v34 = vadd.f32 %v4833_v8, %v12339_v19 }
 0x2b5   : > { %v5582_v25 = vcombine.low %v5574_v21, %v5581_v43  ;;  %6021 = vst [vmem:[#allocation3 + $0x10] sm:$0x3] %v5991_v27  ;;  %v5061_v33 = vrot.slane %v5047_v24, %v9973_v48  ;;  %v5062_v36 = vcombine.high %v5054_v52, %v5054_v52  ;;  %vm5397_vm10 = vcmp.ge.s32.totalorder %v12580_v7, 0 }
 0x2b6   : > { %v5591_v55 = vcombine.low %v5046_v59, %v5054_v52  ;;  %v4954_v11 = vmax.f32 %v9229_v34, 0.0  ;;  %v4838_v1 = vpop.f32.mrb[10].mxu0  ;;  %v5598_v37 = vrot.slane %v5590_v32, %v9973_v48  ;;  %v7795_v59 = vld [vmem:[%s13959_s2 + $0x290] sm:$0xff]  ;;  %v7796_v34 = vld [vmem:[%s13959_s2 + $0x298] sm:$0xff]  ;;  %vm5407_vm11 = vcmp.lt.s32.totalorder %v12580_v7, 16 }
 0x2b7   : > { %v5990_v19 = vsel %vm12520_vm5, %v5582_v25, 0.0  ;;  %v5607_v18 = vcombine.low %v5062_v36, %v5061_v33  ;;  %v5063_v61 = vcombine.high %v5061_v33, %v5061_v33  ;;  %v9230_v63 = vadd.f32 %v4838_v1, %v12351_v6  ;;  %v8565_v17 = vpop.f32.mrb[11].mxu0  ;;  %vm12627_vm5 = vmand %vm5395_vm13, %vm5405_vm14 }
 0x2b8   : > { %6020 = vst [vmem:[#allocation3 + $0x8] sm:$0xff] %v5990_v19  ;;  %v5605_v28 = vrot.slane %v5591_v55, %v9973_v48  ;;  %v5064_v51 = vcombine.high %v4954_v11, %v4954_v11  ;;  %v5071_v12 = vrot.slane %v4954_v11, %v9973_v48  ;;  %v12577_v6 = vadd.s32 3, %v12508_v20  ;;  %vm12655_vm8 = vmand %vm12627_vm5, %vm5423_vm6 }
 0x2b9   : > { %v4955_v23 = vmax.f32 %v9230_v63, 0.0  ;;  %v5615_v15 = vrot.slane %v5607_v18, %v9973_v48  ;;  %v12632_v1 = vadd.s32 7, %v12508_v20  ;;  %vm12665_vm9 = vmand %vm12627_vm5, %vm14196_vm7 }
 0x2ba   : > { %v12585_v14 = vcombine.low %v5598_v37, %v5605_v28  ;;  %v5078_v22 = vrot.slane %v5064_v51, %v9973_v48  ;;  %v5079_v40 = vcombine.high %v5071_v12, %v5071_v12  ;;  %v5608_v62 = vcombine.low %v5063_v61, %v5071_v12  ;;  %v4843_v54 = vpop.f32.mrb[12].mxu0  ;;  %v7797_v37 = vld [vmem:[%s13959_s2 + $0x2a0] sm:$0xff] }
 0x2bb   : > { %v5081_v44 = vcombine.high %v4955_v23, %v4955_v23  ;;  %v5088_v57 = vrot.slane %v4955_v23, %v9973_v48  ;;  %v9231_v35 = vadd.f32 %v4843_v54, %v12359_v45  ;;  %v8568_v8 = vpop.f32.mrb[13].mxu0  ;;  %vm5396_vm3 = vcmp.ge.s32.totalorder %v12577_v6, 0 }
 0x2bc   : > { %v12602_v43 = vsel %vm12572_vm15, %v12585_v14, 0.0  ;;  %v5080_v41 = vcombine.high %v5078_v22, %v5078_v22  ;;  %v5622_v24 = vrot.slane %v5608_v62, %v9973_v48  ;;  %v5630_v52 = vrot.slane %v5079_v40, %v9973_v48 }
 0x2bd   : > { %6022 = vst [vmem:[#allocation3 + $0x18] sm:$0xff] %v12602_v43  ;;  %v5095_v49 = vrot.slane %v5081_v44, %v9973_v48  ;;  %v5096_v32 = vcombine.high %v5088_v57, %v5088_v57  ;;  %v4956_v27 = vmax.f32 %v9231_v35, 0.0  ;;  %vm5406_vm4 = vcmp.lt.s32.totalorder %v12577_v6, 16 }
 0x2be   : > { %v12611_v45 = vadd.s32 6, %v12508_v20  ;;  %v12619_v25 = vcombine.low %v5615_v15, %v5622_v24  ;;  %v5631_v33 = vcombine.low %v5078_v22, %v5080_v41  ;;  %v5994_v36 = vsel %vm12593_vm0, %v5630_v52, 0.0  ;;  %v4848_v11 = vpop.f32.mrb[14].mxu0  ;;  %vm12716_vm13 = vmand %vm5396_vm3, %vm5406_vm4 }
 0x2bf   : > { %6024 = vst [vmem:[#allocation3 + $0x28] sm:$0x3] %v5994_v36  ;;  %v5097_v19 = vcombine.high %v5095_v49, %v5095_v49  ;;  %v5632_v18 = vcombine.low %v5088_v57, %v5096_v32  ;;  %v5098_v61 = vcombine.high %v4956_v27, %v4956_v27  ;;  %v5105_v63 = vrot.slane %v4956_v27, %v9973_v48  ;;  %v8571_v17 = vpop.f32.mrb[15].mxu0  ;;  %v7799_v36 = vld [vmem:[%s13959_s2 + $0x2b0] sm:$0xff]  ;;  %vm12740_vm14 = vmand %vm12716_vm13, %vm5423_vm6 }
 0x2c0   : > { %v5639_v28 = vrot.slane %v5631_v33, %v9973_v48  ;;  %v12645_v51 = vsel %vm12556_vm12, %v12619_v25, 0.0  ;;  %v9232_v12 = vadd.f32 %v4848_v11, %v12364_v10  ;;  %v12648_v23 = vpack.c.bf16 %v7796_v34, %v7795_v59  ;;  %v7800_v11 = vld [vmem:[%s13959_s2 + $0x2b8] sm:$0xff]  ;;  %vm12797_vm3 = vmand %vm5397_vm10, %vm5407_vm11 }
 0x2c1   : > { %6023 = vst [vmem:[#allocation3 + $0x20] sm:$0xff] %v12645_v51  ;;  %v5646_v40 = vrot.slane %v5632_v18, %v9973_v48  ;;  %v5648_v62 = vcombine.low %v5095_v49, %v5097_v19  ;;  %v5112_v54 = vrot.slane %v5098_v61, %v9973_v48  ;;  %v5113_v15 = vcombine.high %v5105_v63, %v5105_v63  ;;  %vm12825_vm4 = vmand %vm12797_vm3, %vm5423_vm6 }
 0x2c2   : > { %v4957_v21 = vmax.f32 %v9232_v12, 0.0  ;;  %v4853_v44 = vpop.f32.mrb[16].mxu0  ;;  %v6114_v57 = vrot.slane %v12602_v43, 1  ;;  %v6115_v35 = vrot.slane %v12645_v51, 1  ;;  %v12671_v8 = vpack.c.bf16 %v7798_v3, %v7797_v37 }
 0x2c3   : > { %v12673_v41 = vcombine.low %v5639_v28, %v5646_v40  ;;  %v5656_v24 = vrot.slane %v5648_v62, %v9973_v48  ;;  %v5649_v52 = vcombine.low %v5105_v63, %v5113_v15  ;;  %v5671_v49 = vrot.slane %v5112_v54, %v9973_v48  ;;  %v8574_v32 = vpop.f32.mrb[17].mxu0 }
 0x2c4   : > { %v5114_v27 = vcombine.high %v5112_v54, %v5112_v54  ;;  %v5115_v59 = vcombine.high %v4957_v21, %v4957_v21  ;;  %v5122_v34 = vrot.slane %v4957_v21, %v9973_v48  ;;  %v9233_v33 = vadd.f32 %v4853_v44, %v12381_v50 }
 0x2c5   : > { %v12688_v19 = vsel %vm12655_vm8, %v12673_v41, 0.0  ;;  %v5663_v18 = vrot.slane %v5649_v52, %v9973_v48  ;;  %v5997_v61 = vsel %vm12665_vm9, %v5671_v49, 0.0  ;;  %v12694_v50 = vsel %vm14201_vm2, %v6114_v57, %v6115_v35 }
 0x2c6   : > { %6025 = vst [vmem:[#allocation3 + $0x30] sm:$0xff] %v12688_v19  ;;  %6027 = vst [vmem:[#allocation3 + $0x40] sm:$0x3] %v5997_v61  ;;  %v5129_v63 = vrot.slane %v5115_v59, %v9973_v48  ;;  %v5130_v17 = vcombine.high %v5122_v34, %v5122_v34  ;;  %v5672_v37 = vcombine.low %v5114_v27, %v5122_v34  ;;  %v4958_v3 = vmax.f32 %v9233_v33, 0.0  ;;  %v4858_v28 = vpop.f32.mrb[18].mxu0 }
 0x2c7   : > { %6410 = vmatprep.mubr.f32.mxu0 %v12694_v50  ;;  %v12701_v12 = vld [vmem:[#allocation3 + $0x28] sm:$0x3]  ;;  %v12703_v40 = vcombine.low %v5656_v24, %v5663_v18  ;;  %v9234_v62 = vadd.f32 %v4858_v28, %v12395_v53  ;;  %v8577_v54 = vpop.f32.mrb[19].mxu0  ;;  %v12710_v10 = vpack.c.bf16 %v7800_v11, %v7799_v36  ;;  %v14548_v21 = vmov 0 }
 0x2c8   : > { %v6117_v15 = vrot.slane %v12701_v12, 1  ;;  %9566 = vmatmul.mubr.msk.f32.vlgmr.msra.gmra.mrb[46].mxu0 %vm12572_vm15, %v12585_v14  ;;  %v14549_v21 = vsel %vm12716_vm13, 4294967295, %v14548_v21  ;;  %v5673_v44 = vcombine.low %v5130_v17, %v5129_v63  ;;  %v5680_v53 = vrot.slane %v5672_v37, %v9973_v48  ;;  %vm12759_vm15 = vmand %vm12716_vm13, %vm14196_vm7 }
 0x2c9   : > { %14550 = vst [vmem:[#allocation30_spill] sm:$0xff] %v14549_v21  ;;  %v5131_v57 = vcombine.high %v5129_v63, %v5129_v63  ;;  %v5132_v24 = vcombine.high %v4958_v3, %v4958_v3  ;;  %v12724_v29 = vsel %vm12627_vm5, %v12703_v40, 0.0  ;;  %v5139_v14 = vrot.slane %v4958_v3, %v9973_v48 }
 0x2ca   : > { %v4959_v52 = vmax.f32 %v9234_v62, 0.0  ;;  %v12728_v49 = vsel %vm14201_vm2, %v6115_v35, %v6117_v15  ;;  %6026 = vst [vmem:[#allocation3 + $0x38] sm:$0xff] %v12724_v29  ;;  %v5687_v6 = vrot.slane %v5673_v44, %v9973_v48  ;;  %v4863_v27 = vpop.f32.mrb[20].mxu0  ;;  %v6119_v59 = vrot.slane %v12688_v19, 1 }
 0x2cb   : > { %v5146_v32 = vrot.slane %v5132_v24, %v9973_v48  ;;  %6415 = vmatprep.mubr.f32.mxu1 %v12728_v49  ;;  %v6120_v34 = vrot.slane %v12724_v29, 1  ;;  %v5147_v33 = vcombine.high %v5139_v14, %v5139_v14  ;;  %v5689_v36 = vcombine.low %v5131_v57, %v5139_v14  ;;  %v8580_v61 = vpop.f32.mrb[21].mxu0  ;;  %v7801_v24 = vld [vmem:[%s13959_s2 + $0x2c0] sm:$0xff]  ;;  %v7802_v14 = vld [vmem:[%s13959_s2 + $0x2c8] sm:$0xff] }
 0x2cc   : > { %v5149_v11 = vcombine.high %v4959_v52, %v4959_v52  ;;  %v5156_v18 = vrot.slane %v4959_v52, %v9973_v48  ;;  %9567 = vmatmul.mubr.msk.f32.vlgmr.msra.gmra.mrb[46].mxu1 %vm12556_vm12, %v12619_v25  ;;  %v12748_v63 = vcombine.low %v5680_v53, %v5687_v6  ;;  %v9235_v37 = vadd.f32 %v4863_v27, %v12409_v13 }
 0x2cd   : > { %v5148_v17 = vcombine.high %v5146_v32, %v5146_v32  ;;  %v12752_v3 = vsel %vm14201_vm2, %v6119_v59, %v6120_v34  ;;  %9036 = vmatpush3.bf16.msra.mxu1 %v12491_v46  ;;  %v5690_v60 = vcombine.low %v5147_v33, %v5146_v32  ;;  %v5697_v25 = vrot.slane %v5689_v36, %v9973_v48  ;;  %v12766_v13 = vld [vmem:[#allocation3 + $0x40] sm:$0x3] }
 0x2ce   : > { %v5163_v62 = vrot.slane %v5149_v11, %v9973_v48  ;;  %v5164_v54 = vcombine.high %v5156_v18, %v5156_v18  ;;  %6420 = vmatprep.mubr.f32.mxu1 %v12752_v3  ;;  %v12771_v46 = vsel %vm12740_vm14, %v12748_v63, 0.0  ;;  %v4960_v44 = vmax.f32 %v9235_v37, 0.0  ;;  %v4868_v53 = vpop.f32.mrb[22].mxu0  ;;  %9038 = vmatprep.subr.bf16.mxu1 %v12648_v23 }
 0x2cf   : > { %v5712_v15 = vrot.slane %v5148_v17, %v9973_v48  ;;  %v6122_v57 = vrot.slane %v12766_v13, 1  ;;  %6028 = vst [vmem:[#allocation3 + $0x48] sm:$0xff] %v12771_v46  ;;  %v5704_v52 = vrot.slane %v5690_v60, %v9973_v48  ;;  %v9236_v27 = vadd.f32 %v4868_v53, %v12423_v30  ;;  %v8583_v59 = vpop.f32.mrb[23].mxu0 }
 0x2d0   : > { %v5165_v6 = vcombine.high %v5163_v62, %v5163_v62  ;;  %v5713_v32 = vcombine.low %v5156_v18, %v5164_v54  ;;  %vm5398_vm12 = vcmp.ge.s32.totalorder %v12583_v16, 0  ;;  %vm5408_vm0 = vcmp.lt.s32.totalorder %v12583_v16, 16  ;;  %9568 = vmatmul.mubr.msk.f32.gmra.mrb[48].mxu1 %vm12655_vm8, %v12673_v41  ;;  %vm12837_vm8 = vmand %vm12797_vm3, %vm14196_vm7  ;;  %v7805_v16 = vld [vmem:[%s13959_s2 + $0x2e0] sm:$0xff] }
 0x2d1   : > { %v6000_v33 = vsel %vm12759_vm15, %v5712_v15, 0.0  ;;  %v5166_v36 = vcombine.high %v4960_v44, %v4960_v44  ;;  %v5173_v11 = vrot.slane %v4960_v44, %v9973_v48  ;;  %v14555_v30 = vmov 0  ;;  %9040 = vmatpush3.bf16.msra.mxu1 %v12648_v23  ;;  %vm12895_vm10 = vmand %vm5398_vm12, %vm5408_vm0 }
 0x2d2   : > { %v14556_v30 = vsel %vm12797_vm3, 4294967295, %v14555_v30  ;;  %v12802_v18 = vsel %vm14201_vm2, %v6120_v34, %v6122_v57  ;;  %v12805_v22 = vcombine.low %v5697_v25, %v5704_v52  ;;  %6030 = vst [vmem:[#allocation3 + $0x58] sm:$0x3] %v6000_v33  ;;  %v5714_v41 = vcombine.low %v5163_v62, %v5165_v6  ;;  %9042 = vmatprep.subr.bf16.mxu1 %v12671_v8  ;;  %v4873_v34 = vpop.f32.mrb[24].mxu0  ;;  %vm12923_vm11 = vmand %vm12895_vm10, %vm5423_vm6 }
 0x2d3   : > { %14557 = vst [vmem:[#allocation34_spill] sm:$0xff] %v14556_v30  ;;  %v4961_v61 = vmax.f32 %v9236_v27, 0.0  ;;  %6425 = vmatprep.mubr.f32.mxu1 %v12802_v18  ;;  %v12809_v17 = vpack.c.bf16 %v7802_v14, %v7801_v24  ;;  %v5721_v7 = vrot.slane %v5713_v32, %v9973_v48  ;;  %v5180_v37 = vrot.slane %v5166_v36, %v9973_v48  ;;  %v8586_v44 = vpop.f32.mrb[25].mxu0 }
 0x2d4   : > { %14558 = vst [vmem:[#allocation46_spill] sm:$0xff] %v12805_v22  ;;  %v5181_v28 = vcombine.high %v5173_v11, %v5173_v11  ;;  %v6124_v60 = vrot.slane %v12771_v46, 1  ;;  %v12817_v23 = vsel %vm12716_vm13, %v12805_v22, 0.0  ;;  %v5728_v25 = vrot.slane %v5714_v41, %v9973_v48  ;;  %9569 = vmatmul.mubr.msk.f32.gmra.mrb[50].mxu1 %vm12627_vm5, %v12703_v40 }
 0x2d5   : > { %v5183_v62 = vcombine.high %v4961_v61, %v4961_v61  ;;  %v5190_v54 = vrot.slane %v4961_v61, %v9973_v48  ;;  %v14559_v15 = vmov 0  ;;  %6029 = vst [vmem:[#allocation3 + $0x50] sm:$0xff] %v12817_v23  ;;  %v5182_v53 = vcombine.high %v5180_v37, %v5180_v37  ;;  %9044 = vmatpush3.bf16.msra.mxu1 %v12671_v8  ;;  %v7803_v8 = vld [vmem:[%s13959_s2 + $0x2d0] sm:$0xff] }
 0x2d6   : > { %v14560_v15 = vsel %vm12825_vm4, 4294967295, %v14559_v15  ;;  %v5730_v57 = vcombine.low %v5173_v11, %v5181_v28  ;;  %v9237_v14 = vadd.f32 %v4873_v34, %v12437_v42  ;;  %v6125_v52 = vrot.slane %v12817_v23, 1  ;;  %9046 = vmatprep.subr.bf16.mxu1 %v12710_v10  ;;  %v4878_v36 = vpop.f32.mrb[26].mxu0  ;;  %v7804_v11 = vld [vmem:[%s13959_s2 + $0x2d8] sm:$0xff] }
 0x2d7   : > { %14561 = vst [vmem:[#allocation53_spill] sm:$0xff] %v14560_v15  ;;  %v12844_v55 = vcombine.low %v5721_v7, %v5728_v25  ;;  %v5197_v40 = vrot.slane %v5183_v62, %v9973_v48  ;;  %v5198_v6 = vcombine.high %v5190_v54, %v5190_v54  ;;  %v5753_v32 = vrot.slane %v5190_v54, %v9973_v48  ;;  %v8589_v28 = vpop.f32.mrb[27].mxu0 }
 0x2d8   : > { %v5731_v27 = vcombine.low %v5180_v37, %v5182_v53  ;;  %v5738_v59 = vrot.slane %v5730_v57, %v9973_v48  ;;  %v4962_v33 = vmax.f32 %v9237_v14, 0.0  ;;  %v12851_v42 = vsel %vm14201_vm2, %v6124_v60, %v6125_v52 }
 0x2d9   : > { %14564 = vst [vmem:[#allocation52_spill] sm:$0xff] %v12844_v55  ;;  %v5754_v41 = vcombine.low %v5198_v6, %v5197_v40  ;;  %v12862_v61 = vsel %vm12825_vm4, %v12844_v55, 0.0  ;;  %v6003_v7 = vsel %vm12837_vm8, %v5753_v32, 0.0  ;;  %v5199_v37 = vcombine.high %v5197_v40, %v5197_v40  ;;  %6430 = vmatprep.mubr.f32.mxu1 %v12851_v42  ;;  %v12876_v54 = vld [vmem:[#allocation3 + $0x58] sm:$0x3]  ;;  %9048 = vmatpush3.bf16.msra.mxu1 %v12710_v10 }
 0x2da   : > { %v5745_v34 = vrot.slane %v5731_v27, %v9973_v48  ;;  %6031 = vst [vmem:[#allocation3 + $0x60] sm:$0xff] %v12862_v61  ;;  %6033 = vst [vmem:[#allocation3 + $0x70] sm:$0x3] %v6003_v7  ;;  %v5200_v60 = vcombine.high %v4962_v33, %v4962_v33  ;;  %v5207_v25 = vrot.slane %v4962_v33, %v9973_v48  ;;  %vm5399_vm5 = vcmp.ge.s32.totalorder %v12611_v45, 0  ;;  %v4883_v40 = vpop.f32.mrb[28].mxu0  ;;  %v7806_v33 = vld [vmem:[%s13959_s2 + $0x2e8] sm:$0xff] }
 0x2db   : > { %v9238_v62 = vadd.f32 %v4878_v36, %v12451_v56  ;;  %vm5409_vm9 = vcmp.lt.s32.totalorder %v12611_v45, 16  ;;  %9570 = vmatmul.mubr.msk.f32.gmra.mrb[52].mxu1 %vm12740_vm14, %v12748_v63  ;;  %v6127_v44 = vrot.slane %v12876_v54, 1  ;;  %v12881_v53 = vadd.s32 8, %v12508_v20  ;;  %9050 = vmatprep.subr.bf16.mxu1 %v12809_v17  ;;  %v8592_v27 = vpop.f32.mrb[29].mxu0  ;;  %vm12958_vm14 = vmand %vm12895_vm10, %vm14196_vm7  ;;  %v6265_v45 = vld [vmem:[%s13959_s2 + $0x80] sm:$0xff] }
 0x2dc   : > { %v12884_v57 = vadd.s32 9, %v12508_v20  ;;  %v12886_v56 = vpack.c.bf16 %v7804_v11, %v7803_v8  ;;  %v12888_v24 = vcombine.low %v5738_v59, %v5745_v34  ;;  %v5214_v14 = vrot.slane %v5200_v60, %v9973_v48  ;;  %vm12988_vm0 = vmand %vm5399_vm5, %vm5409_vm9 }
 0x2dd   : > { %v5215_v35 = vcombine.high %v5207_v25, %v5207_v25  ;;  %v14565_v63 = vmov 0  ;;  %v5755_v10 = vcombine.low %v5199_v37, %v5207_v25  ;;  %v5762_v20 = vrot.slane %v5754_v41, %v9973_v48  ;;  %9052 = vmatpush3.bf16.msra.mxu1 %v12809_v17  ;;  %v7808_v17 = vld [vmem:[%s13959_s2 + $0x2f8] sm:$0xff]  ;;  %vm13016_vm8 = vmand %vm12988_vm0, %vm5423_vm6 }
 0x2de   : > { %v14566_v63 = vsel %vm12895_vm10, 4294967295, %v14565_v63  ;;  %v4963_v6 = vmax.f32 %v9238_v62, 0.0  ;;  %v9239_v32 = vadd.f32 %v4883_v40, %v12465_v4  ;;  %v12903_v59 = vsel %vm14201_vm2, %v6125_v52, %v6127_v44  ;;  %v4888_v25 = vpop.f32.mrb[30].mxu0  ;;  %9054 = vmatprep.subr.bf16.mxu1 %v12886_v56  ;;  %vm13027_vm5 = vmand %vm12988_vm0, %vm14196_vm7 }
 0x2df   : > { %14567 = vst [vmem:[#allocation55_spill] sm:$0xff] %v14566_v63  ;;  %v12914_v36 = vsel %vm12797_vm3, %v12888_v24, 0.0  ;;  %v5769_v8 = vrot.slane %v5755_v10, %v9973_v48  ;;  %v5771_v4 = vcombine.low %v5215_v35, %v5214_v14  ;;  %v5216_v11 = vcombine.high %v5214_v14, %v5214_v14  ;;  %6435 = vmatprep.mubr.f32.mxu1 %v12903_v59 }
 0x2e0   : > { %6032 = vst [vmem:[#allocation3 + $0x68] sm:$0xff] %v12914_v36  ;;  %v14568_v52 = vmov 0  ;;  %v5217_v41 = vcombine.high %v4963_v6, %v4963_v6  ;;  %v5224_v7 = vrot.slane %v4963_v6, %v9973_v48  ;;  %v4964_v37 = vmax.f32 %v9239_v32, 0.0  ;;  %9571 = vmatmul.mubr.msk.f32.gmra.mrb[54].mxu1 %vm12716_vm13, %v12805_v22  ;;  %v8595_v6 = vpop.f32.mrb[31].mxu0 }
 0x2e1   : > { %v14569_v52 = vsel %vm12923_vm11, 4294967295, %v14568_v52  ;;  %v6130_v28 = vrot.slane %v12914_v36, 1  ;;  %v12932_v34 = vcombine.low %v5762_v20, %v5769_v8  ;;  %v5779_v60 = vrot.slane %v5771_v4, %v9973_v48  ;;  %v12940_v32 = vld [vmem:[#allocation3 + $0x70] sm:$0x3]  ;;  %9056 = vmatpush3.bf16.msra.mxu1 %v12886_v56 }
 0x2e2   : > { %14570 = vst [vmem:[#allocation80_spill] sm:$0xff] %v14569_v52  ;;  %v6129_v62 = vrot.slane %v12862_v61, 1  ;;  %v12937_v44 = vpack.c.bf16 %v7806_v33, %v7805_v16  ;;  %v5231_v14 = vrot.slane %v5217_v41, %v9973_v48  ;;  %v5232_v35 = vcombine.high %v5224_v7, %v5224_v7  ;;  %v7807_v20 = vld [vmem:[%s13959_s2 + $0x2f0] sm:$0xff]  ;;  %v6266_v16 = vld [vmem:[%s13959_s2 + $0x88] sm:$0xff] }
 0x2e3   : > { %14571 = vst [vmem:[#allocation57_spill] sm:$0xff] %v12932_v34  ;;  %v5772_v10 = vcombine.low %v5216_v11, %v5224_v7  ;;  %v5234_v40 = vcombine.high %v4964_v37, %v4964_v37  ;;  %v12952_v27 = vsel %vm12923_vm11, %v12932_v34, 0.0  ;;  %v5241_v33 = vrot.slane %v4964_v37, %v9973_v48 }
 0x2e4   : > { %v9240_v8 = vadd.f32 %v4888_v25, %v12479_v5  ;;  %v12965_v4 = vsel %vm14201_vm2, %v6129_v62, %v6130_v28  ;;  %6034 = vst [vmem:[#allocation3 + $0x78] sm:$0xff] %v12952_v27  ;;  %v5233_v11 = vcombine.high %v5231_v14, %v5231_v14  ;;  %v5794_v7 = vrot.slane %v5232_v35, %v9973_v48  ;;  %v4893_v25 = vpop.f32.mrb[32].mxu0 }
 0x2e5   : > { %v5786_v41 = vrot.slane %v5772_v10, %v9973_v48  ;;  %v5248_v6 = vrot.slane %v5234_v40, %v9973_v48  ;;  %vm5400_vm15 = vcmp.ge.s32.totalorder %v12632_v1, 0  ;;  %vm5410_vm12 = vcmp.lt.s32.totalorder %v12632_v1, 16  ;;  %6440 = vmatprep.mubr.f32.mxu1 %v12965_v4  ;;  %v8598_v15 = vpop.f32.mrb[33].mxu0  ;;  %9058 = vmatprep.subr.bf16.mxu1 %v12937_v44 }
 0x2e6   : > { %v5249_v37 = vcombine.high %v5241_v33, %v5241_v33  ;;  %v4965_v5 = vmax.f32 %v9240_v8, 0.0  ;;  %9572 = vmatmul.mubr.msk.f32.gmra.mrb[56].mxu1 %vm12825_vm4, %v12844_v55  ;;  %v6132_v62 = vrot.slane %v12940_v32, 1  ;;  %v12978_v10 = vpack.c.bf16 %v7808_v17, %v7807_v20 }
 0x2e7   : > { %v12980_v35 = vcombine.low %v5779_v60, %v5786_v41  ;;  %v5795_v40 = vcombine.low %v5231_v14, %v5233_v11  ;;  %v6006_v21 = vsel %vm12958_vm14, %v5794_v7, 0.0  ;;  %v5250_v22 = vcombine.high %v5248_v6, %v5248_v6  ;;  %9060 = vmatpush3.bf16.msra.mxu1 %v12937_v44 }
 0x2e8   : > { %6036 = vst [vmem:[#allocation3 + $0x88] sm:$0x3] %v6006_v21  ;;  %v5796_v20 = vcombine.low %v5241_v33, %v5249_v37  ;;  %v5251_v60 = vcombine.high %v4965_v5, %v4965_v5  ;;  %v5258_v14 = vrot.slane %v4965_v5, %v9973_v48  ;;  %v9241_v17 = vadd.f32 %v4893_v25, %v12481_v2 }
 0x2e9   : > { %14574 = vst [vmem:[#allocation85_spill] sm:$0xff] %v12980_v35  ;;  %v5803_v15 = vrot.slane %v5795_v40, %v9973_v48  ;;  %v13006_v21 = vsel %vm12895_vm10, %v12980_v35, 0.0  ;;  %v5812_v56 = vcombine.low %v5248_v6, %v5250_v22  ;;  %v13009_v2 = vsel %vm14201_vm2, %v6130_v28, %v6132_v62  ;;  %v4898_v22 = vpop.f32.mrb[34].mxu0  ;;  %9062 = vmatprep.subr.bf16.mxu1 %v12978_v10 }
 0x2ea   : > { %14577 = vst [vmem:[#allocation37_spill] sm:$0xff] %v13009_v2  ;;  %6035 = vst [vmem:[#allocation3 + $0x80] sm:$0xff] %v13006_v21  ;;  %v14578_v33 = vmov 0  ;;  %v5810_v11 = vrot.slane %v5796_v20, %v9973_v48  ;;  %v5265_v41 = vrot.slane %v5251_v60, %v9973_v48  ;;  %v5266_v7 = vcombine.high %v5258_v14, %v5258_v14  ;;  %6445 = vmatprep.mubr.f32.mxu1 %v13009_v2  ;;  %v8601_v5 = vpop.f32.mrb[35].mxu0 }
 0x2eb   : > { %v14579_v33 = vsel %vm13016_vm8, 4294967295, %v14578_v33  ;;  %v4966_v37 = vmax.f32 %v9241_v17, 0.0  ;;  %v9242_v6 = vadd.f32 %v4898_v22, %v12483_v26  ;;  %9573 = vmatmul.mubr.msk.f32.gmra.mrb[58].mxu1 %vm12797_vm3, %v12888_v24  ;;  %v6134_v25 = vrot.slane %v12952_v27, 1 }
 0x2ec   : > { %14580 = vst [vmem:[#allocation42_spill] sm:$0xff] %v14579_v33  ;;  %v6135_v62 = vrot.slane %v13006_v21, 1  ;;  %v9065_v40 = vpack.c.bf16 %v6266_v16, %v6265_v45  ;;  %v13037_v20 = vcombine.low %v5803_v15, %v5810_v11  ;;  %v5813_v60 = vcombine.low %v5258_v14, %v5266_v7  ;;  %v4903_v16 = vpop.f32.mrb[36].mxu0  ;;  %9064 = vmatpush3.bf16.msra.mxu1 %v12978_v10 }
 0x2ed   : > { %v5835_v17 = vrot.slane %v5265_v41, %v9973_v48  ;;  %v5267_v2 = vcombine.high %v5265_v41, %v5265_v41  ;;  %v5268_v55 = vcombine.high %v4966_v37, %v4966_v37  ;;  %v5275_v26 = vrot.slane %v4966_v37, %v9973_v48  ;;  %v8604_v7 = vpop.f32.mrb[37].mxu0 }
 0x2ee   : > { %14583 = vst [vmem:[#allocation47_spill] sm:$0xff] %v13037_v20  ;;  %v4967_v22 = vmax.f32 %v9242_v6, 0.0  ;;  %v13043_v5 = vsel %vm14201_vm2, %v6134_v25, %v6135_v62  ;;  %v5820_v30 = vrot.slane %v5812_v56, %v9973_v48  ;;  %v13050_v14 = vsel %vm13016_vm8, %v13037_v20, 0.0  ;;  %9066 = vmatprep.subr.bf16.mxu1 %v9065_v40 }
 0x2ef   : > { %v5827_v45 = vrot.slane %v5813_v60, %v9973_v48  ;;  %v6009_v44 = vsel %vm13027_vm5, %v5835_v17, 0.0  ;;  %6450 = vmatprep.mubr.f32.mxu1 %v13043_v5  ;;  %vm5401_vm9 = vcmp.ge.s32.totalorder %v12881_v53, 0  ;;  %vm5411_vm14 = vcmp.lt.s32.totalorder %v12881_v53, 16  ;;  %v13062_v37 = vld [vmem:[#allocation3 + $0x88] sm:$0x3]  ;;  %vm13070_vm5 = vmand %vm5400_vm15, %vm5410_vm12 }
 0x2f0   : > { %6039 = vst [vmem:[#allocation3 + $0xa0] sm:$0x3] %v6009_v44  ;;  %v5282_v15 = vrot.slane %v5268_v55, %v9973_v48  ;;  %v5283_v56 = vcombine.high %v5275_v26, %v5275_v26  ;;  %v5836_v11 = vcombine.low %v5267_v2, %v5275_v26  ;;  %v5285_v41 = vcombine.high %v4967_v22, %v4967_v22  ;;  %v4908_v44 = vpop.f32.mrb[38].mxu0  ;;  %vm13092_vm15 = vmand %vm13070_vm5, %vm5423_vm6 }
 0x2f1   : > { %9574 = vmatmul.mubr.msk.f32.gmra.mrb[60].mxu1 %vm12923_vm11, %v12932_v34  ;;  %v13064_v28 = vcombine.low %v5820_v30, %v5827_v45  ;;  %v5292_v55 = vrot.slane %v4967_v22, %v9973_v48  ;;  %v9243_v2 = vadd.f32 %v4903_v16, %v12493_v39  ;;  %v6137_v25 = vrot.slane %v13062_v37, 1  ;;  %vm13103_vm12 = vmand %vm13070_vm5, %vm14196_vm7 }
 0x2f2   : > { %v5837_v60 = vcombine.low %v5283_v56, %v5282_v15  ;;  %v5844_v30 = vrot.slane %v5836_v11, %v9973_v48  ;;  %v5284_v17 = vcombine.high %v5282_v15, %v5282_v15  ;;  %v5299_v26 = vrot.slane %v5285_v41, %v9973_v48  ;;  %v8607_v11 = vpop.f32.mrb[39].mxu0 }
 0x2f3   : > { %v13083_v1 = vsel %vm12988_vm0, %v13064_v28, 0.0  ;;  %v5300_v45 = vcombine.high %v5292_v55, %v5292_v55  ;;  %v4968_v22 = vmax.f32 %v9243_v2, 0.0  ;;  %v13086_v39 = vsel %vm14201_vm2, %v6135_v62, %v6137_v25  ;;  %v4913_v11 = vpop.f32.mrb[40].mxu0 }
 0x2f4   : > { %14586 = vst [vmem:[#allocation50_spill] sm:$0xff] %v13086_v39  ;;  %v14587_v10 = vmov 0  ;;  %v5851_v40 = vrot.slane %v5837_v60, %v9973_v48  ;;  %v5301_v16 = vcombine.high %v5299_v26, %v5299_v26  ;;  %v5853_v15 = vcombine.low %v5284_v17, %v5292_v55  ;;  %6455 = vmatprep.mubr.f32.mxu1 %v13086_v39 }
 0x2f5   : > { %v14588_v10 = vsel %vm13092_vm15, 4294967295, %v14587_v10  ;;  %v9244_v56 = vadd.f32 %v4908_v44, %v12496_v47  ;;  %v5854_v41 = vcombine.low %v5300_v45, %v5299_v26  ;;  %v5302_v7 = vcombine.high %v4968_v22, %v4968_v22  ;;  %9575 = vmatmul.mubr.msk.f32.gmra.mrb[62].mxu1 %vm12895_vm10, %v12980_v35 }
 0x2f6   : > { %v5309_v2 = vrot.slane %v4968_v22, %v9973_v48  ;;  %v6139_v47 = vrot.slane %v13050_v14, 1  ;;  %v13112_v55 = vcombine.low %v5844_v30, %v5851_v40  ;;  %v5861_v25 = vrot.slane %v5853_v15, %v9973_v48 }
 0x2f7   : > { %v5876_v60 = vrot.slane %v5301_v16, %v9973_v48  ;;  %v4969_v17 = vmax.f32 %v9244_v56, 0.0  ;;  %v5868_v44 = vrot.slane %v5854_v41, %v9973_v48  ;;  %v5316_v26 = vrot.slane %v5302_v7, %v9973_v48  ;;  %v13119_v39 = vld [vmem:[#allocation3 + $0xa0] sm:$0x3]  ;;  %v8610_v56 = vpop.f32.mrb[41].mxu0 }
 0x2f8   : > { %v5317_v45 = vcombine.high %v5309_v2, %v5309_v2  ;;  %v6140_v22 = vrot.slane %v13083_v1, 1  ;;  %v13124_v30 = vsel %vm13092_vm15, %v13112_v55, 0.0  ;;  %vm5402_vm1 = vcmp.ge.s32.totalorder %v12884_v57, 0 }
 0x2f9   : > { %v6012_v40 = vsel %vm13103_vm12, %v5876_v60, 0.0  ;;  %v5319_v16 = vcombine.high %v4969_v17, %v4969_v17  ;;  %v5326_v15 = vrot.slane %v4969_v17, %v9973_v48  ;;  %vm5412_vm7 = vcmp.lt.s32.totalorder %v12884_v57, 16  ;;  %vm13139_vm12 = vmand %vm5401_vm9, %vm5411_vm14 }
 0x2fa   : > { %v13131_v41 = vcombine.low %v5861_v25, %v5868_v44  ;;  %6042 = vst [vmem:[#allocation3 + $0xb8] sm:$0x3] %v6012_v40  ;;  %v5318_v7 = vcombine.high %v5316_v26, %v5316_v26  ;;  %v5877_v63 = vcombine.low %v5309_v2, %v5317_v45  ;;  %v9245_v35 = vadd.f32 %v4913_v11, %v12498_v38  ;;  %v4918_v45 = vpop.f32.mrb[42].mxu0  ;;  %vm13167_vm9 = vmand %vm13139_vm12, %vm5423_vm6 }
 0x2fb   : > { %v5333_v52 = vrot.slane %v5319_v16, %v9973_v48  ;;  %v5334_v34 = vcombine.high %v5326_v15, %v5326_v15  ;;  %v14591_v62 = vmov 0  ;;  %v13144_v60 = vsel %vm14201_vm2, %v6139_v47, %v6140_v22  ;;  %v8613_v47 = vpop.f32.mrb[43].mxu0 }
 0x2fc   : > { %v14592_v62 = vsel %vm13139_vm12, 4294967295, %v14591_v62  ;;  %v6142_v25 = vrot.slane %v13119_v39, 1  ;;  %v13150_v38 = vsel %vm13070_vm5, %v13131_v41, 0.0  ;;  %v5878_v2 = vcombine.low %v5316_v26, %v5318_v7  ;;  %6460 = vmatprep.mubr.f32.mxu1 %v13144_v60 }
 0x2fd   : > { %14593 = vst [vmem:[#allocation60_spill] sm:$0xff] %v14592_v62  ;;  %v5885_v17 = vrot.slane %v5877_v63, %v9973_v48  ;;  %v4970_v44 = vmax.f32 %v9245_v35, 0.0  ;;  %v5335_v53 = vcombine.high %v5333_v52, %v5333_v52  ;;  %v5894_v11 = vcombine.low %v5326_v15, %v5334_v34  ;;  %9576 = vmatmul.mubr.msk.f32.gmra.mrb[64].mxu1 %vm13016_vm8, %v13037_v20 }
 0x2fe   : > { %v9246_v40 = vadd.f32 %v4918_v45, %v12500_v0  ;;  %v13159_v16 = vsel %vm14201_vm2, %v6140_v22, %v6142_v25  ;;  %v5892_v26 = vrot.slane %v5878_v2, %v9973_v48  ;;  %v6144_v0 = vrot.slane %v13124_v30, 1 }
 0x2ff   : > { %14594 = vst [vmem:[#allocation82_spill] sm:$0xff] %v13159_v16  ;;  %v5336_v56 = vcombine.high %v4970_v44, %v4970_v44  ;;  %v5343_v63 = vrot.slane %v4970_v44, %v9973_v48  ;;  %6465 = vmatprep.mubr.f32.mxu1 %v13159_v16  ;;  %v5895_v35 = vcombine.low %v5333_v52, %v5335_v53  ;;  %vm14597_vm14 = vcmp.le.s32.totalorder %v12512_v9, 16  ;;  %v4923_v53 = vpop.f32.mrb[44].mxu0 }
 0x300   : > { %v5902_v22 = vrot.slane %v5894_v11, %v9973_v48  ;;  %vm13178_vm2 = vmand %vm13139_vm12, %vm14597_vm14  ;;  %v4971_v7 = vmax.f32 %v9246_v40, 0.0  ;;  %v6145_v25 = vrot.slane %v13150_v38, 1  ;;  %v13183_v2 = vcombine.low %v5885_v17, %v5892_v26  ;;  %v8616_v20 = vpop.f32.mrb[45].mxu0 }
 0x301   : > { %v5350_v44 = vrot.slane %v5336_v56, %v9973_v48  ;;  %v5351_v45 = vcombine.high %v5343_v63, %v5343_v63  ;;  %v5917_v52 = vrot.slane %v5343_v63, %v9973_v48  ;;  %v5909_v11 = vrot.slane %v5895_v35, %v9973_v48  ;;  %9577 = vmatmul.mubr.msk.f32.gmra.mrb[66].mxu1 %vm12988_vm0, %v13064_v28  ;;  %v13193_v17 = vld [vmem:[#allocation3 + $0xb8] sm:$0x3]  ;;  %vm13210_vm14 = vmand %vm5402_vm1, %vm5412_vm7 }
 0x302   : > { %v5353_v47 = vcombine.high %v4971_v7, %v4971_v7  ;;  %v5360_v16 = vrot.slane %v4971_v7, %v9973_v48  ;;  %v9247_v33 = vadd.f32 %v4923_v53, %v12502_v58  ;;  %v13198_v26 = vsel %vm13167_vm9, %v13183_v2, 0.0  ;;  %vm13238_vm7 = vmand %vm13210_vm14, %vm5423_vm6 }
 0x303   : > { %v5918_v40 = vcombine.low %v5351_v45, %v5350_v44  ;;  %v6015_v56 = vsel %vm13178_vm2, %v5917_v52, 0.0  ;;  %v5352_v63 = vcombine.high %v5350_v44, %v5350_v44  ;;  %v13202_v35 = vcombine.low %v5902_v22, %v5909_v11 }
 0x304   : > { %6045 = vst [vmem:[#allocation3 + $0xd0] sm:$0x3] %v6015_v56  ;;  %v5367_v58 = vrot.slane %v5353_v47, %v9973_v48  ;;  %v5368_v20 = vcombine.high %v5360_v16, %v5360_v16  ;;  %v4972_v7 = vmax.f32 %v9247_v33, 0.0  ;;  %v14601_v45 = vmov 0 }
 0x305   : > { %14600 = vst [vmem:[#allocation58_spill] sm:$0xff] %v13202_v35  ;;  %v5926_v53 = vrot.slane %v5918_v40, %v9973_v48  ;;  %v14602_v45 = vsel %vm13210_vm14, 4294967295, %v14601_v45  ;;  %v5919_v15 = vcombine.low %v5352_v63, %v5360_v16  ;;  %vm14604_vm2 = vcmask 1046528  }
 0x306   : > { %14603 = vst [vmem:[#allocation86_spill] sm:$0xff] %v14602_v45  ;;  %v13215_v44 = vsel %vm14604_vm2, %v6144_v0, %v6145_v25  ;;  %v6147_v22 = vrot.slane %v13193_v17, 1  ;;  %v13221_v33 = vsel %vm13139_vm12, %v13202_v35, 0.0  ;;  %v5935_v52 = vcombine.low %v5368_v20, %v5367_v58  ;;  %vm14605_vm1 = vmmov %vm14604_vm2 }
 0x307   : > { %v5369_v11 = vcombine.high %v5367_v58, %v5367_v58  ;;  %v5376_v47 = vrot.slane %v4972_v7, %v9973_v48  ;;  %6470 = vmatprep.mubr.f32.mxu1 %v13215_v44  ;;  %v5933_v57 = vrot.slane %v5919_v15, %v9973_v48  ;;  %v6149_v0 = vrot.slane %v13198_v26, 1 }
 0x308   : > { %9578 = vmatmul.mubr.msk.f32.gmra.mrb[68].mxu1 %vm13092_vm15, %v13112_v55  ;;  %v13230_v16 = vsel %vm14605_vm1, %v6145_v25, %v6147_v22  ;;  %v6150_v40 = vrot.slane %v13221_v33, 1  ;;  %v14606_v56 = vmov 0  ;;  %vm14610_vm2 = vcmp.le.s32.totalorder %v12512_v9, 16 }
 0x309   : > { %v14607_v56 = vsel %vm13238_vm7, 4294967295, %v14606_v56  ;;  %v5377_v63 = vcombine.high %v5376_v47, %v5376_v47  ;;  %v5936_v58 = vcombine.low %v5369_v11, %v5376_v47  ;;  %6475 = vmatprep.mubr.f32.mxu1 %v13230_v16  ;;  %v13243_v20 = vcombine.low %v5926_v53, %v5933_v57  ;;  %vm5488_vm1 = vmand %vm13210_vm14, %vm14610_vm2 }
 0x30a   : > { %14608 = vst [vmem:[#allocation67_spill] sm:$0xff] %v14607_v56  ;;  %vm14611_vm15 = vcmask 1046528   ;;  %v5943_v31 = vrot.slane %v5935_v52, %v9973_v48  ;;  %v6185_v57 = vrot.slane %v12645_v51, 2  ;;  %v6268_v51 = vld [vmem:[%s13959_s2 + $0x98] sm:$0xff] }
 0x30b   : > { %14609 = vst [vmem:[#allocation77_spill] sm:$0xff] %v13243_v20  ;;  %v13250_v25 = vsel %vm14611_vm15, %v6149_v0, %v6150_v40  ;;  %v5950_v7 = vrot.slane %v5936_v58, %v9973_v48  ;;  %v5958_v15 = vrot.slane %v5377_v63, %v9973_v48  ;;  %v13258_v22 = vsel %vm13238_vm7, %v13243_v20, 0.0  ;;  %v13263_v9 = vld [vmem:[#allocation3 + $0xd0] sm:$0x3]  ;;  %vm14613_vm6 = vmmov %vm14611_vm15  ;;  %v6249_v63 = vld [vmem:[%s13959_s2] sm:$0xff] }
 0x30c   : > { %9579 = vmatmul.mubr.msk.f32.gmra.mrb[70].mxu1 %vm13070_vm5, %v13131_v41  ;;  %v6152_v52 = vrot.slane %v13263_v9, 1  ;;  %v6184_v0 = vrot.slane %v12602_v43, 2  ;;  %v6250_v58 = vld [vmem:[%s13959_s2 + $0x8] sm:$0xff]  ;;  %vm14614_vm15 = vcmask 1045504   ;;  %v6252_v56 = vld [vmem:[%s13959_s2 + $0x18] sm:$0xff] }
 0x30d   : > { %v13265_v53 = vcombine.low %v5943_v31, %v5950_v7  ;;  %v6018_v11 = vsel %vm5488_vm1, %v5958_v15, 0.0  ;;  %6480 = vmatprep.mubr.f32.mxu1 %v13250_v25  ;;  %v6187_v31 = vrot.slane %v12701_v12, 2  ;;  %v13296_v7 = vld [vmem:[#allocation3] sm:$0xff]  ;;  %v13298_v43 = vld [vmem:[#allocation3 + $0x8] sm:$0xff]  ;;  %v9067_v12 = vpack.c.bf16 %v6250_v58, %v6249_v63  ;;  %vm14615_vm2 = vmmov %vm14614_vm15 }
 0x30e   : > { %6048 = vst [vmem:[#allocation3 + $0xe8] sm:$0x3] %v6018_v11  ;;  %v13275_v47 = vsel %vm14613_vm6, %v6150_v40, %v6152_v52  ;;  %v6267_v40 = vld [vmem:[%s13959_s2 + $0x90] sm:$0xff]  ;;  %v13304_v15 = vsel %vm14614_vm15, %v6184_v0, %v6185_v57  ;;  %v6190_v11 = vrot.slane %v12724_v29, 2  ;;  %v6189_v52 = vrot.slane %v12688_v19, 2  ;;  %v6269_v19 = vld [vmem:[%s13959_s2 + $0xa0] sm:$0xff]  ;;  %vm14616_vm1 = vmmov %vm14615_vm2 }
 0x30f   : > { %14612 = vst [vmem:[#allocation56_spill] sm:$0xff] %v13265_v53  ;;  %v13272_v48 = vsel %vm13210_vm14, %v13265_v53, 0.0  ;;  %v9069_v45 = vpack.c.bf16 %v6268_v51, %v6267_v40  ;;  %v6251_v53 = vld [vmem:[%s13959_s2 + $0x10] sm:$0xff]  ;;  %v6179_v20 = vrot.slane %v13296_v7, 2  ;;  %v6180_v0 = vrot.slane %v13298_v43, 2  ;;  %v6270_v58 = vld [vmem:[%s13959_s2 + $0xa8] sm:$0xff]  ;;  %vm14617_vm6 = vmmov %vm14616_vm1 }
 0x310   : > { %9580 = vmatmul.mubr.msk.f32.gmra.mrb[72].mxu1 %vm13167_vm9, %v13183_v2  ;;  %v13318_v29 = vsel %vm14615_vm2, %v6185_v57, %v6187_v31  ;;  %v6192_v63 = vrot.slane %v12766_v13, 2  ;;  %v13329_v40 = vsel %vm14616_vm1, %v6189_v52, %v6190_v11  ;;  %v6195_v51 = vrot.slane %v12817_v23, 2  ;;  %v6253_v52 = vld [vmem:[%s13959_s2 + $0x20] sm:$0xff]  ;;  %v6254_v23 = vld [vmem:[%s13959_s2 + $0x28] sm:$0xff]  ;;  %vm14618_vm15 = vmmov %vm14616_vm1 }
 0x311   : > { %6485 = vmatprep.mubr.f32.mxu1 %v13275_v47  ;;  %v13335_v57 = vsel %vm14617_vm6, %v6179_v20, %v6180_v0  ;;  %v9071_v13 = vpack.c.bf16 %v6252_v56, %v6251_v53  ;;  %v6194_v31 = vrot.slane %v12771_v46, 2  ;;  %v9073_v62 = vpack.c.bf16 %v6270_v58, %v6269_v19  ;;  %v6272_v46 = vld [vmem:[%s13959_s2 + $0xb8] sm:$0xff]  ;;  %vm14619_vm2 = vmmov %vm14616_vm1 }
 0x312   : > { %v6197_v20 = vrot.slane %v12876_v54, 2  ;;  %v6200_v53 = vrot.slane %v12914_v36, 2  ;;  %v6199_v54 = vrot.slane %v12862_v61, 2  ;;  %v6256_v19 = vld [vmem:[%s13959_s2 + $0x38] sm:$0xff]  ;;  %v6202_v36 = vrot.slane %v12940_v32, 2  ;;  %v6274_v61 = vld [vmem:[%s13959_s2 + $0xc8] sm:$0xff]  ;;  %vm14620_vm6 = vmmov %vm14616_vm1 }
 0x313   : > { %v13357_v56 = vsel %vm14619_vm2, %v6194_v31, %v6195_v51  ;;  %v6205_v31 = vrot.slane %v13006_v21, 2  ;;  %v6204_v32 = vrot.slane %v12952_v27, 2  ;;  %v6207_v21 = vrot.slane %v13062_v37, 2  ;;  %v6276_v27 = vld [vmem:[%s13959_s2 + $0xd8] sm:$0xff]  ;;  %vm14622_vm2 = vmmov %vm14616_vm1 }
 0x314   : > { %9581 = vmatmul.mubr.msk.f32.gmra.mrb[74].mxu1 %vm13139_vm12, %v13202_v35  ;;  %v13346_v35 = vsel %vm14618_vm15, %v6190_v11, %v6192_v63  ;;  %v9075_v11 = vpack.c.bf16 %v6254_v23, %v6253_v52  ;;  %v6255_v63 = vld [vmem:[%s13959_s2 + $0x30] sm:$0xff]  ;;  %v13369_v58 = vsel %vm14616_vm1, %v6195_v51, %v6197_v20  ;;  %v6257_v23 = vld [vmem:[%s13959_s2 + $0x40] sm:$0xff]  ;;  %v6258_v20 = vld [vmem:[%s13959_s2 + $0x48] sm:$0xff]  ;;  %v6209_v37 = vrot.slane %v13050_v14, 2 }
 0x315   : > { %8649 = vmatprep.mubr.f32.mxu1 %v13304_v15  ;;  %v9079_v51 = vpack.c.bf16 %v6256_v19, %v6255_v63  ;;  %vm14621_vm15 = vmmov %vm14616_vm1  ;;  %v6259_v63 = vld [vmem:[%s13959_s2 + $0x50] sm:$0xff]  ;;  %v6260_v19 = vld [vmem:[%s13959_s2 + $0x58] sm:$0xff] }
 0x316   : > { %v6278_v14 = vld [vmem:[%s13959_s2 + $0xe8] sm:$0xff]  ;;  %v14649_v34 = vld [vmem:[#allocation77_spill] sm:$0xff] }
 0x318   : > { %8650 = vmatmul.mubr.f32.vlgmr.msra.gmra.mrb[76].mxu1 %v13318_v29 }
 0x319   : > { %8652 = vmatprep.mubr.f32.mxu1 %v13329_v40  ;;  %9068 = vmatpush3.bf16.msra.mxu1 %v9067_v12 }
 0x31a   : > { %9070 = vmatprep.subr.bf16.mxu1 %v9069_v45  ;;  %v6271_v45 = vld [vmem:[%s13959_s2 + $0xb0] sm:$0xff] }
 0x31b   : > { %v9077_v12 = vpack.c.bf16 %v6272_v46, %v6271_v45  ;;  %v13392_v45 = vsel %vm14621_vm15, %v6200_v53, %v6202_v36  ;;  %v6275_v46 = vld [vmem:[%s13959_s2 + $0xd0] sm:$0xff]  ;;  %v13415_v36 = vsel %vm14616_vm1, %v6205_v31, %v6207_v21  ;;  %vm14624_vm15 = vmmov %vm14616_vm1 }
 0x31c   : > { %8653 = vmatmul.mubr.f32.gmra.mrb[78].mxu1 %v13346_v35  ;;  %v6279_v21 = vld [vmem:[%s13959_s2 + $0xf0] sm:$0xff] }
 0x31d   : > { %8655 = vmatprep.mubr.f32.mxu1 %v13357_v56  ;;  %9072 = vmatpush3.bf16.msra.mxu1 %v9071_v13  ;;  %v13380_v13 = vsel %vm14620_vm6, %v6199_v54, %v6200_v53  ;;  %v6210_v54 = vrot.slane %v13083_v1, 2  ;;  %v9083_v53 = vpack.c.bf16 %v6258_v20, %v6257_v23  ;;  %v6212_v1 = vrot.slane %v13119_v39, 2  ;;  %vm14623_vm6 = vmmov %vm14616_vm1  ;;  %v6262_v23 = vld [vmem:[%s13959_s2 + $0x68] sm:$0xff] }
 0x31e   : > { %9074 = vmatprep.subr.bf16.mxu1 %v9073_v62  ;;  %v6273_v62 = vld [vmem:[%s13959_s2 + $0xc0] sm:$0xff]  ;;  %v6214_v39 = vrot.slane %v13124_v30, 2  ;;  %v6280_v30 = vld [vmem:[%s13959_s2 + $0xf8] sm:$0xff] }
 0x31f   : > { %v9081_v52 = vpack.c.bf16 %v6274_v61, %v6273_v62  ;;  %v6277_v62 = vld [vmem:[%s13959_s2 + $0xe0] sm:$0xff]  ;;  %v13426_v61 = vsel %vm14623_vm6, %v6209_v37, %v6210_v54  ;;  %v13438_v20 = vsel %vm14624_vm15, %v6210_v54, %v6212_v1  ;;  %v6263_v37 = vld [vmem:[%s13959_s2 + $0x70] sm:$0xff]  ;;  %vm14626_vm6 = vmmov %vm14616_vm1 }
 0x320   : > { %8656 = vmatmul.mubr.f32.gmra.mrb[80].mxu1 %v13369_v58  ;;  %vm14627_vm15 = vmmov %vm14616_vm1 }
 0x321   : > { %8658 = vmatprep.mubr.f32.mxu1 %v13380_v13  ;;  %9076 = vmatpush3.bf16.msra.mxu1 %v9075_v11  ;;  %v13403_v11 = vsel %vm14622_vm2, %v6204_v32, %v6205_v31  ;;  %v9087_v31 = vpack.c.bf16 %v6260_v19, %v6259_v63  ;;  %v9089_v32 = vpack.c.bf16 %v6278_v14, %v6277_v62  ;;  %vm14625_vm2 = vmmov %vm14616_vm1  ;;  %v6281_v19 = vld [vmem:[%s13959_s2 + $0x100] sm:$0xff]  ;;  %v6110_v62 = vrot.slane %v13298_v43, 1 }
 0x322   : > { %9078 = vmatprep.subr.bf16.mxu1 %v9077_v12  ;;  %v9085_v12 = vpack.c.bf16 %v6276_v27, %v6275_v46  ;;  %v6220_v27 = vrot.slane %v13221_v33, 2  ;;  %v6222_v33 = vrot.slane %v13263_v9, 2  ;;  %v6109_v9 = vrot.slane %v13296_v7, 1 }
 0x324   : > { %8659 = vmatmul.mubr.f32.gmra.mrb[82].mxu1 %v13392_v45 }
 0x325   : > { %8661 = vmatprep.mubr.f32.mxu1 %v13403_v11  ;;  %9080 = vmatpush3.bf16.msra.mxu1 %v9079_v51  ;;  %v6215_v51 = vrot.slane %v13150_v38, 2  ;;  %v6217_v38 = vrot.slane %v13193_v17, 2  ;;  %v6219_v17 = vrot.slane %v13198_v26, 2  ;;  %v6282_v26 = vld [vmem:[%s13959_s2 + $0x108] sm:$0xff] }
 0x326   : > { %9082 = vmatprep.subr.bf16.mxu1 %v9081_v52  ;;  %v6261_v52 = vld [vmem:[%s13959_s2 + $0x60] sm:$0xff] }
 0x327   : > { %v13449_v46 = vsel %vm14625_vm2, %v6214_v39, %v6215_v51  ;;  %v9091_v54 = vpack.c.bf16 %v6262_v23, %v6261_v52  ;;  %v13461_v63 = vsel %vm14616_vm1, %v6215_v51, %v6217_v38  ;;  %v13472_v1 = vsel %vm14626_vm6, %v6219_v17, %v6220_v27  ;;  %v13480_v39 = vld [vmem:[#allocation3 + $0x10] sm:$0x3]  ;;  %v6284_v52 = vld [vmem:[%s13959_s2 + $0x118] sm:$0xff] }
 0x328   : > { %8662 = vmatmul.mubr.f32.gmra.mrb[84].mxu1 %v13415_v36  ;;  %v9097_v51 = vpack.c.bf16 %v6282_v26, %v6281_v19  ;;  %vm14628_vm2 = vcmask 1046528   ;;  %v6112_v38 = vrot.slane %v13480_v39, 1  ;;  %v9556_v19 = vld [vmem:[#allocation3 + $0x18] sm:$0xff] }
 0x329   : > { %8664 = vmatprep.mubr.f32.mxu1 %v13426_v61  ;;  %9084 = vmatpush3.bf16.msra.mxu1 %v9083_v53  ;;  %v9093_v53 = vpack.c.bf16 %v6280_v30, %v6279_v21  ;;  %v6111_v23 = vsel %vm14628_vm2, %v6109_v9, %v6110_v62  ;;  %v6285_v30 = vld [vmem:[%s13959_s2 + $0x120] sm:$0xff]  ;;  %vm14629_vm1 = vmmov %vm14628_vm2 }
 0x32a   : > { %9086 = vmatprep.subr.bf16.mxu1 %v9085_v12  ;;  %v6264_v12 = vld [vmem:[%s13959_s2 + $0x78] sm:$0xff] }
 0x32b   : > { %v9095_v14 = vpack.c.bf16 %v6264_v12, %v6263_v37  ;;  %v6288_v37 = vld [vmem:[%s13959_s2 + $0x138] sm:$0xff]  ;;  %v6289_v12 = vld [vmem:[%s13959_s2 + $0x140] sm:$0xff] }
 0x32c   : > { %8665 = vmatmul.mubr.f32.gmra.mrb[86].mxu1 %v13438_v20 }
 0x32d   : > { %8667 = vmatprep.mubr.f32.mxu1 %v13449_v46  ;;  %9088 = vmatpush3.bf16.msra.mxu1 %v9087_v31  ;;  %v13478_v31 = vsel %vm14627_vm15, %v6220_v27, %v6222_v33  ;;  %v6286_v27 = vld [vmem:[%s13959_s2 + $0x128] sm:$0xff] }
 0x32e   : > { %9090 = vmatprep.subr.bf16.mxu1 %v9089_v32  ;;  %v6283_v32 = vld [vmem:[%s13959_s2 + $0x110] sm:$0xff]  ;;  %v9105_v17 = vpack.c.bf16 %v6286_v27, %v6285_v30  ;;  %v6290_v33 = vld [vmem:[%s13959_s2 + $0x148] sm:$0xff]  ;;  %v7825_v27 = vld [vmem:[%s13959_s2 + $0x380] sm:$0xff] }
 0x32f   : > { %v9101_v21 = vpack.c.bf16 %v6284_v52, %v6283_v32  ;;  %v9113_v26 = vpack.c.bf16 %v6290_v33, %v6289_v12  ;;  %v13527_v32 = vld [vmem:[#allocation3 + $0x30] sm:$0xff] }
 0x330   : > { %8668 = vmatmul.mubr.f32.gmra.mrb[88].mxu1 %v13461_v63  ;;  %v14632_v12 = vld [vmem:[#allocation52_spill] sm:$0xff] }
 0x331   : > { %8670 = vmatprep.mubr.f32.mxu1 %v13472_v1  ;;  %9092 = vmatpush3.bf16.msra.mxu1 %v9091_v54  ;;  %v6113_v54 = vsel %vm14629_vm1, %v6110_v62, %v6112_v38  ;;  %v6292_v62 = vld [vmem:[%s13959_s2 + $0x158] sm:$0xff] }
 0x332   : > { %9094 = vmatprep.subr.bf16.mxu1 %v9093_v53  ;;  %v6287_v53 = vld [vmem:[%s13959_s2 + $0x130] sm:$0xff]  ;;  %v6296_v38 = vld [vmem:[%s13959_s2 + $0x178] sm:$0xff] }
 0x334   : > { %8671 = vmatmul.mubr.f32.gmra.mrb[90].mxu1 %v13478_v31 }
 0x335   : > { %9096 = vmatpush3.bf16.msra.mxu1 %v9095_v14  ;;  %6700 = vmatprep.mubr.f32.mxu1 %v6111_v23  ;;  %v9557_v14 = vld [vmem:[#allocation3 + $0x20] sm:$0xff]  ;;  %v6295_v23 = vld [vmem:[%s13959_s2 + $0x170] sm:$0xff] }
 0x336   : > { %9098 = vmatprep.subr.bf16.mxu1 %v9097_v51  ;;  %v9125_v30 = vpack.c.bf16 %v6296_v38, %v6295_v23  ;;  %v14643_v23 = vld [vmem:[#allocation82_spill] sm:$0xff]  ;;  %v7810_v38 = vld [vmem:[%s13959_s2 + $0x308] sm:$0xff] }
 0x338   : > { %6701 = vmatmul.mubr.f32.vlgmr.msra.gmra.mrb[92].mxu1 %v13296_v7  ;;  %v9109_v7 = vpack.c.bf16 %v6288_v37, %v6287_v53  ;;  %v14630_v37 = vld [vmem:[#allocation46_spill] sm:$0xff] }
 0x339   : > { %6705 = vmatprep.mubr.f32.mxu1 %v6113_v54  ;;  %9100 = vmatpush3.bf16.msra.mxu1 %v9097_v51  ;;  %v6294_v51 = vld [vmem:[%s13959_s2 + $0x168] sm:$0xff] }
 0x33a   : > { %9102 = vmatprep.subr.bf16.mxu1 %v9101_v21  ;;  %v7826_v54 = vld [vmem:[%s13959_s2 + $0x388] sm:$0xff] }
 0x33b   : > { %v9129_v53 = vpack.c.bf16 %v7826_v54, %v7825_v27  ;;  %v7828_v27 = vld [vmem:[%s13959_s2 + $0x398] sm:$0xff]  ;;  %v6182_v54 = vrot.slane %v13480_v39, 2  ;;  %v7829_v39 = vld [vmem:[%s13959_s2 + $0x3a0] sm:$0xff] }
 0x33c   : > { %6706 = vmatmul.mubr.f32.gmra.mrb[94].mxu1 %v13298_v43  ;;  %v7813_v43 = vld [vmem:[%s13959_s2 + $0x320] sm:$0xff] }
 0x33d   : > { %6710 = vmatprep.mubr.f32.mxu1 %v12694_v50  ;;  %9104 = vmatpush3.bf16.msra.mxu1 %v9101_v21  ;;  %v6291_v50 = vld [vmem:[%s13959_s2 + $0x150] sm:$0xff]  ;;  %v13537_v21 = vld [vmem:[#allocation3 + $0x38] sm:$0xff] }
 0x33e   : > { %9106 = vmatprep.subr.bf16.mxu1 %v9105_v17  ;;  %v9117_v9 = vpack.c.bf16 %v6292_v62, %v6291_v50  ;;  %v14636_v50 = vld [vmem:[#allocation57_spill] sm:$0xff]  ;;  %v7831_v62 = vld [vmem:[%s13959_s2 + $0x3b0] sm:$0xff] }
 0x340   : > { %6711 = vmatmul.mubr.f32.gmra.mrb[96].mxu1 %v9556_v19  ;;  %v14634_v19 = vld [vmem:[#allocation37_spill] sm:$0xff] }
 0x341   : > { %6715 = vmatprep.mubr.f32.mxu1 %v12728_v49  ;;  %9108 = vmatpush3.bf16.msra.mxu1 %v9105_v17  ;;  %v6293_v49 = vld [vmem:[%s13959_s2 + $0x160] sm:$0xff]  ;;  %v13547_v17 = vld [vmem:[#allocation3 + $0x48] sm:$0xff] }
 0x342   : > { %9110 = vmatprep.subr.bf16.mxu1 %v9109_v7  ;;  %v9121_v52 = vpack.c.bf16 %v6294_v51, %v6293_v49  ;;  %v14641_v51 = vld [vmem:[#allocation47_spill] sm:$0xff] }
 0x344   : > { %6716 = vmatmul.mubr.f32.gmra.mrb[98].mxu1 %v9557_v14  ;;  %v14638_v14 = vld [vmem:[#allocation50_spill] sm:$0xff] }
 0x345   : > { %6720 = vmatprep.mubr.f32.mxu1 %v12752_v3  ;;  %9112 = vmatpush3.bf16.msra.mxu1 %v9109_v7  ;;  %v7811_v7 = vld [vmem:[%s13959_s2 + $0x310] sm:$0xff] }
 0x346   : > { %9114 = vmatprep.subr.bf16.mxu1 %v9113_v26 }
 0x348   : > { %6721 = vmatmul.mubr.f32.gmra.mrb[100].mxu1 %v13527_v32 }
 0x349   : > { %6725 = vmatprep.mubr.f32.mxu1 %v12802_v18  ;;  %9116 = vmatpush3.bf16.msra.mxu1 %v9113_v26 }
 0x34a   : > { %9118 = vmatprep.subr.bf16.mxu1 %v9117_v9 }
 0x34c   : > { %6726 = vmatmul.mubr.f32.gmra.mrb[102].mxu1 %v13537_v21 }
 0x34d   : > { %6730 = vmatprep.mubr.f32.mxu1 %v12851_v42  ;;  %9120 = vmatpush3.bf16.msra.mxu1 %v9117_v9  ;;  %v14639_v9 = vld [vmem:[#allocation85_spill] sm:$0xff] }
 0x34e   : > { %9122 = vmatprep.subr.bf16.mxu1 %v9121_v52 }
 0x350   : > { %6731 = vmatmul.mubr.f32.gmra.mrb[104].mxu1 %v13547_v17 }
 0x351   : > { %6735 = vmatprep.mubr.f32.mxu1 %v12903_v59  ;;  %9124 = vmatpush3.bf16.msra.mxu1 %v9121_v52 }
 0x352   : > { %9126 = vmatprep.subr.bf16.mxu1 %v9125_v30 }
 0x354   : > { %9582 = vmatmul.mubr.msk.f32.gmra.mrb[106].mxu1 %vm12716_vm13, %v14630_v37  ;;  %vm14644_vm13 = vnez %v14588_v10  ;;  %v6155_v10 = vrot.slane %v13272_v48, 1 }
 0x355   : > { %6740 = vmatprep.mubr.f32.mxu1 %v12965_v4  ;;  %9128 = vmatpush3.bf16.msra.mxu1 %v9125_v30  ;;  %v7827_v30 = vld [vmem:[%s13959_s2 + $0x390] sm:$0xff] }
 0x356   : > { %9130 = vmatprep.subr.bf16.mxu1 %v9129_v53  ;;  %v9133_v37 = vpack.c.bf16 %v7828_v27, %v7827_v30  ;;  %v7833_v30 = vld [vmem:[%s13959_s2 + $0x3c0] sm:$0xff] }
 0x358   : > { %9583 = vmatmul.mubr.msk.f32.gmra.mrb[108].mxu1 %vm12825_vm4, %v14632_v12  ;;  %v7812_v12 = vld [vmem:[%s13959_s2 + $0x318] sm:$0xff]  ;;  %vm14648_vm4 = vmmov %vm14629_vm1 }
 0x359   : > { %6745 = vmatprep.mubr.f32.mxu1 %v14634_v19  ;;  %v9135_v26 = vpack.c.bf16 %v7812_v12, %v7811_v7  ;;  %v7835_v7 = vld [vmem:[%s13959_s2 + $0x3d0] sm:$0xff]  ;;  %v7836_v12 = vld [vmem:[%s13959_s2 + $0x3d8] sm:$0xff] }
 0x35c   : > { %9584 = vmatmul.mubr.msk.f32.gmra.mrb[110].mxu1 %vm12797_vm3, %v12888_v24  ;;  %v7809_v24 = vld [vmem:[%s13959_s2 + $0x300] sm:$0xff]  ;;  %vm14645_vm3 = vmmov %vm14626_vm6 }
 0x35d   : > { %6750 = vmatprep.mubr.f32.mxu1 %v13043_v5  ;;  %v9131_v53 = vpack.c.bf16 %v7810_v38, %v7809_v24  ;;  %v6183_v33 = vsel %vm14645_vm3, %v6180_v0, %v6182_v54  ;;  %v7814_v0 = vld [vmem:[%s13959_s2 + $0x328] sm:$0xff]  ;;  %v7815_v24 = vld [vmem:[%s13959_s2 + $0x330] sm:$0xff]  ;;  %v7816_v38 = vld [vmem:[%s13959_s2 + $0x338] sm:$0xff] }
 0x35e   : > { %v9143_v27 = vpack.c.bf16 %v7816_v38, %v7815_v24  ;;  %v7840_v24 = vld [vmem:[%s13959_s2 + $0x3f8] sm:$0xff] }
 0x360   : > { %9585 = vmatmul.mubr.msk.f32.gmra.mrb[112].mxu1 %vm12923_vm11, %v14636_v50  ;;  %vm14654_vm11 = vmmov %vm14645_vm3 }
 0x361   : > { %6755 = vmatprep.mubr.f32.mxu1 %v14638_v14 }
 0x364   : > { %9586 = vmatmul.mubr.msk.f32.gmra.mrb[114].mxu1 %vm12895_vm10, %v14639_v9  ;;  %v9139_v9 = vpack.c.bf16 %v7814_v0, %v7813_v43  ;;  %v7838_v43 = vld [vmem:[%s13959_s2 + $0x3e8] sm:$0xff]  ;;  %vm14651_vm10 = vmmov %vm14629_vm1 }
 0x365   : > { %6760 = vmatprep.mubr.f32.mxu1 %v13144_v60 }
 0x368   : > { %9587 = vmatmul.mubr.msk.f32.gmra.mrb[116].mxu1 %vm13016_vm8, %v14641_v51 }
 0x369   : > { %6765 = vmatprep.mubr.f32.mxu1 %v14643_v23 }
 0x36c   : > { %9588 = vmatmul.mubr.msk.f32.gmra.mrb[118].mxu1 %vm12988_vm0, %v13064_v28 }
 0x36d   : > { %6770 = vmatprep.mubr.f32.mxu1 %v13215_v44 }
 0x370   : > { %9589 = vmatmul.mubr.msk.f32.gmra.mrb[120].mxu1 %vm14644_vm13, %v13112_v55 }
 0x371   : > { %6775 = vmatprep.mubr.f32.mxu1 %v13230_v16 }
 0x374   : > { %9590 = vmatmul.mubr.msk.f32.gmra.mrb[122].mxu1 %vm13070_vm5, %v13131_v41 }
 0x375   : > { %8705 = vmatprep.mubr.f32.mxu1 %v13335_v57  ;;  %v7830_v57 = vld [vmem:[%s13959_s2 + $0x3a8] sm:$0xff] }
 0x376   : > { %v9137_v50 = vpack.c.bf16 %v7830_v57, %v7829_v39  ;;  %v9149_v39 = vpack.c.bf16 %v7836_v12, %v7835_v7  ;;  %v7819_v57 = vld [vmem:[%s13959_s2 + $0x350] sm:$0xff] }
 0x377   : > { %v7843_v12 = vld [vmem:[%s13959_s2 + $0x410] sm:$0xff] }
 0x378   : > { %8706 = vmatmul.mubr.f32.vlgmr.msra.gmra.mrb[76].mxu1 %v6183_v33 }
 0x379   : > { %8708 = vmatprep.mubr.f32.mxu1 %v13304_v15  ;;  %9132 = vmatpush3.bf16.msra.mxu1 %v9131_v53  ;;  %v7832_v15 = vld [vmem:[%s13959_s2 + $0x3b8] sm:$0xff]  ;;  %v7817_v53 = vld [vmem:[%s13959_s2 + $0x340] sm:$0xff] }
 0x37a   : > { %9134 = vmatprep.subr.bf16.mxu1 %v9133_v37  ;;  %v9141_v49 = vpack.c.bf16 %v7832_v15, %v7831_v62  ;;  %v7818_v37 = vld [vmem:[%s13959_s2 + $0x348] sm:$0xff]  ;;  %v7821_v15 = vld [vmem:[%s13959_s2 + $0x360] sm:$0xff] }
 0x37b   : > { %v9147_v33 = vpack.c.bf16 %v7818_v37, %v7817_v53  ;;  %v7842_v53 = vld [vmem:[%s13959_s2 + $0x408] sm:$0xff] }
 0x37c   : > { %8709 = vmatmul.mubr.f32.gmra.mrb[78].mxu1 %v13318_v29  ;;  %v7834_v29 = vld [vmem:[%s13959_s2 + $0x3c8] sm:$0xff] }
 0x37d   : > { %8711 = vmatprep.mubr.f32.mxu1 %v13329_v40  ;;  %9136 = vmatpush3.bf16.msra.mxu1 %v9135_v26  ;;  %v9145_v54 = vpack.c.bf16 %v7834_v29, %v7833_v30  ;;  %v7820_v26 = vld [vmem:[%s13959_s2 + $0x358] sm:$0xff]  ;;  %v7823_v29 = vld [vmem:[%s13959_s2 + $0x370] sm:$0xff] }
 0x37e   : > { %9138 = vmatprep.subr.bf16.mxu1 %v9137_v50  ;;  %v7837_v50 = vld [vmem:[%s13959_s2 + $0x3e0] sm:$0xff]  ;;  %v9151_v0 = vpack.c.bf16 %v7820_v26, %v7819_v57  ;;  %v7846_v26 = vld [vmem:[%s13959_s2 + $0x428] sm:$0xff] }
 0x37f   : > { %v9153_v62 = vpack.c.bf16 %v7838_v43, %v7837_v50  ;;  %v7845_v57 = vld [vmem:[%s13959_s2 + $0x420] sm:$0xff]  ;;  %v7848_v43 = vld [vmem:[%s13959_s2 + $0x438] sm:$0xff] }
 0x380   : > { %8712 = vmatmul.mubr.f32.gmra.mrb[80].mxu1 %v13346_v35  ;;  %v9169_v50 = vpack.c.bf16 %v7846_v26, %v7845_v57 }
 0x381   : > { %8714 = vmatprep.mubr.f32.mxu1 %v13357_v56  ;;  %9140 = vmatpush3.bf16.msra.mxu1 %v9139_v9  ;;  %v7822_v9 = vld [vmem:[%s13959_s2 + $0x368] sm:$0xff] }
 0x382   : > { %9142 = vmatprep.subr.bf16.mxu1 %v9141_v49  ;;  %v7839_v49 = vld [vmem:[%s13959_s2 + $0x3f0] sm:$0xff]  ;;  %v9155_v38 = vpack.c.bf16 %v7822_v9, %v7821_v15  ;;  %v7852_v9 = vld [vmem:[%s13959_s2 + $0x458] sm:$0xff] }
 0x383   : > { %v9157_v30 = vpack.c.bf16 %v7840_v24, %v7839_v49  ;;  %v7851_v15 = vld [vmem:[%s13959_s2 + $0x450] sm:$0xff] }
 0x384   : > { %8715 = vmatmul.mubr.f32.gmra.mrb[82].mxu1 %v13369_v58  ;;  %v9561_v24 = vld [vmem:[#allocation3 + $0x50] sm:$0xff] }
 0x385   : > { %8717 = vmatprep.mubr.f32.mxu1 %v13380_v13  ;;  %9144 = vmatpush3.bf16.msra.mxu1 %v9143_v27  ;;  %v7824_v27 = vld [vmem:[%s13959_s2 + $0x378] sm:$0xff] }
 0x386   : > { %9146 = vmatprep.subr.bf16.mxu1 %v9145_v54  ;;  %v7841_v54 = vld [vmem:[%s13959_s2 + $0x400] sm:$0xff]  ;;  %v9159_v37 = vpack.c.bf16 %v7824_v27, %v7823_v29  ;;  %v7854_v29 = vld [vmem:[%s13959_s2 + $0x468] sm:$0xff] }
 0x387   : > { %v9161_v7 = vpack.c.bf16 %v7842_v53, %v7841_v54  ;;  %v9562_v54 = vld [vmem:[#allocation3 + $0x60] sm:$0xff] }
 0x388   : > { %8718 = vmatmul.mubr.f32.gmra.mrb[84].mxu1 %v13392_v45 }
 0x389   : > { %8720 = vmatprep.mubr.f32.mxu1 %v13403_v11  ;;  %9148 = vmatpush3.bf16.msra.mxu1 %v9147_v33  ;;  %v7844_v33 = vld [vmem:[%s13959_s2 + $0x418] sm:$0xff] }
 0x38a   : > { %9150 = vmatprep.subr.bf16.mxu1 %v9149_v39  ;;  %v9165_v39 = vpack.c.bf16 %v7844_v33, %v7843_v12  ;;  %v7856_v12 = vld [vmem:[%s13959_s2 + $0x478] sm:$0xff]  ;;  %v9563_v33 = vld [vmem:[#allocation3 + $0x68] sm:$0xff] }
 0x38c   : > { %8721 = vmatmul.mubr.f32.gmra.mrb[86].mxu1 %v13415_v36 }
 0x38d   : > { %8723 = vmatprep.mubr.f32.mxu1 %v13426_v61  ;;  %9152 = vmatpush3.bf16.msra.mxu1 %v9151_v0  ;;  %v7850_v0 = vld [vmem:[%s13959_s2 + $0x448] sm:$0xff] }
 0x38e   : > { %9154 = vmatprep.subr.bf16.mxu1 %v9153_v62 }
 0x390   : > { %8724 = vmatmul.mubr.f32.gmra.mrb[88].mxu1 %v13438_v20 }
 0x391   : > { %8726 = vmatprep.mubr.f32.mxu1 %v13449_v46  ;;  %9156 = vmatpush3.bf16.msra.mxu1 %v9155_v38 }
 0x392   : > { %9158 = vmatprep.subr.bf16.mxu1 %v9157_v30  ;;  %v7853_v30 = vld [vmem:[%s13959_s2 + $0x460] sm:$0xff] }
 0x393   : > { %v9185_v53 = vpack.c.bf16 %v7854_v29, %v7853_v30  ;;  %v14652_v29 = vld [vmem:[#allocation56_spill] sm:$0xff] }
 0x394   : > { %8727 = vmatmul.mubr.f32.gmra.mrb[90].mxu1 %v13461_v63 }
 0x395   : > { %9160 = vmatpush3.bf16.msra.mxu1 %v9159_v37  ;;  %7039 = vmatprep.mubr.f32.mxu1 %v12752_v3  ;;  %v7847_v3 = vld [vmem:[%s13959_s2 + $0x430] sm:$0xff] }
 0x396   : > { %9162 = vmatprep.subr.bf16.mxu1 %v9161_v7 }
 0x398   : > { %7040 = vmatmul.mubr.f32.vlgmr.msra.gmra.mrb[124].mxu1 %v13527_v32  ;;  %v9173_v32 = vpack.c.bf16 %v7848_v43, %v7847_v3 }
 0x399   : > { %7044 = vmatprep.mubr.f32.mxu1 %v12802_v18  ;;  %9164 = vmatpush3.bf16.msra.mxu1 %v9161_v7  ;;  %v7849_v18 = vld [vmem:[%s13959_s2 + $0x440] sm:$0xff]  ;;  %v7855_v7 = vld [vmem:[%s13959_s2 + $0x470] sm:$0xff] }
 0x39a   : > { %9166 = vmatprep.subr.bf16.mxu1 %v9165_v39  ;;  %v9189_v57 = vpack.c.bf16 %v7856_v12, %v7855_v7 }
 0x39b   : > { %v8010_v62 = vpop.f32.mrb[46].mxu0 }
 0x39c   : > { %7045 = vmatmul.mubr.f32.gmra.mrb[126].mxu1 %v13537_v21  ;;  %v9177_v21 = vpack.c.bf16 %v7850_v0, %v7849_v18 }
 0x39d   : > { %7049 = vmatprep.mubr.f32.mxu1 %v12851_v42  ;;  %9168 = vmatpush3.bf16.msra.mxu1 %v9165_v39  ;;  %v8011_v42 = vpop.f32.mrb[47].mxu0 }
 0x39e   : > { %9170 = vmatprep.subr.bf16.mxu1 %v9169_v50  ;;  %v13738_v49 = vadd.f32 %v8011_v42, %v8010_v62 }
 0x3a0   : > { %7050 = vmatmul.mubr.f32.gmra.mrb[128].mxu1 %v13547_v17  ;;  %v9181_v17 = vpack.c.bf16 %v7852_v9, %v7851_v15 }
 0x3a1   : > { %7054 = vmatprep.mubr.f32.mxu1 %v12903_v59  ;;  %9172 = vmatpush3.bf16.msra.mxu1 %v9169_v50  ;;  %v8013_v59 = vpop.f32.mrb[46].mxu1  ;;  %v9564_v50 = vld [vmem:[#allocation3 + $0x78] sm:$0xff] }
 0x3a2   : > { %9174 = vmatprep.subr.bf16.mxu1 %v9173_v32  ;;  %v8014_v38 = vpop.f32.mrb[47].mxu1 }
 0x3a3   : > { %v13747_v27 = vadd.f32 %v8014_v38, %v8013_v59 }
 0x3a4   : > { %7055 = vmatmul.mubr.f32.gmra.mrb[130].mxu1 %v9561_v24 }
 0x3a5   : > { %7059 = vmatprep.mubr.f32.mxu1 %v12965_v4  ;;  %9176 = vmatpush3.bf16.msra.mxu1 %v9173_v32  ;;  %v8016_v4 = vpop.f32.mrb[48].mxu1  ;;  %v9565_v32 = vld [vmem:[#allocation3 + $0x80] sm:$0xff] }
 0x3a6   : > { %9178 = vmatprep.subr.bf16.mxu1 %v9177_v21  ;;  %v8017_v37 = vpop.f32.mrb[49].mxu1 }
 0x3a7   : > { %v13756_v39 = vadd.f32 %v8017_v37, %v8016_v4 }
 0x3a8   : > { %7060 = vmatmul.mubr.f32.gmra.mrb[132].mxu1 %v9562_v54 }
 0x3a9   : > { %7064 = vmatprep.mubr.f32.mxu1 %v14634_v19  ;;  %9180 = vmatpush3.bf16.msra.mxu1 %v9177_v21  ;;  %v8019_v19 = vpop.f32.mrb[50].mxu1 }
 0x3aa   : > { %9182 = vmatprep.subr.bf16.mxu1 %v9181_v17  ;;  %v8020_v26 = vpop.f32.mrb[51].mxu1 }
 0x3ab   : > { %v13759_v3 = vadd.f32 %v8020_v26, %v8019_v19 }
 0x3ac   : > { %7065 = vmatmul.mubr.f32.gmra.mrb[134].mxu1 %v9563_v33 }
 0x3ad   : > { %7069 = vmatprep.mubr.f32.mxu1 %v13043_v5  ;;  %9184 = vmatpush3.bf16.msra.mxu1 %v9181_v17 }
 0x3ae   : > { %9186 = vmatprep.subr.bf16.mxu1 %v9185_v53  ;;  %v8022_v43 = vpop.f32.mrb[52].mxu1 }
 0x3af   : > { %v8023_v18 = vpop.f32.mrb[53].mxu1 }
 0x3b0   : > { %7070 = vmatmul.mubr.f32.gmra.mrb[136].mxu1 %v9564_v50  ;;  %v13763_v5 = vadd.f32 %v8023_v18, %v8022_v43 }
 0x3b1   : > { %7074 = vmatprep.mubr.f32.mxu1 %v14638_v14  ;;  %9188 = vmatpush3.bf16.msra.mxu1 %v9185_v53 }
 0x3b2   : > { %9190 = vmatprep.subr.bf16.mxu1 %v9189_v57 }
 0x3b3   : > { %v8025_v0 = vpop.f32.mrb[54].mxu1 }
 0x3b4   : > { %7075 = vmatmul.mubr.f32.gmra.mrb[138].mxu1 %v9565_v32  ;;  %v8026_v62 = vpop.f32.mrb[55].mxu1 }
 0x3b5   : > { %7079 = vmatprep.mubr.f32.mxu1 %v13144_v60  ;;  %9192 = vmatpush3.bf16.msra.mxu1 %v9189_v57  ;;  %v13769_v14 = vadd.f32 %v8026_v62, %v8025_v0 }
 0x3b8   : > { %9591 = vmatmul.mubr.msk.f32.gmra.mrb[140].mxu1 %vm13016_vm8, %v14641_v51 }
 0x3b9   : > { %7084 = vmatprep.mubr.f32.mxu1 %v14643_v23  ;;  %v8028_v60 = vpop.f32.mrb[56].mxu1 }
 0x3ba   : > { %v8029_v21 = vpop.f32.mrb[57].mxu1 }
 0x3bb   : > { %v13775_v42 = vadd.f32 %v8029_v21, %v8028_v60 }
 0x3bc   : > { %9592 = vmatmul.mubr.msk.f32.gmra.mrb[142].mxu1 %vm12988_vm0, %v13064_v28  ;;  %vm14655_vm0 = vmmov %vm14645_vm3 }
 0x3bd   : > { %7089 = vmatprep.mubr.f32.mxu1 %v13215_v44 }
 0x3be   : > { %v8031_v51 = vpop.f32.mrb[58].mxu1 }
 0x3bf   : > { %v8032_v52 = vpop.f32.mrb[59].mxu1 }
 0x3c0   : > { %9593 = vmatmul.mubr.msk.f32.gmra.mrb[144].mxu1 %vm14644_vm13, %v13112_v55  ;;  %v13781_v23 = vadd.f32 %v8032_v52, %v8031_v51  ;;  %v6078_v55 = vld [vmem:[#allocation3 + $0xe8] sm:$0x3] }
 0x3c1   : > { %7094 = vmatprep.mubr.f32.mxu1 %v13230_v16  ;;  %v6154_v16 = vrot.slane %v13258_v22, 1  ;;  %v6157_v24 = vrot.slane %v6078_v55, 1 }
 0x3c4   : > { %9594 = vmatmul.mubr.msk.f32.gmra.mrb[146].mxu1 %vm13070_vm5, %v13131_v41  ;;  %v8034_v8 = vpop.f32.mrb[60].mxu1  ;;  %v14646_v41 = vld [vmem:[#allocation58_spill] sm:$0xff] }
 0x3c5   : > { %7099 = vmatprep.mubr.f32.mxu1 %v13250_v25  ;;  %v8035_v28 = vpop.f32.mrb[61].mxu1  ;;  %v6156_v25 = vsel %vm14648_vm4, %v6154_v16, %v6155_v10 }
 0x3c6   : > { %v13787_v44 = vadd.f32 %v8035_v28, %v8034_v8 }
 0x3c8   : > { %9595 = vmatmul.mubr.msk.f32.gmra.mrb[148].mxu1 %vm13167_vm9, %v13183_v2  ;;  %v8037_v15 = vpop.f32.mrb[62].mxu1 }
 0x3c9   : > { %7104 = vmatprep.mubr.f32.mxu1 %v13275_v47  ;;  %v8038_v6 = vpop.f32.mrb[63].mxu1  ;;  %v6158_v47 = vsel %vm14651_vm10, %v6155_v10, %v6157_v24 }
 0x3ca   : > { %v13799_v59 = vadd.f32 %v8038_v6, %v8037_v15 }
 0x3cc   : > { %9596 = vmatmul.mubr.msk.f32.gmra.mrb[150].mxu1 %vm13139_vm12, %v14646_v41 }
 0x3cd   : > { %7109 = vmatprep.mubr.f32.mxu1 %v6156_v25 }
 0x3d0   : > { %9597 = vmatmul.mubr.msk.f32.gmra.mrb[152].mxu1 %vm13238_vm7, %v14649_v34  ;;  %v8040_v17 = vpop.f32.mrb[64].mxu1 }
 0x3d1   : > { %7114 = vmatprep.mubr.f32.mxu1 %v6158_v47  ;;  %v8041_v38 = vpop.f32.mrb[65].mxu1 }
 0x3d2   : > { %v13805_v30 = vadd.f32 %v8041_v38, %v8040_v17 }
 0x3d4   : > { %9598 = vmatmul.mubr.msk.f32.gmra.mrb[154].mxu1 %vm13210_vm14, %v14652_v29  ;;  %v8043_v4 = vpop.f32.mrb[66].mxu1 }
 0x3d5   : > { %8761 = vmatprep.mubr.f32.mxu1 %v13329_v40  ;;  %v8044_v53 = vpop.f32.mrb[67].mxu1 }
 0x3d6   : > { %v13811_v37 = vadd.f32 %v8044_v53, %v8043_v4 }
 0x3d8   : > { %8762 = vmatmul.mubr.f32.vlgmr.msra.gmra.mrb[76].mxu1 %v13346_v35 }
 0x3d9   : > { %8764 = vmatprep.mubr.f32.mxu1 %v13357_v56 }
 0x3db   : > { %v8046_v7 = vpop.f32.mrb[68].mxu1 }
 0x3dc   : > { %v8047_v12 = vpop.f32.mrb[69].mxu1  ;;  %8765 = vmatmul.mubr.f32.gmra.mrb[78].mxu1 %v13369_v58 }
 0x3dd   : > { %v13816_v33 = vadd.f32 %v8047_v12, %v8046_v7  ;;  %8767 = vmatprep.mubr.f32.mxu1 %v13380_v13 }
 0x3df   : > { %v8049_v19 = vpop.f32.mrb[70].mxu1 }
 0x3e0   : > { %v8050_v57 = vpop.f32.mrb[71].mxu1  ;;  %8768 = vmatmul.mubr.f32.gmra.mrb[80].mxu1 %v13392_v45  ;;  %v6225_v45 = vrot.slane %v13272_v48, 2 }
 0x3e1   : > { %v13820_v40 = vadd.f32 %v8050_v57, %v8049_v19  ;;  %8770 = vmatprep.mubr.f32.mxu1 %v13403_v11  ;;  %v6224_v11 = vrot.slane %v13258_v22, 2 }
 0x3e3   : > { %v8052_v26 = vpop.f32.mrb[72].mxu1 }
 0x3e4   : > { %v8053_v35 = vpop.f32.mrb[73].mxu1  ;;  %8771 = vmatmul.mubr.f32.gmra.mrb[82].mxu1 %v13415_v36  ;;  %v6227_v36 = vrot.slane %v6078_v55, 2 }
 0x3e5   : > { %v13824_v56 = vadd.f32 %v8053_v35, %v8052_v26  ;;  %8773 = vmatprep.mubr.f32.mxu1 %v13426_v61  ;;  %v6226_v61 = vsel %vm14654_vm11, %v6224_v11, %v6225_v45 }
 0x3e7   : > { %v8055_v58 = vpop.f32.mrb[74].mxu1 }
 0x3e8   : > { %v8056_v50 = vpop.f32.mrb[75].mxu1  ;;  %8774 = vmatmul.mubr.f32.gmra.mrb[84].mxu1 %v13438_v20  ;;  %v6228_v20 = vsel %vm14655_vm0, %v6225_v45, %v6227_v36 }
 0x3e9   : > { %v13828_v13 = vadd.f32 %v8056_v50, %v8055_v58  ;;  %8776 = vmatprep.mubr.f32.mxu1 %v13449_v46 }
 0x3ec   : > { %8777 = vmatmul.mubr.f32.gmra.mrb[86].mxu1 %v13461_v63 }
 0x3ed   : > { %8779 = vmatprep.mubr.f32.mxu1 %v13472_v1 }
 0x3f0   : > { %8780 = vmatmul.mubr.f32.gmra.mrb[88].mxu1 %v13478_v31 }
 0x3f1   : > { %8782 = vmatprep.mubr.f32.mxu1 %v6226_v61 }
 0x3f4   : > { %8783 = vmatmul.mubr.f32.gmra.mrb[90].mxu1 %v6228_v20 }
 0x40b   : > { %v8122_v43 = vpop.f32.mrb[92].mxu1 }
 0x40c   : > { %v8123_v32 = vpop.f32.mrb[93].mxu1 }
 0x40d   : > { %v8124_v46 = vadd.f32 %v8123_v32, %v8122_v43 }
 0x40f   : > { %v13839_v63 = vadd.f32 %v8124_v46, %v13738_v49  ;;  %v8125_v48 = vpop.f32.mrb[94].mxu1 }
 0x410   : > { %v8126_v18 = vpop.f32.mrb[95].mxu1 }
 0x411   : > { %v8127_v1 = vadd.f32 %v8126_v18, %v8125_v48 }
 0x413   : > { %v13842_v22 = vadd.f32 %v8127_v1, %v13747_v27  ;;  %v8128_v0 = vpop.f32.mrb[96].mxu1 }
 0x414   : > { %v8129_v31 = vpop.f32.mrb[97].mxu1 }
 0x415   : > { %v8130_v62 = vadd.f32 %v8129_v31, %v8128_v0 }
 0x417   : > { %v13845_v60 = vadd.f32 %v8130_v62, %v13756_v39  ;;  %v8131_v21 = vpop.f32.mrb[98].mxu1 }
 0x418   : > { %v8132_v51 = vpop.f32.mrb[99].mxu1 }
 0x419   : > { %v8133_v52 = vadd.f32 %v8132_v51, %v8131_v21 }
 0x41b   : > { %v13848_v8 = vadd.f32 %v8133_v52, %v13759_v3  ;;  %v8134_v49 = vpop.f32.mrb[100].mxu1 }
 0x41c   : > { %v8135_v28 = vpop.f32.mrb[101].mxu1 }
 0x41d   : > { %v8136_v10 = vadd.f32 %v8135_v28, %v8134_v49 }
 0x41f   : > { %v13851_v55 = vadd.f32 %v8136_v10, %v13763_v5  ;;  %v8137_v27 = vpop.f32.mrb[102].mxu1 }
 0x420   : > { %v8138_v16 = vpop.f32.mrb[103].mxu1 }
 0x421   : > { %v8139_v15 = vadd.f32 %v8138_v16, %v8137_v27 }
 0x423   : > { %v13854_v6 = vadd.f32 %v8139_v15, %v13769_v14  ;;  %v8140_v39 = vpop.f32.mrb[104].mxu1 }
 0x424   : > { %v8141_v41 = vpop.f32.mrb[105].mxu1 }
 0x425   : > { %v8142_v9 = vadd.f32 %v8141_v41, %v8140_v39 }
 0x427   : > { %v13857_v25 = vadd.f32 %v8142_v9, %v13775_v42  ;;  %v8143_v3 = vpop.f32.mrb[106].mxu1 }
 0x428   : > { %v8144_v24 = vpop.f32.mrb[107].mxu1 }
 0x429   : > { %v8145_v34 = vadd.f32 %v8144_v24, %v8143_v3 }
 0x42b   : > { %v13860_v2 = vadd.f32 %v8145_v34, %v13781_v23  ;;  %v8146_v5 = vpop.f32.mrb[108].mxu1 }
 0x42c   : > { %v8147_v47 = vpop.f32.mrb[109].mxu1 }
 0x42d   : > { %v8148_v17 = vadd.f32 %v8147_v47, %v8146_v5 }
 0x42f   : > { %v13863_v38 = vadd.f32 %v8148_v17, %v13787_v44  ;;  %v8149_v14 = vpop.f32.mrb[110].mxu1 }
 0x430   : > { %v8150_v29 = vpop.f32.mrb[111].mxu1 }
 0x431   : > { %v8151_v54 = vadd.f32 %v8150_v29, %v8149_v14 }
 0x433   : > { %v13866_v4 = vadd.f32 %v8151_v54, %v13799_v59  ;;  %v8152_v42 = vpop.f32.mrb[112].mxu1 }
 0x434   : > { %v8153_v53 = vpop.f32.mrb[113].mxu1 }
 0x435   : > { %v8154_v7 = vadd.f32 %v8153_v53, %v8152_v42 }
 0x437   : > { %v13869_v12 = vadd.f32 %v8154_v7, %v13805_v30  ;;  %v8155_v23 = vpop.f32.mrb[114].mxu1 }
 0x438   : > { %v8156_v19 = vpop.f32.mrb[115].mxu1 }
 0x439   : > { %v8157_v57 = vadd.f32 %v8156_v19, %v8155_v23 }
 0x43b   : > { %v13872_v26 = vadd.f32 %v8157_v57, %v13811_v37  ;;  %v8158_v44 = vpop.f32.mrb[116].mxu1 }
 0x43c   : > { %v8159_v35 = vpop.f32.mrb[117].mxu1 }
 0x43d   : > { %v8160_v58 = vadd.f32 %v8159_v35, %v8158_v44 }
 0x43f   : > { %v13875_v50 = vadd.f32 %v8160_v58, %v13816_v33  ;;  %v8161_v59 = vpop.f32.mrb[118].mxu1 }
 0x440   : > { %v8162_v45 = vpop.f32.mrb[119].mxu1 }
 0x441   : > { %v8163_v11 = vadd.f32 %v8162_v45, %v8161_v59 }
 0x443   : > { %v13878_v36 = vadd.f32 %v8163_v11, %v13820_v40  ;;  %v8164_v30 = vpop.f32.mrb[120].mxu1 }
 0x444   : > { %v8165_v61 = vpop.f32.mrb[121].mxu1 }
 0x445   : > { %v8166_v20 = vadd.f32 %v8165_v61, %v8164_v30 }
 0x447   : > { %v13881_v43 = vadd.f32 %v8166_v20, %v13824_v56  ;;  %v8167_v37 = vpop.f32.mrb[122].mxu1 }
 0x448   : > { %v8168_v32 = vpop.f32.mrb[123].mxu1 }
 0x449   : > { %v8169_v46 = vadd.f32 %v8168_v32, %v8167_v37 }
 0x44b   : > { %v13884_v48 = vadd.f32 %v8169_v46, %v13828_v13 }
 0x46b   : > { %v8234_v33 = vpop.f32.mrb[124].mxu1 }
 0x46c   : > { %v8235_v18 = vpop.f32.mrb[125].mxu1 }
 0x46d   : > { %v8236_v1 = vadd.f32 %v8235_v18, %v8234_v33 }
 0x46f   : > { %v8237_v0 = vpop.f32.mrb[126].mxu1  ;;  %v13887_v31 = vadd.f32 %v13839_v63, %v8236_v1 }
 0x470   : > { %v8238_v40 = vpop.f32.mrb[127].mxu1 }
 0x471   : > { %v8239_v62 = vadd.f32 %v8238_v40, %v8237_v0 }
 0x473   : > { %v8240_v21 = vpop.f32.mrb[128].mxu1  ;;  %v9249_v51 = vadd.f32 %v13842_v22, %v8239_v62 }
 0x474   : > { %v8241_v56 = vpop.f32.mrb[129].mxu1 }
 0x475   : > { %v8242_v52 = vadd.f32 %v8241_v56, %v8240_v21 }
 0x477   : > { %v8243_v49 = vpop.f32.mrb[130].mxu1  ;;  %v13891_v28 = vadd.f32 %v13845_v60, %v8242_v52 }
 0x478   : > { %v8244_v13 = vpop.f32.mrb[131].mxu1 }
 0x479   : > { %v8245_v10 = vadd.f32 %v8244_v13, %v8243_v49 }
 0x47b   : > { %v8246_v27 = vpop.f32.mrb[132].mxu1  ;;  %v9255_v16 = vadd.f32 %v13848_v8, %v8245_v10 }
 0x47c   : > { %v8247_v15 = vpop.f32.mrb[133].mxu1 }
 0x47d   : > { %v8248_v39 = vadd.f32 %v8247_v15, %v8246_v27 }
 0x47f   : > { %v8249_v63 = vpop.f32.mrb[134].mxu1  ;;  %v13895_v41 = vadd.f32 %v13851_v55, %v8248_v39 }
 0x480   : > { %v8250_v9 = vpop.f32.mrb[135].mxu1 }
 0x481   : > { %v8251_v3 = vadd.f32 %v8250_v9, %v8249_v63 }
 0x483   : > { %v8252_v22 = vpop.f32.mrb[136].mxu1  ;;  %v9261_v24 = vadd.f32 %v13854_v6, %v8251_v3 }
 0x484   : > { %v8253_v34 = vpop.f32.mrb[137].mxu1 }
 0x485   : > { %v8254_v5 = vadd.f32 %v8253_v34, %v8252_v22 }
 0x487   : > { %v8255_v60 = vpop.f32.mrb[138].mxu1  ;;  %v13899_v47 = vadd.f32 %v13857_v25, %v8254_v5 }
 0x488   : > { %v8256_v17 = vpop.f32.mrb[139].mxu1 }
 0x489   : > { %v8257_v14 = vadd.f32 %v8256_v17, %v8255_v60 }
 0x48b   : > { %v8258_v8 = vpop.f32.mrb[140].mxu1  ;;  %v9267_v29 = vadd.f32 %v13860_v2, %v8257_v14 }
 0x48c   : > { %v8259_v54 = vpop.f32.mrb[141].mxu1 }
 0x48d   : > { %v8260_v42 = vadd.f32 %v8259_v54, %v8258_v8 }
 0x48f   : > { %v8261_v55 = vpop.f32.mrb[142].mxu1  ;;  %v13903_v53 = vadd.f32 %v13863_v38, %v8260_v42 }
 0x490   : > { %v8262_v7 = vpop.f32.mrb[143].mxu1 }
 0x491   : > { %v8263_v23 = vadd.f32 %v8262_v7, %v8261_v55 }
 0x493   : > { %v8264_v6 = vpop.f32.mrb[144].mxu1  ;;  %v9273_v19 = vadd.f32 %v13866_v4, %v8263_v23 }
 0x494   : > { %v8265_v57 = vpop.f32.mrb[145].mxu1 }
 0x495   : > { %v8266_v44 = vadd.f32 %v8265_v57, %v8264_v6 }
 0x497   : > { %v8267_v25 = vpop.f32.mrb[146].mxu1  ;;  %v13907_v35 = vadd.f32 %v13869_v12, %v8266_v44 }
 0x498   : > { %v8268_v58 = vpop.f32.mrb[147].mxu1 }
 0x499   : > { %v8269_v59 = vadd.f32 %v8268_v58, %v8267_v25 }
 0x49b   : > { %v8270_v2 = vpop.f32.mrb[148].mxu1  ;;  %v9279_v45 = vadd.f32 %v13872_v26, %v8269_v59 }
 0x49c   : > { %v8271_v11 = vpop.f32.mrb[149].mxu1 }
 0x49d   : > { %v8272_v30 = vadd.f32 %v8271_v11, %v8270_v2 }
 0x49f   : > { %v8273_v38 = vpop.f32.mrb[150].mxu1  ;;  %v13911_v61 = vadd.f32 %v13875_v50, %v8272_v30 }
 0x4a0   : > { %v8274_v20 = vpop.f32.mrb[151].mxu1 }
 0x4a1   : > { %v8275_v37 = vadd.f32 %v8274_v20, %v8273_v38 }
 0x4a3   : > { %v8276_v4 = vpop.f32.mrb[152].mxu1  ;;  %v9285_v32 = vadd.f32 %v13878_v36, %v8275_v37 }
 0x4a4   : > { %v8277_v46 = vpop.f32.mrb[153].mxu1 }
 0x4a5   : > { %v8278_v12 = vadd.f32 %v8277_v46, %v8276_v4 }
 0x4a7   : > { %v8279_v33 = vpop.f32.mrb[154].mxu1  ;;  %v13915_v18 = vadd.f32 %v13881_v43, %v8278_v12 }
 0x4a8   : > { %v8280_v26 = vpop.f32.mrb[155].mxu1 }
 0x4a9   : > { %v8281_v1 = vadd.f32 %v8280_v26, %v8279_v33 }
 0x4ab   : > { %v8763_v0 = vpop.f32.mrb[76].mxu1  ;;  %v9291_v50 = vadd.f32 %v13884_v48, %v8281_v1 }
 0x4ac   : > { %v9250_v40 = vadd.f32 %v9249_v51, %v8763_v0  ;;  %v7186_v62 = vpop.f32.mrb[77].mxu1 }
 0x4ad   : > { %v9253_v21 = vadd.f32 %v13887_v31, %v7186_v62 }
 0x4ae   : > { %v7282_v56 = vmax.f32 %v9250_v40, 0.0 }
 0x4af   : > { %v7281_v36 = vmax.f32 %v9253_v21, 0.0  ;;  %v8766_v52 = vpop.f32.mrb[78].mxu1 }
 0x4b0   : > { %7298 = vst [vmem:[%s9712_s5 + $0x8] sm:$0xff] %v7282_v56  ;;  %v9256_v49 = vadd.f32 %v9255_v16, %v8766_v52  ;;  %v7196_v13 = vpop.f32.mrb[79].mxu1 }
 0x4b1   : > { %7297 = vst [vmem:[%s9712_s5] sm:$0xff] %v7281_v36  ;;  %v9259_v43 = vadd.f32 %v13891_v28, %v7196_v13 }
 0x4b2   : > { %v7284_v10 = vmax.f32 %v9256_v49, 0.0 }
 0x4b3   : > { %v7283_v27 = vmax.f32 %v9259_v43, 0.0  ;;  %v8769_v15 = vpop.f32.mrb[80].mxu1 }
 0x4b4   : > { %7300 = vst [vmem:[%s9712_s5 + $0x18] sm:$0xff] %v7284_v10  ;;  %v9262_v48 = vadd.f32 %v9261_v24, %v8769_v15  ;;  %v7206_v51 = vpop.f32.mrb[81].mxu1 }
 0x4b5   : > { %7299 = vst [vmem:[%s9712_s5 + $0x10] sm:$0xff] %v7283_v27  ;;  %v9265_v31 = vadd.f32 %v13895_v41, %v7206_v51 }
 0x4b6   : > { %v7286_v39 = vmax.f32 %v9262_v48, 0.0 }
 0x4b7   : > { %v7285_v63 = vmax.f32 %v9265_v31, 0.0  ;;  %v8772_v9 = vpop.f32.mrb[82].mxu1 }
 0x4b8   : > { %7302 = vst [vmem:[%s9712_s5 + $0x28] sm:$0xff] %v7286_v39  ;;  %v9268_v16 = vadd.f32 %v9267_v29, %v8772_v9  ;;  %v7216_v3 = vpop.f32.mrb[83].mxu1 }
 0x4b9   : > { %7301 = vst [vmem:[%s9712_s5 + $0x20] sm:$0xff] %v7285_v63  ;;  %v9271_v28 = vadd.f32 %v13899_v47, %v7216_v3 }
 0x4ba   : > { %v7288_v22 = vmax.f32 %v9268_v16, 0.0 }
 0x4bb   : > { %v7287_v34 = vmax.f32 %v9271_v28, 0.0  ;;  %v8775_v5 = vpop.f32.mrb[84].mxu1 }
 0x4bc   : > { %7304 = vst [vmem:[%s9712_s5 + $0x38] sm:$0xff] %v7288_v22  ;;  %v9274_v24 = vadd.f32 %v9273_v19, %v8775_v5  ;;  %v7226_v60 = vpop.f32.mrb[85].mxu1 }
 0x4bd   : > { %7303 = vst [vmem:[%s9712_s5 + $0x30] sm:$0xff] %v7287_v34  ;;  %v9277_v41 = vadd.f32 %v13903_v53, %v7226_v60 }
 0x4be   : > { %v7290_v17 = vmax.f32 %v9274_v24, 0.0 }
 0x4bf   : > { %v7289_v14 = vmax.f32 %v9277_v41, 0.0  ;;  %v8778_v8 = vpop.f32.mrb[86].mxu1 }
 0x4c0   : > { %7306 = vst [vmem:[%s9712_s5 + $0x48] sm:$0xff] %v7290_v17  ;;  %v9280_v29 = vadd.f32 %v9279_v45, %v8778_v8  ;;  %v7236_v54 = vpop.f32.mrb[87].mxu1 }
 0x4c1   : > { %7305 = vst [vmem:[%s9712_s5 + $0x40] sm:$0xff] %v7289_v14  ;;  %v9283_v47 = vadd.f32 %v13907_v35, %v7236_v54 }
 0x4c2   : > { %v7292_v42 = vmax.f32 %v9280_v29, 0.0 }
 0x4c3   : > { %v7291_v55 = vmax.f32 %v9283_v47, 0.0  ;;  %v8781_v7 = vpop.f32.mrb[88].mxu1 }
 0x4c4   : > { %7308 = vst [vmem:[%s9712_s5 + $0x58] sm:$0xff] %v7292_v42  ;;  %v9286_v23 = vadd.f32 %v9285_v32, %v8781_v7  ;;  %v7246_v6 = vpop.f32.mrb[89].mxu1 }
 0x4c5   : > { %7307 = vst [vmem:[%s9712_s5 + $0x50] sm:$0xff] %v7291_v55  ;;  %v9289_v53 = vadd.f32 %v13911_v61, %v7246_v6 }
 0x4c6   : > { %v7294_v19 = vmax.f32 %v9286_v23, 0.0 }
 0x4c7   : > { %v7293_v57 = vmax.f32 %v9289_v53, 0.0  ;;  %v8784_v44 = vpop.f32.mrb[90].mxu1 }
 0x4c8   : > { %7310 = vst [vmem:[%s9712_s5 + $0x68] sm:$0xff] %v7294_v19  ;;  %v9292_v25 = vadd.f32 %v9291_v50, %v8784_v44  ;;  %v7256_v58 = vpop.f32.mrb[91].mxu1 }
 0x4c9   : > { %7309 = vst [vmem:[%s9712_s5 + $0x60] sm:$0xff] %v7293_v57  ;;  %v9295_v35 = vadd.f32 %v13915_v18, %v7256_v58 }
 0x4ca   : > { %v7296_v59 = vmax.f32 %v9292_v25, 0.0 }
 0x4cb   : > { %v7295_v2 = vmax.f32 %v9295_v35, 0.0 }
 0x4cc   : > { %7312 = vst [vmem:[%s9712_s5 + $0x78] sm:$0xff] %v7296_v59 }
 0x4cd   : > { %7311 = vst [vmem:[%s9712_s5 + $0x70] sm:$0xff] %v7295_v2 }
 0x4ce PF: > { %s13_s16 = sadd.s32 1, %s9639_s16   ;;  %s14656_s12 = smov %s9631_s14 }
 0x4cf   : > { %p10_p11 = scmp.ge.s32.totalorder %s13_s16, 6   ;;  %s14657_s13 = smov %s9635_s15 }
 0x4d0   : > { %s14658_s14 = smov %s14661_s17  ;;  %s14659_s15 = smov %s14665_s18 }
 0x4d1   :  { %12 = sbr.rel (!%p10_p11) target bundleno = 3 (0x3), region = 178 }
 0x4d8   :  { %7345 = vsyncmov [#allocation4] }
 0x4db   :  { %s7346_s5 = vpop.sfrf %7345 }
 0x4dc   :  { %p7859_p12 = scmp.ne.s32.totalorder %s7346_s5, 0 }
 0x4de   :  { %7350 = shalt.err (%p7859_p12)  }
 0x4df   :  { %7352 = vsyncmov [#allocation4 + $0x1] }
 0x4e2   :  { %s7353_s20 = vpop.sfrf %7352 }
 0x4e3   :  { %p7860_p13 = scmp.ne.s32.totalorder %s7353_s20, 0 }
 0x4e5   :  { %7357 = shalt.err (%p7860_p13)  }

</bundles_post_ra>
